<compile_context>
chip_gen: v7x
topology: tpu7x:2x2x1
jax: 0.10.0
libtpu: 0.0.40
codegen_flags: <defaults>
</compile_context>

<pallas_src>
import jax
import jax.numpy as jnp
from jax.experimental import pallas as pl
from jax.experimental.pallas import tpu as pltpu

K = 4          # every DCGAN generator layer uses a 4x4 kernel
BN_EPS = 1e-5
LANE = 128     # TPU lane width: pad channel dims to a multiple of this


def _round_up(x, m):
    return ((x + m - 1) // m) * m


def _pick_tile(m, cap):
    """Largest tile size <= cap that divides m (prefers multiples of 8)."""
    if m <= cap:
        return m
    t = cap - cap % 8
    while t >= 8:
        if m % t == 0:
            return t
        t -= 8
    return m


# --------------------------------------------------------------------------
# Pallas kernels
# --------------------------------------------------------------------------
def _make_conv_kernel(with_stats, activation):
    """GEMM for one (phase, M-tile):  x:(tm,Kd) @ w:(Kd,Cp) -> o:(tm,Cp).

    When `with_stats`, also emits per-tile per-channel sum / sum-of-squares so
    the BatchNorm reduction is fused into the conv epilogue (no extra HBM read
    of the activation).
    """
    if with_stats:
        def kernel(x_ref, w_ref, o_ref, s_ref):
            acc = jnp.dot(x_ref[...], w_ref[...],
                          preferred_element_type=jnp.float32)
            o_ref[...] = acc
            s_ref[0:1, :] = jnp.sum(acc, axis=0, keepdims=True)
            s_ref[1:2, :] = jnp.sum(acc * acc, axis=0, keepdims=True)
        return kernel

    def kernel(x_ref, w_ref, o_ref):
        acc = jnp.dot(x_ref[...], w_ref[...],
                      preferred_element_type=jnp.float32)
        if activation == "tanh":
            acc = jnp.tanh(acc)
        o_ref[...] = acc
    return kernel


def _affine_relu_kernel(x_ref, scale_ref, shift_ref, o_ref):
    """Per-channel affine (precomputed BN scale/shift) + ReLU, lane-dense."""
    o_ref[...] = jnp.maximum(x_ref[...] * scale_ref[...] + shift_ref[...], 0.0)


# --------------------------------------------------------------------------
# Pallas wrappers
# --------------------------------------------------------------------------
def conv_matmul(x_col, w_mats, *, with_stats, activation=None, tm_cap=512):
    """Batched-over-phases GEMM.

    x_col : (Px, M, Kd)  with Px in {1, P} (Px==1 => shared across phases)
    w_mats: (P, Kd, Cp)  Cp is a multiple of 128 (lane-dense output)
    returns (P, M, Cp)   [+ (P, n_m_tiles, 2, Cp) partial BN stats]
    """
    Px, M, Kd = x_col.shape
    P, _, Cp = w_mats.shape
    tm = _pick_tile(M, tm_cap)
    nmt = M // tm
    grid = (P, nmt)

    x_map = (lambda p, i: (p, i, 0)) if Px == P else (lambda p, i: (0, i, 0))
    in_specs = [
        pl.BlockSpec((None, tm, Kd), x_map),
        pl.BlockSpec((None, Kd, Cp), lambda p, i: (p, 0, 0)),
    ]
    out_spec = pl.BlockSpec((None, tm, Cp), lambda p, i: (p, i, 0))

    flops = 2 * P * M * Kd * Cp
    trans = P * M * Cp if activation == "tanh" else 0
    bytes_acc = 4 * (Px * M * Kd + P * Kd * Cp + P * M * Cp)
    cparams = pltpu.CompilerParams(
        dimension_semantics=("parallel", "parallel"))
    cost = pl.CostEstimate(flops=flops, transcendentals=trans,
                           bytes_accessed=bytes_acc)

    if with_stats:
        return pl.pallas_call(
            _make_conv_kernel(True, activation),
            out_shape=(jax.ShapeDtypeStruct((P, M, Cp), jnp.float32),
                       jax.ShapeDtypeStruct((P, nmt, 2, Cp), jnp.float32)),
            grid=grid,
            in_specs=in_specs,
            out_specs=(out_spec,
                       pl.BlockSpec((None, None, 2, Cp),
                                    lambda p, i: (p, i, 0, 0))),
            compiler_params=cparams,
            cost_estimate=cost,
        )(x_col, w_mats)

    return pl.pallas_call(
        _make_conv_kernel(False, activation),
        out_shape=jax.ShapeDtypeStruct((P, M, Cp), jnp.float32),
        grid=grid,
        in_specs=in_specs,
        out_specs=out_spec,
        compiler_params=cparams,
        cost_estimate=cost,
    )(x_col, w_mats)


def affine_relu(x2, scale, shift, *, tr_cap=1024):
    """Tiled, parallel, lane-dense normalize(+ReLU) pass.  x2: (R, Cp)."""
    R, Cp = x2.shape
    tr = _pick_tile(R, tr_cap)
    return pl.pallas_call(
        _affine_relu_kernel,
        out_shape=jax.ShapeDtypeStruct((R, Cp), jnp.float32),
        grid=(R // tr,),
        in_specs=[pl.BlockSpec((tr, Cp), lambda i: (i, 0)),
                  pl.BlockSpec((1, Cp), lambda i: (0, 0)),
                  pl.BlockSpec((1, Cp), lambda i: (0, 0))],
        out_specs=pl.BlockSpec((tr, Cp), lambda i: (i, 0)),
        compiler_params=pltpu.CompilerParams(
            dimension_semantics=("parallel",)),
        cost_estimate=pl.CostEstimate(flops=2 * R * Cp, transcendentals=0,
                                      bytes_accessed=4 * (2 * R * Cp + 2 * Cp)),
    )(x2, scale.reshape(1, Cp), shift.reshape(1, Cp))


# --------------------------------------------------------------------------
# XLA glue: phase im2col / phase interleave / BN scale-shift
# --------------------------------------------------------------------------
# TODO(synk): the 2x2 tap-window gather and the phase interleave below remain
# XLA glue; they could be folded into the kernel with manual DMA windows.
def _build_x_col_s2(x, cin):
    """Per-phase im2col for ConvTranspose2d(k=4, s=2, p=1) phase decomposition.

    Output phase (ph, pw) at (oh', ow') uses input window offsets
    (oh'+ph+th, ow'+pw+tw) of the 1-padded input with kernel taps
    kh = 3 - ph - 2*th, kw = 3 - pw - 2*tw  (th, tw in {0,1}).
    Returns (4, N*H*W, 4*cin) with zero structural waste.
    """
    N, H, W, _ = x.shape
    xp = jnp.pad(x[..., :cin], ((0, 0), (1, 1), (1, 1), (0, 0)))
    cols = []
    for ph in range(2):
        for pw in range(2):
            taps = [xp[:, ph + th:ph + th + H, pw + tw:pw + tw + W, :]
                    for th in range(2) for tw in range(2)]
            cols.append(
                jnp.concatenate(taps, axis=-1).reshape(N * H * W, 4 * cin))
    return jnp.stack(cols, axis=0)


def _interleave_s2(a):
    """(4, N, H, W, C) phase-separated output -> (N, 2H, 2W, C)."""
    _, N, H, W, C = a.shape
    a = a.reshape(2, 2, N, H, W, C).transpose(2, 3, 0, 4, 1, 5)
    return a.reshape(N, 2 * H, 2 * W, C)


def _bn_scale_shift(stats, gamma_pad, beta_pad, count):
    """Reduce per-tile partial sums -> per-channel BN scale/shift (training
    mode, biased variance).  `stats`: (P, n_tiles, 2, Cp)."""
    ssum = jnp.sum(stats[:, :, 0, :], axis=(0, 1))
    ssq = jnp.sum(stats[:, :, 1, :], axis=(0, 1))
    mean = ssum / count
    var = jnp.maximum(ssq / count - mean * mean, 0.0)
    scale = gamma_pad * jax.lax.rsqrt(var + BN_EPS)
    shift = beta_pad - mean * scale
    return scale, shift


# --------------------------------------------------------------------------
# Generator: parameters + forward
# --------------------------------------------------------------------------
def init_generator_params(key, nz, ngf, nc):
    chans = [nz, ngf * 8, ngf * 4, ngf * 2, ngf, nc]
    params = []
    for i in range(5):
        key, sub = jax.random.split(key)
        # ConvTranspose2d weight layout: (in_channels, out_channels, kH, kW)
        w = 0.02 * jax.random.normal(sub, (chans[i], chans[i + 1], K, K),
                                     jnp.float32)
        if i < 4:  # BatchNorm2d affine params (PyTorch init: weight=1, bias=0)
            gamma = jnp.ones((chans[i + 1],), jnp.float32)
            beta = jnp.zeros((chans[i + 1],), jnp.float32)
        else:
            gamma = beta = None
        params.append((w, gamma, beta))
    return params


def prepare_generator_params(raw_params):
    """One-time weight transform (hoisted out of the forward pass)."""
    prep = []
    for i, (w, gamma, beta) in enumerate(raw_params):
        cin, cout = int(w.shape[0]), int(w.shape[1])
        cpad = _round_up(cout, LANE)
        if i == 0:
            # Layer 1: 1x1 input, stride 1, pad 0 -> one GEMM per output pixel
            # (16 "phases", each (cin, cout)).
            wm = jnp.transpose(w, (2, 3, 0, 1)).reshape(K * K, cin, cout)
        else:
            # Stride-2/pad-1 phase decomposition.
            mats = []
            for ph in range(2):
                for pw in range(2):
                    taps = [w[:, :, 3 - ph - 2 * th, 3 - pw - 2 * tw]
                            for th in range(2) for tw in range(2)]
                    mats.append(jnp.concatenate(taps, axis=0))  # (4*cin, cout)
            wm = jnp.stack(mats, axis=0)                         # (4,4*cin,cout)
        wm = jnp.pad(wm, ((0, 0), (0, 0), (0, cpad - cout)))     # lane-dense out
        if gamma is not None:
            g = jnp.pad(gamma, (0, cpad - cout))   # zero-padded => padded
            b = jnp.pad(beta, (0, cpad - cout))    # channels stay exactly zero
        else:
            g = b = None
        prep.append((wm, g, b, cin, cout, cpad))
    return prep


def generator_forward(prep, z_nchw):
    """Pallas forward.  z_nchw: (N, nz, 1, 1) -> (N, nc, 64, 64)."""
    x = jnp.transpose(z_nchw, (0, 2, 3, 1)).astype(jnp.float32)  # NCHW -> NHWC
    N = x.shape[0]

    # ---- layer 1: ConvTranspose(nz, ngf*8, 4, 1, 0) from a 1x1 input -------
    wm, g, b, cin, cout, cpad = prep[0]
    x_col = x.reshape(N, cin)[None]                   # (1, N, nz), shared phases
    out, stats = conv_matmul(x_col, wm, with_stats=True)
    scale, shift = _bn_scale_shift(stats, g, b, K * K * N)
    act = affine_relu(out.reshape(K * K * N, cpad), scale, shift)
    x = act.reshape(K, K, N, cpad).transpose(2, 0, 1, 3)        # (N, 4, 4, cpad)

    # ---- layers 2..4: stride-2 ConvTranspose + BatchNorm + ReLU ------------
    for (wm, g, b, cin, cout, cpad) in prep[1:4]:
        _, H, W, _ = x.shape
        x_col = _build_x_col_s2(x, cin)               # (4, N*H*W, 4*cin)
        out, stats = conv_matmul(x_col, wm, with_stats=True)
        M = N * H * W
        scale, shift = _bn_scale_shift(stats, g, b, 4 * M)
        act = affine_relu(out.reshape(4 * M, cpad), scale, shift)
        x = _interleave_s2(act.reshape(4, N, H, W, cpad))       # (N,2H,2W,cpad)

    # ---- layer 5: stride-2 ConvTranspose + Tanh (fused in the kernel) ------
    wm, _, _, cin, cout, cpad = prep[4]
    _, H, W, _ = x.shape
    x_col = _build_x_col_s2(x, cin)
    out = conv_matmul(x_col, wm, with_stats=False, activation="tanh")
    y = _interleave_s2(out.reshape(4, N, H, W, cpad))[..., :cout]
    return jnp.transpose(y, (0, 3, 1, 2))                        # NHWC -> NCHW


# --------------------------------------------------------------------------
# Pure-JAX reference (same math, via lax.conv_general_dilated)
# --------------------------------------------------------------------------
_STRIDES = (1, 2, 2, 2, 2)
_PADS = (0, 1, 1, 1, 1)


def generator_reference(raw_params, z_nchw):
    x = jnp.transpose(z_nchw, (0, 2, 3, 1)).astype(jnp.float32)
    for i, (w, gamma, beta) in enumerate(raw_params):
        wc = jnp.transpose(jnp.flip(w, axis=(2, 3)), (2, 3, 0, 1))  # HWIO
        p = K - 1 - _PADS[i]
        x = jax.lax.conv_general_dilated(
            x, wc, window_strides=(1, 1), padding=[(p, p), (p, p)],
            lhs_dilation=(_STRIDES[i], _STRIDES[i]),
            dimension_numbers=("NHWC", "HWIO", "NHWC"))
        if i < 4:
            mean = jnp.mean(x, axis=(0, 1, 2), keepdims=True)
            var = jnp.mean(jnp.square(x - mean), axis=(0, 1, 2), keepdims=True)
            x = jnp.maximum(
                (x - mean) * jax.lax.rsqrt(var + BN_EPS) * gamma + beta, 0.0)
        else:
            x = jnp.tanh(x)
    return jnp.transpose(x, (0, 3, 1, 2))


# --------------------------------------------------------------------------
if __name__ == "__main__":
    # Small DCGAN config: nz=16, ngf=8, nc=3, batch=2.  Input (2, 16, 1, 1).
    nz, ngf, nc, batch = 16, 8, 3, 2

    key = jax.random.PRNGKey(0)
    k_params, k_input = jax.random.split(key)
    raw_params = init_generator_params(k_params, nz, ngf, nc)
    prep = prepare_generator_params(raw_params)        # one-time weight prep
    z = jax.random.normal(k_input, (batch, nz, 1, 1), jnp.float32)

    fwd = jax.jit(lambda zz: generator_forward(prep, zz))
    ref_fn = jax.jit(lambda zz: generator_reference(raw_params, zz))

    out = jax.block_until_ready(fwd(z))
    ref = jax.block_until_ready(ref_fn(z))

    assert out.shape == (batch, nc, 64, 64), out.shape
    max_err = float(jnp.max(jnp.abs(out - ref)))
    assert jnp.allclose(out, ref, rtol=1e-3, atol=1e-3), max_err
    print("KERNEL_OK")
</pallas_src>

<mosaic_0001>
module attributes {stable_mosaic.version = 11 : i64} {
  func.func @kernel(%arg0: i32, %arg1: i32, %arg2: memref<1x2x16xf32, #tpu.memory_space<vmem>>, %arg3: memref<1x16x128xf32, #tpu.memory_space<vmem>>, %arg4: memref<1x2x128xf32, #tpu.memory_space<vmem>>, %arg5: memref<1x1x2x128xf32, #tpu.memory_space<vmem>>) attributes {dimension_semantics = [#tpu.dimension_semantics<parallel>, #tpu.dimension_semantics<parallel>], iteration_bounds = array<i64: 16, 1>, scalar_prefetch = 0 : i64, scratch_operands = 0 : i64, tpu.core_type = #tpu.core_type<tc>, window_params = [{transform_indices = @transform_0, window_bounds = array<i64: 1, 2, 16>}, {transform_indices = @transform_1, window_bounds = array<i64: 1, 16, 128>}, {transform_indices = @transform_2, window_bounds = array<i64: 1, 2, 128>}, {transform_indices = @transform_3, window_bounds = array<i64: 1, 1, 2, 128>}]} {
    %c0 = arith.constant 0 : index
    %c0_0 = arith.constant 0 : index
    %c0_1 = arith.constant 0 : index
    %0 = vector.load %arg2[%c0, %c0_0, %c0_1] : memref<1x2x16xf32, #tpu.memory_space<vmem>>, vector<1x2x16xf32>
    %1 = vector.shape_cast %0 : vector<1x2x16xf32> to vector<2x16xf32>
    %c0_2 = arith.constant 0 : index
    %c0_3 = arith.constant 0 : index
    %c0_4 = arith.constant 0 : index
    %2 = vector.load %arg3[%c0_2, %c0_3, %c0_4] : memref<1x16x128xf32, #tpu.memory_space<vmem>>, vector<1x16x128xf32>
    %3 = vector.shape_cast %2 : vector<1x16x128xf32> to vector<16x128xf32>
    %cst = arith.constant dense<0.000000e+00> : vector<2x128xf32>
    %4 = tpu.matmul %1, %3, %cst {dimension_numbers = #tpu.dot_dimension_numbers<[1], [0], [0], [1], [0, 0, 1, 1], [], []>} : vector<2x16xf32>, vector<16x128xf32>, vector<2x128xf32> -> vector<2x128xf32>
    %c0_5 = arith.constant 0 : index
    %c0_6 = arith.constant 0 : index
    %c0_7 = arith.constant 0 : index
    %5 = vector.load %arg4[%c0_5, %c0_6, %c0_7] : memref<1x2x128xf32, #tpu.memory_space<vmem>>, vector<1x2x128xf32>
    %6 = vector.shape_cast %5 : vector<1x2x128xf32> to vector<2x128xf32>
    %7 = vector.shape_cast %4 : vector<2x128xf32> to vector<1x2x128xf32>
    tpu.vector_store %arg4[%c0_5, %c0_6, %c0_7], %7 {strides = array<i32>} : memref<1x2x128xf32, #tpu.memory_space<vmem>>, vector<1x2x128xf32>,
    %cst_8 = arith.constant dense<0.000000e+00> : vector<128xf32>
    %8 = vector.multi_reduction <add>, %4, %cst_8 [0] : vector<2x128xf32> to vector<128xf32>
    %9 = vector.shape_cast %8 : vector<128xf32> to vector<1x128xf32>
    %c0_9 = arith.constant 0 : index
    %c0_10 = arith.constant 0 : index
    %c0_11 = arith.constant 0 : index
    %c0_12 = arith.constant 0 : index
    %10 = vector.load %arg5[%c0_9, %c0_10, %c0_11, %c0_12] : memref<1x1x2x128xf32, #tpu.memory_space<vmem>>, vector<1x1x1x128xf32>
    %11 = vector.shape_cast %10 : vector<1x1x1x128xf32> to vector<1x128xf32>
    %12 = vector.shape_cast %9 : vector<1x128xf32> to vector<1x1x1x128xf32>
    tpu.vector_store %arg5[%c0_9, %c0_10, %c0_11, %c0_12], %12 {strides = array<i32>} : memref<1x1x2x128xf32, #tpu.memory_space<vmem>>, vector<1x1x1x128xf32>,
    %13 = arith.mulf %4, %4 : vector<2x128xf32>
    %cst_13 = arith.constant dense<0.000000e+00> : vector<128xf32>
    %14 = vector.multi_reduction <add>, %13, %cst_13 [0] : vector<2x128xf32> to vector<128xf32>
    %15 = vector.shape_cast %14 : vector<128xf32> to vector<1x128xf32>
    %c0_14 = arith.constant 0 : index
    %c0_15 = arith.constant 0 : index
    %c1 = arith.constant 1 : index
    %c0_16 = arith.constant 0 : index
    %16 = vector.load %arg5[%c0_14, %c0_15, %c1, %c0_16] : memref<1x1x2x128xf32, #tpu.memory_space<vmem>>, vector<1x1x1x128xf32>
    %17 = vector.shape_cast %16 : vector<1x1x1x128xf32> to vector<1x128xf32>
    %18 = vector.shape_cast %15 : vector<1x128xf32> to vector<1x1x1x128xf32>
    tpu.vector_store %arg5[%c0_14, %c0_15, %c1, %c0_16], %18 {strides = array<i32>} : memref<1x1x2x128xf32, #tpu.memory_space<vmem>>, vector<1x1x1x128xf32>,
    return
  }
  func.func @transform_0(%arg0: i32, %arg1: i32) -> (i32, i32, i32) {
    %c0_i32 = arith.constant 0 : i32
    %c0_i32_0 = arith.constant 0 : i32
    %c0_i32_1 = arith.constant 0 : i32
    return %c0_i32, %arg1, %c0_i32_0 : i32, i32, i32
  }
  func.func @transform_1(%arg0: i32, %arg1: i32) -> (i32, i32, i32) {
    %c0_i32 = arith.constant 0 : i32
    %c0_i32_0 = arith.constant 0 : i32
    %c0_i32_1 = arith.constant 0 : i32
    return %arg0, %c0_i32, %c0_i32_0 : i32, i32, i32
  }
  func.func @transform_2(%arg0: i32, %arg1: i32) -> (i32, i32, i32) {
    %c0_i32 = arith.constant 0 : i32
    %c0_i32_0 = arith.constant 0 : i32
    return %arg0, %arg1, %c0_i32 : i32, i32, i32
  }
  func.func @transform_3(%arg0: i32, %arg1: i32) -> (i32, i32, i32, i32) {
    %c0_i32 = arith.constant 0 : i32
    %c0_i32_0 = arith.constant 0 : i32
    %c0_i32_1 = arith.constant 0 : i32
    return %arg0, %arg1, %c0_i32, %c0_i32_0 : i32, i32, i32, i32
  }
}

module attributes {stable_mosaic.version = 11 : i64} {
  func.func @_affine_relu_kernel(%arg0: i32, %arg1: memref<32x128xf32, #tpu.memory_space<vmem>>, %arg2: memref<1x128xf32, #tpu.memory_space<vmem>>, %arg3: memref<1x128xf32, #tpu.memory_space<vmem>>, %arg4: memref<32x128xf32, #tpu.memory_space<vmem>>) attributes {dimension_semantics = [#tpu.dimension_semantics<parallel>], iteration_bounds = array<i64: 1>, scalar_prefetch = 0 : i64, scratch_operands = 0 : i64, tpu.core_type = #tpu.core_type<tc>, window_params = [{transform_indices = @transform_0, window_bounds = array<i64: 32, 128>}, {pipeline_mode = #tpu.pipeline_mode<synchronous>, transform_indices = @transform_1, window_bounds = array<i64: 1, 128>}, {pipeline_mode = #tpu.pipeline_mode<synchronous>, transform_indices = @transform_2, window_bounds = array<i64: 1, 128>}, {transform_indices = @transform_3, window_bounds = array<i64: 32, 128>}]} {
    %c0 = arith.constant 0 : index
    %c0_0 = arith.constant 0 : index
    %0 = vector.load %arg1[%c0, %c0_0] : memref<32x128xf32, #tpu.memory_space<vmem>>, vector<32x128xf32>
    %c0_1 = arith.constant 0 : index
    %c0_2 = arith.constant 0 : index
    %1 = vector.load %arg2[%c0_1, %c0_2] : memref<1x128xf32, #tpu.memory_space<vmem>>, vector<1x128xf32>
    %2 = vector.broadcast %1 : vector<1x128xf32> to vector<32x128xf32>
    %3 = arith.mulf %0, %2 : vector<32x128xf32>
    %c0_3 = arith.constant 0 : index
    %c0_4 = arith.constant 0 : index
    %4 = vector.load %arg3[%c0_3, %c0_4] : memref<1x128xf32, #tpu.memory_space<vmem>>, vector<1x128xf32>
    %5 = vector.broadcast %4 : vector<1x128xf32> to vector<32x128xf32>
    %6 = arith.addf %3, %5 : vector<32x128xf32>
    %cst = arith.constant 0.000000e+00 : f32
    %7 = vector.broadcast %cst : f32 to vector<32x128xf32>
    %8 = arith.maximumf %6, %7 : vector<32x128xf32>
    %c0_5 = arith.constant 0 : index
    %c0_6 = arith.constant 0 : index
    %9 = vector.load %arg4[%c0_5, %c0_6] : memref<32x128xf32, #tpu.memory_space<vmem>>, vector<32x128xf32>
    tpu.vector_store %arg4[%c0_5, %c0_6], %8 {strides = array<i32>} : memref<32x128xf32, #tpu.memory_space<vmem>>, vector<32x128xf32>,
    return
  }
  func.func @transform_0(%arg0: i32) -> (i32, i32) {
    %c0_i32 = arith.constant 0 : i32
    %c0_i32_0 = arith.constant 0 : i32
    return %arg0, %c0_i32 : i32, i32
  }
  func.func @transform_1(%arg0: i32) -> (i32, i32) {
    %c0_i32 = arith.constant 0 : i32
    %c0_i32_0 = arith.constant 0 : i32
    %c0_i32_1 = arith.constant 0 : i32
    return %c0_i32, %c0_i32_0 : i32, i32
  }
  func.func @transform_2(%arg0: i32) -> (i32, i32) {
    %c0_i32 = arith.constant 0 : i32
    %c0_i32_0 = arith.constant 0 : i32
    %c0_i32_1 = arith.constant 0 : i32
    return %c0_i32, %c0_i32_0 : i32, i32
  }
  func.func @transform_3(%arg0: i32) -> (i32, i32) {
    %c0_i32 = arith.constant 0 : i32
    %c0_i32_0 = arith.constant 0 : i32
    return %arg0, %c0_i32 : i32, i32
  }
}

module attributes {stable_mosaic.version = 11 : i64} {
  func.func @kernel(%arg0: i32, %arg1: i32, %arg2: memref<1x32x256xf32, #tpu.memory_space<vmem>>, %arg3: memref<1x256x128xf32, #tpu.memory_space<vmem>>, %arg4: memref<1x32x128xf32, #tpu.memory_space<vmem>>, %arg5: memref<1x1x2x128xf32, #tpu.memory_space<vmem>>) attributes {dimension_semantics = [#tpu.dimension_semantics<parallel>, #tpu.dimension_semantics<parallel>], iteration_bounds = array<i64: 4, 1>, scalar_prefetch = 0 : i64, scratch_operands = 0 : i64, tpu.core_type = #tpu.core_type<tc>, window_params = [{transform_indices = @transform_0, window_bounds = array<i64: 1, 32, 256>}, {transform_indices = @transform_1, window_bounds = array<i64: 1, 256, 128>}, {transform_indices = @transform_2, window_bounds = array<i64: 1, 32, 128>}, {transform_indices = @transform_3, window_bounds = array<i64: 1, 1, 2, 128>}]} {
    %c0 = arith.constant 0 : index
    %c0_0 = arith.constant 0 : index
    %c0_1 = arith.constant 0 : index
    %0 = vector.load %arg2[%c0, %c0_0, %c0_1] : memref<1x32x256xf32, #tpu.memory_space<vmem>>, vector<1x32x256xf32>
    %1 = vector.shape_cast %0 : vector<1x32x256xf32> to vector<32x256xf32>
    %c0_2 = arith.constant 0 : index
    %c0_3 = arith.constant 0 : index
    %c0_4 = arith.constant 0 : index
    %2 = vector.load %arg3[%c0_2, %c0_3, %c0_4] : memref<1x256x128xf32, #tpu.memory_space<vmem>>, vector<1x256x128xf32>
    %3 = vector.shape_cast %2 : vector<1x256x128xf32> to vector<256x128xf32>
    %cst = arith.constant dense<0.000000e+00> : vector<32x128xf32>
    %4 = tpu.matmul %1, %3, %cst {dimension_numbers = #tpu.dot_dimension_numbers<[1], [0], [0], [1], [0, 0, 1, 1], [], []>} : vector<32x256xf32>, vector<256x128xf32>, vector<32x128xf32> -> vector<32x128xf32>
    %c0_5 = arith.constant 0 : index
    %c0_6 = arith.constant 0 : index
    %c0_7 = arith.constant 0 : index
    %5 = vector.load %arg4[%c0_5, %c0_6, %c0_7] : memref<1x32x128xf32, #tpu.memory_space<vmem>>, vector<1x32x128xf32>
    %6 = vector.shape_cast %5 : vector<1x32x128xf32> to vector<32x128xf32>
    %7 = vector.shape_cast %4 : vector<32x128xf32> to vector<1x32x128xf32>
    tpu.vector_store %arg4[%c0_5, %c0_6, %c0_7], %7 {strides = array<i32>} : memref<1x32x128xf32, #tpu.memory_space<vmem>>, vector<1x32x128xf32>,
    %cst_8 = arith.constant dense<0.000000e+00> : vector<128xf32>
    %8 = vector.multi_reduction <add>, %4, %cst_8 [0] : vector<32x128xf32> to vector<128xf32>
    %9 = vector.shape_cast %8 : vector<128xf32> to vector<1x128xf32>
    %c0_9 = arith.constant 0 : index
    %c0_10 = arith.constant 0 : index
    %c0_11 = arith.constant 0 : index
    %c0_12 = arith.constant 0 : index
    %10 = vector.load %arg5[%c0_9, %c0_10, %c0_11, %c0_12] : memref<1x1x2x128xf32, #tpu.memory_space<vmem>>, vector<1x1x1x128xf32>
    %11 = vector.shape_cast %10 : vector<1x1x1x128xf32> to vector<1x128xf32>
    %12 = vector.shape_cast %9 : vector<1x128xf32> to vector<1x1x1x128xf32>
    tpu.vector_store %arg5[%c0_9, %c0_10, %c0_11, %c0_12], %12 {strides = array<i32>} : memref<1x1x2x128xf32, #tpu.memory_space<vmem>>, vector<1x1x1x128xf32>,
    %13 = arith.mulf %4, %4 : vector<32x128xf32>
    %cst_13 = arith.constant dense<0.000000e+00> : vector<128xf32>
    %14 = vector.multi_reduction <add>, %13, %cst_13 [0] : vector<32x128xf32> to vector<128xf32>
    %15 = vector.shape_cast %14 : vector<128xf32> to vector<1x128xf32>
    %c0_14 = arith.constant 0 : index
    %c0_15 = arith.constant 0 : index
    %c1 = arith.constant 1 : index
    %c0_16 = arith.constant 0 : index
    %16 = vector.load %arg5[%c0_14, %c0_15, %c1, %c0_16] : memref<1x1x2x128xf32, #tpu.memory_space<vmem>>, vector<1x1x1x128xf32>
    %17 = vector.shape_cast %16 : vector<1x1x1x128xf32> to vector<1x128xf32>
    %18 = vector.shape_cast %15 : vector<1x128xf32> to vector<1x1x1x128xf32>
    tpu.vector_store %arg5[%c0_14, %c0_15, %c1, %c0_16], %18 {strides = array<i32>} : memref<1x1x2x128xf32, #tpu.memory_space<vmem>>, vector<1x1x1x128xf32>,
    return
  }
  func.func @transform_0(%arg0: i32, %arg1: i32) -> (i32, i32, i32) {
    %c0_i32 = arith.constant 0 : i32
    %c0_i32_0 = arith.constant 0 : i32
    return %arg0, %arg1, %c0_i32 : i32, i32, i32
  }
  func.func @transform_1(%arg0: i32, %arg1: i32) -> (i32, i32, i32) {
    %c0_i32 = arith.constant 0 : i32
    %c0_i32_0 = arith.constant 0 : i32
    %c0_i32_1 = arith.constant 0 : i32
    return %arg0, %c0_i32, %c0_i32_0 : i32, i32, i32
  }
  func.func @transform_2(%arg0: i32, %arg1: i32) -> (i32, i32, i32) {
    %c0_i32 = arith.constant 0 : i32
    %c0_i32_0 = arith.constant 0 : i32
    return %arg0, %arg1, %c0_i32 : i32, i32, i32
  }
  func.func @transform_3(%arg0: i32, %arg1: i32) -> (i32, i32, i32, i32) {
    %c0_i32 = arith.constant 0 : i32
    %c0_i32_0 = arith.constant 0 : i32
    %c0_i32_1 = arith.constant 0 : i32
    return %arg0, %arg1, %c0_i32, %c0_i32_0 : i32, i32, i32, i32
  }
}

module attributes {stable_mosaic.version = 11 : i64} {
  func.func @_affine_relu_kernel(%arg0: i32, %arg1: memref<128x128xf32, #tpu.memory_space<vmem>>, %arg2: memref<1x128xf32, #tpu.memory_space<vmem>>, %arg3: memref<1x128xf32, #tpu.memory_space<vmem>>, %arg4: memref<128x128xf32, #tpu.memory_space<vmem>>) attributes {dimension_semantics = [#tpu.dimension_semantics<parallel>], iteration_bounds = array<i64: 1>, scalar_prefetch = 0 : i64, scratch_operands = 0 : i64, tpu.core_type = #tpu.core_type<tc>, window_params = [{transform_indices = @transform_0, window_bounds = array<i64: 128, 128>}, {pipeline_mode = #tpu.pipeline_mode<synchronous>, transform_indices = @transform_1, window_bounds = array<i64: 1, 128>}, {pipeline_mode = #tpu.pipeline_mode<synchronous>, transform_indices = @transform_2, window_bounds = array<i64: 1, 128>}, {transform_indices = @transform_3, window_bounds = array<i64: 128, 128>}]} {
    %c0 = arith.constant 0 : index
    %c0_0 = arith.constant 0 : index
    %0 = vector.load %arg1[%c0, %c0_0] : memref<128x128xf32, #tpu.memory_space<vmem>>, vector<128x128xf32>
    %c0_1 = arith.constant 0 : index
    %c0_2 = arith.constant 0 : index
    %1 = vector.load %arg2[%c0_1, %c0_2] : memref<1x128xf32, #tpu.memory_space<vmem>>, vector<1x128xf32>
    %2 = vector.broadcast %1 : vector<1x128xf32> to vector<128x128xf32>
    %3 = arith.mulf %0, %2 : vector<128x128xf32>
    %c0_3 = arith.constant 0 : index
    %c0_4 = arith.constant 0 : index
    %4 = vector.load %arg3[%c0_3, %c0_4] : memref<1x128xf32, #tpu.memory_space<vmem>>, vector<1x128xf32>
    %5 = vector.broadcast %4 : vector<1x128xf32> to vector<128x128xf32>
    %6 = arith.addf %3, %5 : vector<128x128xf32>
    %cst = arith.constant 0.000000e+00 : f32
    %7 = vector.broadcast %cst : f32 to vector<128x128xf32>
    %8 = arith.maximumf %6, %7 : vector<128x128xf32>
    %c0_5 = arith.constant 0 : index
    %c0_6 = arith.constant 0 : index
    %9 = vector.load %arg4[%c0_5, %c0_6] : memref<128x128xf32, #tpu.memory_space<vmem>>, vector<128x128xf32>
    tpu.vector_store %arg4[%c0_5, %c0_6], %8 {strides = array<i32>} : memref<128x128xf32, #tpu.memory_space<vmem>>, vector<128x128xf32>,
    return
  }
  func.func @transform_0(%arg0: i32) -> (i32, i32) {
    %c0_i32 = arith.constant 0 : i32
    %c0_i32_0 = arith.constant 0 : i32
    return %arg0, %c0_i32 : i32, i32
  }
  func.func @transform_1(%arg0: i32) -> (i32, i32) {
    %c0_i32 = arith.constant 0 : i32
    %c0_i32_0 = arith.constant 0 : i32
    %c0_i32_1 = arith.constant 0 : i32
    return %c0_i32, %c0_i32_0 : i32, i32
  }
  func.func @transform_2(%arg0: i32) -> (i32, i32) {
    %c0_i32 = arith.constant 0 : i32
    %c0_i32_0 = arith.constant 0 : i32
    %c0_i32_1 = arith.constant 0 : i32
    return %c0_i32, %c0_i32_0 : i32, i32
  }
  func.func @transform_3(%arg0: i32) -> (i32, i32) {
    %c0_i32 = arith.constant 0 : i32
    %c0_i32_0 = arith.constant 0 : i32
    return %arg0, %c0_i32 : i32, i32
  }
}

module attributes {stable_mosaic.version = 11 : i64} {
  func.func @kernel(%arg0: i32, %arg1: i32, %arg2: memref<1x128x128xf32, #tpu.memory_space<vmem>>, %arg3: memref<1x128x128xf32, #tpu.memory_space<vmem>>, %arg4: memref<1x128x128xf32, #tpu.memory_space<vmem>>, %arg5: memref<1x1x2x128xf32, #tpu.memory_space<vmem>>) attributes {dimension_semantics = [#tpu.dimension_semantics<parallel>, #tpu.dimension_semantics<parallel>], iteration_bounds = array<i64: 4, 1>, scalar_prefetch = 0 : i64, scratch_operands = 0 : i64, tpu.core_type = #tpu.core_type<tc>, window_params = [{transform_indices = @transform_0, window_bounds = array<i64: 1, 128, 128>}, {transform_indices = @transform_1, window_bounds = array<i64: 1, 128, 128>}, {transform_indices = @transform_2, window_bounds = array<i64: 1, 128, 128>}, {transform_indices = @transform_3, window_bounds = array<i64: 1, 1, 2, 128>}]} {
    %c0 = arith.constant 0 : index
    %c0_0 = arith.constant 0 : index
    %c0_1 = arith.constant 0 : index
    %0 = vector.load %arg2[%c0, %c0_0, %c0_1] : memref<1x128x128xf32, #tpu.memory_space<vmem>>, vector<1x128x128xf32>
    %1 = vector.shape_cast %0 : vector<1x128x128xf32> to vector<128x128xf32>
    %c0_2 = arith.constant 0 : index
    %c0_3 = arith.constant 0 : index
    %c0_4 = arith.constant 0 : index
    %2 = vector.load %arg3[%c0_2, %c0_3, %c0_4] : memref<1x128x128xf32, #tpu.memory_space<vmem>>, vector<1x128x128xf32>
    %3 = vector.shape_cast %2 : vector<1x128x128xf32> to vector<128x128xf32>
    %cst = arith.constant dense<0.000000e+00> : vector<128x128xf32>
    %4 = tpu.matmul %1, %3, %cst {dimension_numbers = #tpu.dot_dimension_numbers<[1], [0], [0], [1], [0, 0, 1, 1], [], []>} : vector<128x128xf32>, vector<128x128xf32>, vector<128x128xf32> -> vector<128x128xf32>
    %c0_5 = arith.constant 0 : index
    %c0_6 = arith.constant 0 : index
    %c0_7 = arith.constant 0 : index
    %5 = vector.load %arg4[%c0_5, %c0_6, %c0_7] : memref<1x128x128xf32, #tpu.memory_space<vmem>>, vector<1x128x128xf32>
    %6 = vector.shape_cast %5 : vector<1x128x128xf32> to vector<128x128xf32>
    %7 = vector.shape_cast %4 : vector<128x128xf32> to vector<1x128x128xf32>
    tpu.vector_store %arg4[%c0_5, %c0_6, %c0_7], %7 {strides = array<i32>} : memref<1x128x128xf32, #tpu.memory_space<vmem>>, vector<1x128x128xf32>,
    %cst_8 = arith.constant dense<0.000000e+00> : vector<128xf32>
    %8 = vector.multi_reduction <add>, %4, %cst_8 [0] : vector<128x128xf32> to vector<128xf32>
    %9 = vector.shape_cast %8 : vector<128xf32> to vector<1x128xf32>
    %c0_9 = arith.constant 0 : index
    %c0_10 = arith.constant 0 : index
    %c0_11 = arith.constant 0 : index
    %c0_12 = arith.constant 0 : index
    %10 = vector.load %arg5[%c0_9, %c0_10, %c0_11, %c0_12] : memref<1x1x2x128xf32, #tpu.memory_space<vmem>>, vector<1x1x1x128xf32>
    %11 = vector.shape_cast %10 : vector<1x1x1x128xf32> to vector<1x128xf32>
    %12 = vector.shape_cast %9 : vector<1x128xf32> to vector<1x1x1x128xf32>
    tpu.vector_store %arg5[%c0_9, %c0_10, %c0_11, %c0_12], %12 {strides = array<i32>} : memref<1x1x2x128xf32, #tpu.memory_space<vmem>>, vector<1x1x1x128xf32>,
    %13 = arith.mulf %4, %4 : vector<128x128xf32>
    %cst_13 = arith.constant dense<0.000000e+00> : vector<128xf32>
    %14 = vector.multi_reduction <add>, %13, %cst_13 [0] : vector<128x128xf32> to vector<128xf32>
    %15 = vector.shape_cast %14 : vector<128xf32> to vector<1x128xf32>
    %c0_14 = arith.constant 0 : index
    %c0_15 = arith.constant 0 : index
    %c1 = arith.constant 1 : index
    %c0_16 = arith.constant 0 : index
    %16 = vector.load %arg5[%c0_14, %c0_15, %c1, %c0_16] : memref<1x1x2x128xf32, #tpu.memory_space<vmem>>, vector<1x1x1x128xf32>
    %17 = vector.shape_cast %16 : vector<1x1x1x128xf32> to vector<1x128xf32>
    %18 = vector.shape_cast %15 : vector<1x128xf32> to vector<1x1x1x128xf32>
    tpu.vector_store %arg5[%c0_14, %c0_15, %c1, %c0_16], %18 {strides = array<i32>} : memref<1x1x2x128xf32, #tpu.memory_space<vmem>>, vector<1x1x1x128xf32>,
    return
  }
  func.func @transform_0(%arg0: i32, %arg1: i32) -> (i32, i32, i32) {
    %c0_i32 = arith.constant 0 : i32
    %c0_i32_0 = arith.constant 0 : i32
    return %arg0, %arg1, %c0_i32 : i32, i32, i32
  }
  func.func @transform_1(%arg0: i32, %arg1: i32) -> (i32, i32, i32) {
    %c0_i32 = arith.constant 0 : i32
    %c0_i32_0 = arith.constant 0 : i32
    %c0_i32_1 = arith.constant 0 : i32
    return %arg0, %c0_i32, %c0_i32_0 : i32, i32, i32
  }
  func.func @transform_2(%arg0: i32, %arg1: i32) -> (i32, i32, i32) {
    %c0_i32 = arith.constant 0 : i32
    %c0_i32_0 = arith.constant 0 : i32
    return %arg0, %arg1, %c0_i32 : i32, i32, i32
  }
  func.func @transform_3(%arg0: i32, %arg1: i32) -> (i32, i32, i32, i32) {
    %c0_i32 = arith.constant 0 : i32
    %c0_i32_0 = arith.constant 0 : i32
    %c0_i32_1 = arith.constant 0 : i32
    return %arg0, %arg1, %c0_i32, %c0_i32_0 : i32, i32, i32, i32
  }
}

module attributes {stable_mosaic.version = 11 : i64} {
  func.func @_affine_relu_kernel(%arg0: i32, %arg1: memref<512x128xf32, #tpu.memory_space<vmem>>, %arg2: memref<1x128xf32, #tpu.memory_space<vmem>>, %arg3: memref<1x128xf32, #tpu.memory_space<vmem>>, %arg4: memref<512x128xf32, #tpu.memory_space<vmem>>) attributes {dimension_semantics = [#tpu.dimension_semantics<parallel>], iteration_bounds = array<i64: 1>, scalar_prefetch = 0 : i64, scratch_operands = 0 : i64, tpu.core_type = #tpu.core_type<tc>, window_params = [{transform_indices = @transform_0, window_bounds = array<i64: 512, 128>}, {pipeline_mode = #tpu.pipeline_mode<synchronous>, transform_indices = @transform_1, window_bounds = array<i64: 1, 128>}, {pipeline_mode = #tpu.pipeline_mode<synchronous>, transform_indices = @transform_2, window_bounds = array<i64: 1, 128>}, {transform_indices = @transform_3, window_bounds = array<i64: 512, 128>}]} {
    %c0 = arith.constant 0 : index
    %c0_0 = arith.constant 0 : index
    %0 = vector.load %arg1[%c0, %c0_0] : memref<512x128xf32, #tpu.memory_space<vmem>>, vector<512x128xf32>
    %c0_1 = arith.constant 0 : index
    %c0_2 = arith.constant 0 : index
    %1 = vector.load %arg2[%c0_1, %c0_2] : memref<1x128xf32, #tpu.memory_space<vmem>>, vector<1x128xf32>
    %2 = vector.broadcast %1 : vector<1x128xf32> to vector<512x128xf32>
    %3 = arith.mulf %0, %2 : vector<512x128xf32>
    %c0_3 = arith.constant 0 : index
    %c0_4 = arith.constant 0 : index
    %4 = vector.load %arg3[%c0_3, %c0_4] : memref<1x128xf32, #tpu.memory_space<vmem>>, vector<1x128xf32>
    %5 = vector.broadcast %4 : vector<1x128xf32> to vector<512x128xf32>
    %6 = arith.addf %3, %5 : vector<512x128xf32>
    %cst = arith.constant 0.000000e+00 : f32
    %7 = vector.broadcast %cst : f32 to vector<512x128xf32>
    %8 = arith.maximumf %6, %7 : vector<512x128xf32>
    %c0_5 = arith.constant 0 : index
    %c0_6 = arith.constant 0 : index
    %9 = vector.load %arg4[%c0_5, %c0_6] : memref<512x128xf32, #tpu.memory_space<vmem>>, vector<512x128xf32>
    tpu.vector_store %arg4[%c0_5, %c0_6], %8 {strides = array<i32>} : memref<512x128xf32, #tpu.memory_space<vmem>>, vector<512x128xf32>,
    return
  }
  func.func @transform_0(%arg0: i32) -> (i32, i32) {
    %c0_i32 = arith.constant 0 : i32
    %c0_i32_0 = arith.constant 0 : i32
    return %arg0, %c0_i32 : i32, i32
  }
  func.func @transform_1(%arg0: i32) -> (i32, i32) {
    %c0_i32 = arith.constant 0 : i32
    %c0_i32_0 = arith.constant 0 : i32
    %c0_i32_1 = arith.constant 0 : i32
    return %c0_i32, %c0_i32_0 : i32, i32
  }
  func.func @transform_2(%arg0: i32) -> (i32, i32) {
    %c0_i32 = arith.constant 0 : i32
    %c0_i32_0 = arith.constant 0 : i32
    %c0_i32_1 = arith.constant 0 : i32
    return %c0_i32, %c0_i32_0 : i32, i32
  }
  func.func @transform_3(%arg0: i32) -> (i32, i32) {
    %c0_i32 = arith.constant 0 : i32
    %c0_i32_0 = arith.constant 0 : i32
    return %arg0, %c0_i32 : i32, i32
  }
}

module attributes {stable_mosaic.version = 11 : i64} {
  func.func @kernel(%arg0: i32, %arg1: i32, %arg2: memref<1x512x64xf32, #tpu.memory_space<vmem>>, %arg3: memref<1x64x128xf32, #tpu.memory_space<vmem>>, %arg4: memref<1x512x128xf32, #tpu.memory_space<vmem>>, %arg5: memref<1x1x2x128xf32, #tpu.memory_space<vmem>>) attributes {dimension_semantics = [#tpu.dimension_semantics<parallel>, #tpu.dimension_semantics<parallel>], iteration_bounds = array<i64: 4, 1>, scalar_prefetch = 0 : i64, scratch_operands = 0 : i64, tpu.core_type = #tpu.core_type<tc>, window_params = [{transform_indices = @transform_0, window_bounds = array<i64: 1, 512, 64>}, {transform_indices = @transform_1, window_bounds = array<i64: 1, 64, 128>}, {transform_indices = @transform_2, window_bounds = array<i64: 1, 512, 128>}, {transform_indices = @transform_3, window_bounds = array<i64: 1, 1, 2, 128>}]} {
    %c0 = arith.constant 0 : index
    %c0_0 = arith.constant 0 : index
    %c0_1 = arith.constant 0 : index
    %0 = vector.load %arg2[%c0, %c0_0, %c0_1] : memref<1x512x64xf32, #tpu.memory_space<vmem>>, vector<1x512x64xf32>
    %1 = vector.shape_cast %0 : vector<1x512x64xf32> to vector<512x64xf32>
    %c0_2 = arith.constant 0 : index
    %c0_3 = arith.constant 0 : index
    %c0_4 = arith.constant 0 : index
    %2 = vector.load %arg3[%c0_2, %c0_3, %c0_4] : memref<1x64x128xf32, #tpu.memory_space<vmem>>, vector<1x64x128xf32>
    %3 = vector.shape_cast %2 : vector<1x64x128xf32> to vector<64x128xf32>
    %cst = arith.constant dense<0.000000e+00> : vector<512x128xf32>
    %4 = tpu.matmul %1, %3, %cst {dimension_numbers = #tpu.dot_dimension_numbers<[1], [0], [0], [1], [0, 0, 1, 1], [], []>} : vector<512x64xf32>, vector<64x128xf32>, vector<512x128xf32> -> vector<512x128xf32>
    %c0_5 = arith.constant 0 : index
    %c0_6 = arith.constant 0 : index
    %c0_7 = arith.constant 0 : index
    %5 = vector.load %arg4[%c0_5, %c0_6, %c0_7] : memref<1x512x128xf32, #tpu.memory_space<vmem>>, vector<1x512x128xf32>
    %6 = vector.shape_cast %5 : vector<1x512x128xf32> to vector<512x128xf32>
    %7 = vector.shape_cast %4 : vector<512x128xf32> to vector<1x512x128xf32>
    tpu.vector_store %arg4[%c0_5, %c0_6, %c0_7], %7 {strides = array<i32>} : memref<1x512x128xf32, #tpu.memory_space<vmem>>, vector<1x512x128xf32>,
    %cst_8 = arith.constant dense<0.000000e+00> : vector<128xf32>
    %8 = vector.multi_reduction <add>, %4, %cst_8 [0] : vector<512x128xf32> to vector<128xf32>
    %9 = vector.shape_cast %8 : vector<128xf32> to vector<1x128xf32>
    %c0_9 = arith.constant 0 : index
    %c0_10 = arith.constant 0 : index
    %c0_11 = arith.constant 0 : index
    %c0_12 = arith.constant 0 : index
    %10 = vector.load %arg5[%c0_9, %c0_10, %c0_11, %c0_12] : memref<1x1x2x128xf32, #tpu.memory_space<vmem>>, vector<1x1x1x128xf32>
    %11 = vector.shape_cast %10 : vector<1x1x1x128xf32> to vector<1x128xf32>
    %12 = vector.shape_cast %9 : vector<1x128xf32> to vector<1x1x1x128xf32>
    tpu.vector_store %arg5[%c0_9, %c0_10, %c0_11, %c0_12], %12 {strides = array<i32>} : memref<1x1x2x128xf32, #tpu.memory_space<vmem>>, vector<1x1x1x128xf32>,
    %13 = arith.mulf %4, %4 : vector<512x128xf32>
    %cst_13 = arith.constant dense<0.000000e+00> : vector<128xf32>
    %14 = vector.multi_reduction <add>, %13, %cst_13 [0] : vector<512x128xf32> to vector<128xf32>
    %15 = vector.shape_cast %14 : vector<128xf32> to vector<1x128xf32>
    %c0_14 = arith.constant 0 : index
    %c0_15 = arith.constant 0 : index
    %c1 = arith.constant 1 : index
    %c0_16 = arith.constant 0 : index
    %16 = vector.load %arg5[%c0_14, %c0_15, %c1, %c0_16] : memref<1x1x2x128xf32, #tpu.memory_space<vmem>>, vector<1x1x1x128xf32>
    %17 = vector.shape_cast %16 : vector<1x1x1x128xf32> to vector<1x128xf32>
    %18 = vector.shape_cast %15 : vector<1x128xf32> to vector<1x1x1x128xf32>
    tpu.vector_store %arg5[%c0_14, %c0_15, %c1, %c0_16], %18 {strides = array<i32>} : memref<1x1x2x128xf32, #tpu.memory_space<vmem>>, vector<1x1x1x128xf32>,
    return
  }
  func.func @transform_0(%arg0: i32, %arg1: i32) -> (i32, i32, i32) {
    %c0_i32 = arith.constant 0 : i32
    %c0_i32_0 = arith.constant 0 : i32
    return %arg0, %arg1, %c0_i32 : i32, i32, i32
  }
  func.func @transform_1(%arg0: i32, %arg1: i32) -> (i32, i32, i32) {
    %c0_i32 = arith.constant 0 : i32
    %c0_i32_0 = arith.constant 0 : i32
    %c0_i32_1 = arith.constant 0 : i32
    return %arg0, %c0_i32, %c0_i32_0 : i32, i32, i32
  }
  func.func @transform_2(%arg0: i32, %arg1: i32) -> (i32, i32, i32) {
    %c0_i32 = arith.constant 0 : i32
    %c0_i32_0 = arith.constant 0 : i32
    return %arg0, %arg1, %c0_i32 : i32, i32, i32
  }
  func.func @transform_3(%arg0: i32, %arg1: i32) -> (i32, i32, i32, i32) {
    %c0_i32 = arith.constant 0 : i32
    %c0_i32_0 = arith.constant 0 : i32
    %c0_i32_1 = arith.constant 0 : i32
    return %arg0, %arg1, %c0_i32, %c0_i32_0 : i32, i32, i32, i32
  }
}

module attributes {stable_mosaic.version = 11 : i64} {
  func.func @_affine_relu_kernel(%arg0: i32, %arg1: memref<1024x128xf32, #tpu.memory_space<vmem>>, %arg2: memref<1x128xf32, #tpu.memory_space<vmem>>, %arg3: memref<1x128xf32, #tpu.memory_space<vmem>>, %arg4: memref<1024x128xf32, #tpu.memory_space<vmem>>) attributes {dimension_semantics = [#tpu.dimension_semantics<parallel>], iteration_bounds = array<i64: 2>, scalar_prefetch = 0 : i64, scratch_operands = 0 : i64, tpu.core_type = #tpu.core_type<tc>, window_params = [{transform_indices = @transform_0, window_bounds = array<i64: 1024, 128>}, {pipeline_mode = #tpu.pipeline_mode<synchronous>, transform_indices = @transform_1, window_bounds = array<i64: 1, 128>}, {pipeline_mode = #tpu.pipeline_mode<synchronous>, transform_indices = @transform_2, window_bounds = array<i64: 1, 128>}, {transform_indices = @transform_3, window_bounds = array<i64: 1024, 128>}]} {
    %c0 = arith.constant 0 : index
    %c0_0 = arith.constant 0 : index
    %0 = vector.load %arg1[%c0, %c0_0] : memref<1024x128xf32, #tpu.memory_space<vmem>>, vector<1024x128xf32>
    %c0_1 = arith.constant 0 : index
    %c0_2 = arith.constant 0 : index
    %1 = vector.load %arg2[%c0_1, %c0_2] : memref<1x128xf32, #tpu.memory_space<vmem>>, vector<1x128xf32>
    %2 = vector.broadcast %1 : vector<1x128xf32> to vector<1024x128xf32>
    %3 = arith.mulf %0, %2 : vector<1024x128xf32>
    %c0_3 = arith.constant 0 : index
    %c0_4 = arith.constant 0 : index
    %4 = vector.load %arg3[%c0_3, %c0_4] : memref<1x128xf32, #tpu.memory_space<vmem>>, vector<1x128xf32>
    %5 = vector.broadcast %4 : vector<1x128xf32> to vector<1024x128xf32>
    %6 = arith.addf %3, %5 : vector<1024x128xf32>
    %cst = arith.constant 0.000000e+00 : f32
    %7 = vector.broadcast %cst : f32 to vector<1024x128xf32>
    %8 = arith.maximumf %6, %7 : vector<1024x128xf32>
    %c0_5 = arith.constant 0 : index
    %c0_6 = arith.constant 0 : index
    %9 = vector.load %arg4[%c0_5, %c0_6] : memref<1024x128xf32, #tpu.memory_space<vmem>>, vector<1024x128xf32>
    tpu.vector_store %arg4[%c0_5, %c0_6], %8 {strides = array<i32>} : memref<1024x128xf32, #tpu.memory_space<vmem>>, vector<1024x128xf32>,
    return
  }
  func.func @transform_0(%arg0: i32) -> (i32, i32) {
    %c0_i32 = arith.constant 0 : i32
    %c0_i32_0 = arith.constant 0 : i32
    return %arg0, %c0_i32 : i32, i32
  }
  func.func @transform_1(%arg0: i32) -> (i32, i32) {
    %c0_i32 = arith.constant 0 : i32
    %c0_i32_0 = arith.constant 0 : i32
    %c0_i32_1 = arith.constant 0 : i32
    return %c0_i32, %c0_i32_0 : i32, i32
  }
  func.func @transform_2(%arg0: i32) -> (i32, i32) {
    %c0_i32 = arith.constant 0 : i32
    %c0_i32_0 = arith.constant 0 : i32
    %c0_i32_1 = arith.constant 0 : i32
    return %c0_i32, %c0_i32_0 : i32, i32
  }
  func.func @transform_3(%arg0: i32) -> (i32, i32) {
    %c0_i32 = arith.constant 0 : i32
    %c0_i32_0 = arith.constant 0 : i32
    return %arg0, %c0_i32 : i32, i32
  }
}

module attributes {stable_mosaic.version = 11 : i64} {
  func.func @kernel(%arg0: i32, %arg1: i32, %arg2: memref<1x512x32xf32, #tpu.memory_space<vmem>>, %arg3: memref<1x32x128xf32, #tpu.memory_space<vmem>>, %arg4: memref<1x512x128xf32, #tpu.memory_space<vmem>>) attributes {dimension_semantics = [#tpu.dimension_semantics<parallel>, #tpu.dimension_semantics<parallel>], iteration_bounds = array<i64: 4, 4>, scalar_prefetch = 0 : i64, scratch_operands = 0 : i64, tpu.core_type = #tpu.core_type<tc>, window_params = [{transform_indices = @transform_0, window_bounds = array<i64: 1, 512, 32>}, {transform_indices = @transform_1, window_bounds = array<i64: 1, 32, 128>}, {transform_indices = @transform_2, window_bounds = array<i64: 1, 512, 128>}]} {
    %c0 = arith.constant 0 : index
    %c0_0 = arith.constant 0 : index
    %c0_1 = arith.constant 0 : index
    %0 = vector.load %arg2[%c0, %c0_0, %c0_1] : memref<1x512x32xf32, #tpu.memory_space<vmem>>, vector<1x512x32xf32>
    %1 = vector.shape_cast %0 : vector<1x512x32xf32> to vector<512x32xf32>
    %c0_2 = arith.constant 0 : index
    %c0_3 = arith.constant 0 : index
    %c0_4 = arith.constant 0 : index
    %2 = vector.load %arg3[%c0_2, %c0_3, %c0_4] : memref<1x32x128xf32, #tpu.memory_space<vmem>>, vector<1x32x128xf32>
    %3 = vector.shape_cast %2 : vector<1x32x128xf32> to vector<32x128xf32>
    %cst = arith.constant dense<0.000000e+00> : vector<512x128xf32>
    %4 = tpu.matmul %1, %3, %cst {dimension_numbers = #tpu.dot_dimension_numbers<[1], [0], [0], [1], [0, 0, 1, 1], [], []>} : vector<512x32xf32>, vector<32x128xf32>, vector<512x128xf32> -> vector<512x128xf32>
    %5 = math.tanh %4 : vector<512x128xf32>
    %c0_5 = arith.constant 0 : index
    %c0_6 = arith.constant 0 : index
    %c0_7 = arith.constant 0 : index
    %6 = vector.load %arg4[%c0_5, %c0_6, %c0_7] : memref<1x512x128xf32, #tpu.memory_space<vmem>>, vector<1x512x128xf32>
    %7 = vector.shape_cast %6 : vector<1x512x128xf32> to vector<512x128xf32>
    %8 = vector.shape_cast %5 : vector<512x128xf32> to vector<1x512x128xf32>
    tpu.vector_store %arg4[%c0_5, %c0_6, %c0_7], %8 {strides = array<i32>} : memref<1x512x128xf32, #tpu.memory_space<vmem>>, vector<1x512x128xf32>,
    return
  }
  func.func @transform_0(%arg0: i32, %arg1: i32) -> (i32, i32, i32) {
    %c0_i32 = arith.constant 0 : i32
    %c0_i32_0 = arith.constant 0 : i32
    return %arg0, %arg1, %c0_i32 : i32, i32, i32
  }
  func.func @transform_1(%arg0: i32, %arg1: i32) -> (i32, i32, i32) {
    %c0_i32 = arith.constant 0 : i32
    %c0_i32_0 = arith.constant 0 : i32
    %c0_i32_1 = arith.constant 0 : i32
    return %arg0, %c0_i32, %c0_i32_0 : i32, i32, i32
  }
  func.func @transform_2(%arg0: i32, %arg1: i32) -> (i32, i32, i32) {
    %c0_i32 = arith.constant 0 : i32
    %c0_i32_0 = arith.constant 0 : i32
    return %arg0, %arg1, %c0_i32 : i32, i32, i32
  }
}

</mosaic_0001>

<bundles_post_ra>
// kernel: _lambda_.9
= control target key start
LH: loop header
LB: loop body
LE: loop exit
PB: predicated region body
PF: predicated region fallthrough
CT: control target
= control target key end

     0   :  { %9 = vsyncpa [#allocation3], 0  ;;  %s897_s0 = inlined_call_operand.hbm [shape: f32[1,2,16], index: 0, kind: input, shape index: {}]   ;;  %s898_s1 = inlined_call_operand.hbm [shape: f32[16,16,128], index: 1, kind: input, shape index: {}]   ;;  %s899_s2 = inlined_call_operand.vmem [shape: f32[16,2,128], index: 2, kind: output, shape index: {0}]   ;;  %s900_s3 = inlined_call_operand.vmem [shape: f32[16,1,2,128], index: 3, kind: output, shape index: {1}]  }
   0x1   :  { %10 = vsyncpa [#allocation5], 0 }
   0x2   :  { %12 = vsyncpa [#allocation5 + $0x1], 0  ;;  %s724_s12 = smov 0   ;;  %s726_s13 = smov 0  }
   0x3   :  { %s728_s14 = smov 0   ;;  %s730_s15 = smov 0  }
   0x4   :  { %s732_s16 = smov 0   ;;  %s734_s17 = smov 0  }
   0x5 LB: > { %s482_s18 = sadd.s32 4294967295, %s695_s17   ;;  %s63_s19 = sadd.s32 1, %s683_s14  ;;  %s695_s17 = sphi %s734_s17, %s18_s17   ;;  %s691_s16 = sphi %s732_s16, %s920_s16   ;;  %s687_s15 = sphi %s730_s15, %s919_s15   ;;  %s683_s14 = sphi %s728_s14, %s918_s14   ;;  %s679_s13 = sphi %s726_s13, %s917_s13   ;;  %s675_s12 = sphi %s724_s12, %s916_s12  }
   0x6   : > { %p70_p0 = scmp.ne.s32.totalorder %s683_s14, %s679_s13  ;;  %p71_p1 = scmp.eq.s32.totalorder %s695_s17, 0 }
   0x7   : > { %p76_p2 = scmp.ne.s32.totalorder %s679_s13, %s675_s12  ;;  %p758_p3 = scmp.eq.s32.totalorder %s482_s18, 0 }
   0x8   : > { %p72_p4 = por %p71_p1, %p70_p0  ;;  %p484_p5 = scmp.ge.s32.totalorder %s695_s17, 1 }
   0x9   : > { %s906_s20 = scalar_select %p758_p3, 1, 0 }
   0xa   : > { %p765_p6 = por %p758_p3, %p76_p2  ;;  %p143_p7 = scmp.lt.s32.totalorder %s695_s17, 17 }
   0xb   : > { %s697_s23 = smov [#allocation2]   ;;  %p527_p10 = scmp.lt.s32.totalorder %s695_s17, 16 }
   0xc   : > { %s907_s21 = scalar_select %p765_p6, 1, 0 }
   0xd   : > { %p770_p8 = pnand %p484_p5, %p143_p7  ;;  %s158_s24 = sshll.u32 %s697_s23, 4  ;;  %s159_s24 = int_to_ptr.vmem [resolvable:$true] %s158_s24 }
   0xe   : > { %s169_s25 = sand.u32 1, %s683_s14   ;;  %p784_p12 = pnand %p527_p10, %p72_p4 }
   0xf   : > { %s908_s22 = scalar_select %p770_p8, 1, 0 }
  0x10   : > { %p518_p9 = pneg %p770_p8  ;;  %s583_s30 = scalar_lea.hbm %s897_s0, 32 }
  0x11   : > { %s910_s27 = scalar_select %p784_p12, 1, 0 }
  0x12   : > { %p780_p11 = pnand %p518_p9, %p758_p3  ;;  %p584_p13 = scmp.ne.s32.totalorder %s897_s0, %s583_s30 }
  0x13   : > { %p590_p5 = scmp.lt.u32.totalorder %s583_s30, %s897_s0 }
  0x14   : > { %p585_p0 = pneg %p780_p11 }
  0x16   : > { %p586_p1 = pnand %p585_p0, %p584_p13 }
  0x18   : > { %p587_p2 = pneg %p586_p1 }
  0x1a   : > { %p592_p4 = pnand %p590_p5, %p587_p2 }
  0x1c   : > { %595 = shalt.err (!%p592_p4)
}
  0x1d   : > { %s596_s8 = scalar_lea.vmem %s159_s24, 32  ;;  %p604_p6 = scmp.lt.s32.totalorder %s159_s24, %s159_s24 }
  0x1e   : > { %p597_p7 = scmp.ne.s32.totalorder %s159_s24, %s596_s8  ;;  %p605_p3 = scmp.lt.s32.totalorder %s596_s8, %s596_s8 }
  0x20   : > { %p599_p9 = pnand %p597_p7, %p585_p0  ;;  %p606_p8 = por %p605_p3, %p604_p6 }
  0x22   : > { %p600_p10 = pneg %p599_p9 }
  0x24   : > { %p607_p12 = pnand %p606_p8, %p600_p10 }
  0x26   : > { %610 = shalt.err (!%p607_p12)
}
  0x27   : > { %521 = dma.hbm_to_vmem [thread:$0]  (!%p780_p11), %s897_s0, 32, %s159_s24, [#allocation3]  }
  0x28   : > { %s30_s11 = sadd.s32 1, %s691_s16  ;;  %s487_s12 = sshll.u32 %s169_s25, 4 }
  0x29   : > { %p32_p13 = scmp.ge.s32.totalorder %s30_s11, 16  ;;  %s498_s18 = sshll.u32 %s691_s16, 8 }
  0x2a   : > { %s173_s23 = scalar_lea.vmem [#allocation4], %s487_s12  ;;  %s813_s30 = scalar_lea.hbm %s898_s1, %s498_s18 }
  0x2b   : > { %s180_s28 = sshll.u32 %s173_s23, 4  ;;  %s922_s11 = smov (%p32_p13, %s30_s11), 0  ;;  %s815_s28 = int_to_ptr.vmem [resolvable:$true] %s180_s28 }
  0x2c   : > { %s60_s24 = ssub.s32 %s691_s16, %s922_s11  ;;  %s825_s5 = scalar_lea.sflag [#allocation5], %s169_s25 }
  0x2d   : > { %p819_p3 = scmp.eq.s32.totalorder %s60_s24, 0  ;;  %s611_s6 = scalar_lea.hbm %s813_s30, 256 }
  0x2e   : > { %p612_p6 = scmp.ne.s32.totalorder %s813_s30, %s611_s6  ;;  %p912_p8 = scmp.ne.s32.totalorder %s910_s27, 0 }
  0x2f   : > { %s616_s9 = scalar_lea.hbm %s898_s1, 4096  ;;  %p617_p1 = scmp.lt.u32.totalorder %s813_s30, %s898_s1 }
  0x30   : > { %p613_p11 = pneg %p912_p8  ;;  %p618_p2 = scmp.lt.u32.totalorder %s616_s9, %s611_s6 }
  0x31   : > { %p620_p4 = scmp.lt.u32.totalorder %s611_s6, %s813_s30 }
  0x32   : > { %p614_p12 = pnand %p613_p11, %p612_p6  ;;  %p619_p5 = por %p618_p2, %p617_p1 }
  0x34   : > { %p615_p0 = pneg %p614_p12  ;;  %p621_p7 = por %p620_p4, %p619_p5 }
  0x36   : > { %p622_p9 = pnand %p621_p7, %p615_p0 }
  0x38   : > { %625 = shalt.err (!%p622_p9)
}
  0x39   : > { %s626_s25 = scalar_lea.vmem %s815_s28, 256  ;;  %s698_s18 = smov [#allocation4]  }
  0x3a   : > { %p627_p10 = scmp.ne.s32.totalorder %s815_s28, %s626_s25  ;;  %s631_s23 = sshll.u32 %s698_s18, 4  ;;  %s632_s23 = int_to_ptr.vmem [resolvable:$false] %s631_s23 }
  0x3b   : > { %s633_s26 = scalar_lea.vmem %s632_s23, 512  ;;  %p634_p12 = scmp.lt.s32.totalorder %s815_s28, %s632_s23 }
  0x3c   : > { %p629_p13 = pnand %p627_p10, %p613_p11  ;;  %p635_p1 = scmp.lt.s32.totalorder %s633_s26, %s626_s25 }
  0x3e   : > { %p630_p6 = pneg %p629_p13  ;;  %p636_p2 = por %p635_p1, %p634_p12 }
  0x40   : > { %p637_p5 = pnand %p636_p2, %p630_p6 }
  0x42   : > { %640 = shalt.err (!%p637_p5)
}
  0x43   : > { %s699_s29 = smov 128   ;;  %s700_s24 = smov 8  }
  0x44   : > { %525 = dma.hbm_to_vmem [thread:$0]  (!%p912_p8), %s813_s30, 256, %s815_s28, %s825_s5, %s699_s29, %s699_s29, %s700_s24  }
  0x45   : > { %s858_s6 = scalar_select %p819_p3, %s683_s14, %s63_s19  }
  0x46   : > { %p913_p11 = scmp.ne.s32.totalorder %s908_s22, 0 }
  0x47   : > { %p914_p0 = scmp.ne.s32.totalorder (!%p913_p11), %s906_s20, 0 }
  0x48   : > { %192 = sbr.rel (%p913_p11) target bundleno = 318 (0x13e), region = 28 }
  0x4f   : > { %666 = dma.done.wait (%p914_p0), [#allocation3], 32  }
  0x50   : > { %668 = vsyncadd (%p914_p0), [#allocation3], 4294967264  ;;  %s198_s7 = sand.u32 1, %s679_s13   ;;  %p915_p8 = scmp.ne.s32.totalorder %s907_s21, 0 }
  0x51   : > { %s492_s8 = sshll.u32 %s198_s7, 4  ;;  %s199_s9 = scalar_lea.sflag [#allocation5], %s198_s7 }
  0x52   : > { %s202_s27 = scalar_lea.vmem [#allocation4], %s492_s8 }
  0x53   : > { %670 = dma.done.wait (%p915_p8), %s199_s9, 256  }
  0x54   : > { %672 = vsyncadd (%p915_p8), %s199_s9, 4294967040  ;;  %v701_v0 = vmov 0.0|0.0   ;;  %vm702_vm0 = vmmov 0   ;;  %v703_v1 = vmov 0.0   ;;  %v249_v2 = vld [vmem:[%s202_s27] sm:$0xff]  ;;  %v250_v3 = vld [vmem:[%s202_s27 + $0x8] sm:$0xff] }
  0x55   : > { %509 = vmatprep.subr.bf16.mxu0 %v701_v0  ;;  %506 = vmatprep.mubr.msk.f32.mxu0 %vm702_vm0, %v703_v1  ;;  %v510_v4 = vpack.c.bf16 %v250_v3, %v249_v2  ;;  %v248_v5 = vld [vmem:[#allocation2] sm:$0x3]  ;;  %vm251_vm1 = vcmask 130048   ;;  %p234_p3 = scmp.lt.s32.totalorder %s687_s15, 15  ;;  %vm326_vm2 = vcmask 1041408  }
  0x57   : > { %511 = vmatpush3.bf16.msra.mxu0 %v510_v4  ;;  %s924_s15 = smov (!%p234_p3, %s687_s15), 15 }
  0x58   : > { %s493_s19 = sshll.u32 %s924_s15, 1 }
  0x59   : > { %s240_s22 = scalar_lea.vmem %s899_s2, %s493_s19  ;;  %s247_s30 = scalar_lea.vmem %s900_s3, %s493_s19 }
  0x5a   : > { %507 = vmatmul.mubr.msk.f32.vlgmr.msra.gmra.mrb[0].mxu0 %vm251_vm1, %v248_v5 }
 0x12d   : > { %v321_v6 = vpop.f32.mrb[0].mxu0 }
 0x12e   : > { %325 = vst [vmem:[%s240_s22] sm:$0x3] %v321_v6  ;;  %v327_v7 = vsel %vm326_vm2, %v321_v6, 0.0  ;;  %v335_v8 = vmul.f32 %v321_v6, %v321_v6  ;;  %v508_v9 = vpop.f32.mrb[1].mxu0 }
 0x12f   : > { %v328_v10 = vrot.slane %v327_v7, 4 }
 0x130   : > { %v336_v11 = vsel %vm326_vm2, %v335_v8, 0.0 }
 0x131   : > { %v329_v12 = vadd.f32 %v328_v10, %v327_v7  ;;  %v337_v13 = vrot.slane %v336_v11, 4 }
 0x133   : > { %v330_v14 = vrot.slane %v329_v12, 2  ;;  %v338_v15 = vadd.f32 %v337_v13, %v336_v11 }
 0x135   : > { %v331_v16 = vadd.f32 %v330_v14, %v329_v12  ;;  %v339_v17 = vrot.slane %v338_v15, 2 }
 0x137   : > { %v332_v18 = vrot.slane %v331_v16, 1  ;;  %v340_v19 = vadd.f32 %v339_v17, %v338_v15 }
 0x139   : > { %v333_v20 = vadd.f32 %v332_v18, %v331_v16  ;;  %v341_v21 = vrot.slane %v340_v19, 1 }
 0x13b   : > { %334 = vst [vmem:[%s247_s30] sm:$0x1] %v333_v20  ;;  %v342_v22 = vadd.f32 %v341_v21, %v340_v19 }
 0x13d   : > { %343 = vst [vmem:[%s247_s30 + $0x1] sm:$0x1] %v342_v22 }
 0x13e PF: > { %s18_s17 = sadd.s32 1, %s695_s17   ;;  %s916_s12 = smov %s679_s13 }
 0x13f   : > { %p15_p4 = scmp.ge.s32.totalorder %s18_s17, 18   ;;  %s917_s13 = smov %s683_s14 }
 0x140   : > { %s918_s14 = smov %s858_s6  ;;  %s919_s15 = smov %s691_s16 }
 0x141   : > { %s920_s16 = smov %s922_s11  ;;  %17 = sbr.rel (!%p15_p4) target bundleno = 5 (0x5), region = 86 }
 0x148   :  { %389 = vsyncpa [#allocation3], 1 }
 0x149   :  { %391 = vsyncpa [#allocation3 + $0x1], 1 }
 0x14a   :  { %392 = vsyncpa [#allocation5], 1 }
 0x14b   :  { %394 = vsyncpa [#allocation5 + $0x1], 1 }

// kernel: _lambda_.10
= control target key start
LH: loop header
LB: loop body
LE: loop exit
PB: predicated region body
PF: predicated region fallthrough
CT: control target
= control target key end

     0   :  { %s104_s0 = inlined_call_operand.vmem [shape: f32[32,128], index: 0, kind: input, shape index: {}]   ;;  %s105_s1 = inlined_call_operand.vmem [shape: f32[1,128], index: 1, kind: input, shape index: {}]   ;;  %s106_s2 = inlined_call_operand.vmem [shape: f32[1,128], index: 2, kind: input, shape index: {}]   ;;  %s107_s3 = inlined_call_operand.vmem [shape: f32[32,128], index: 3, kind: output, shape index: {}]  }
   0x1   :  { %v14_v0 = vld [vmem:[%s104_s0] sm:$0xff]  ;;  %v15_v4 = vld [vmem:[%s104_s0 + $0x8] sm:$0xff]  ;;  %v16_v5 = vld [vmem:[%s104_s0 + $0x10] sm:$0xff] }
   0x2   :  { %v52_v1 = vld [vmem:[%s105_s1] ss:$0 sm:$0xff]  ;;  %v17_v6 = vld [vmem:[%s104_s0 + $0x18] sm:$0xff] }
   0x3   :  { %v53_v2 = vld [vmem:[%s106_s2] ss:$0 sm:$0xff]  ;;  %v25_v3 = vmul.f32 %v52_v1, %v14_v0  ;;  %v26_v7 = vmul.f32 %v52_v1, %v15_v4  ;;  %v27_v8 = vmul.f32 %v52_v1, %v16_v5  ;;  %v28_v9 = vmul.f32 %v52_v1, %v17_v6 }
   0x5   :  { %v36_v10 = vadd.f32 %v53_v2, %v25_v3  ;;  %v37_v11 = vadd.f32 %v53_v2, %v26_v7  ;;  %v38_v12 = vadd.f32 %v53_v2, %v27_v8  ;;  %v39_v13 = vadd.f32 %v53_v2, %v28_v9 }
   0x7   :  { %v40_v14 = vmax.f32 %v36_v10, 0.0  ;;  %v41_v15 = vmax.f32 %v37_v11, 0.0  ;;  %v42_v16 = vmax.f32 %v38_v12, 0.0  ;;  %v43_v17 = vmax.f32 %v39_v13, 0.0 }
   0x9   :  { %44 = vst [vmem:[%s107_s3] sm:$0xff] %v40_v14  ;;  %45 = vst [vmem:[%s107_s3 + $0x8] sm:$0xff] %v41_v15 }
   0xa   :  { %46 = vst [vmem:[%s107_s3 + $0x10] sm:$0xff] %v42_v16  ;;  %47 = vst [vmem:[%s107_s3 + $0x18] sm:$0xff] %v43_v17 }

// kernel: _lambda_.11
= control target key start
LH: loop header
LB: loop body
LE: loop exit
PB: predicated region body
PF: predicated region fallthrough
CT: control target
= control target key end

     0   :  { %9 = vsyncpa [#allocation3], 0  ;;  %s1031_s0 = inlined_call_operand.vmem [shape: f32[4,32,256], index: 0, kind: input, shape index: {}]   ;;  %s1032_s1 = inlined_call_operand.hbm [shape: f32[4,256,128], index: 1, kind: input, shape index: {}]   ;;  %s1033_s2 = inlined_call_operand.vmem [shape: f32[4,32,128], index: 2, kind: output, shape index: {0}]   ;;  %s1034_s3 = inlined_call_operand.vmem [shape: f32[4,1,2,128], index: 3, kind: output, shape index: {1}]  }
   0x1   :  { %11 = vsyncpa [#allocation3 + $0x1], 0  ;;  %s852_s12 = smov 0   ;;  %s854_s13 = smov 0  }
   0x2   :  { %s856_s14 = smov 0   ;;  %s858_s15 = smov 0  }
   0x3   :  { %s860_s16 = smov 0   ;;  %s862_s17 = smov 0  }
   0x4 LB: > { %s579_s18 = sadd.s32 4294967295, %s827_s17   ;;  %s29_s19 = sadd.s32 1, %s823_s16  ;;  %s827_s17 = sphi %s862_s17, %s17_s17   ;;  %s823_s16 = sphi %s860_s16, %s1042_s16   ;;  %s819_s15 = sphi %s858_s15, %s1041_s15   ;;  %s815_s14 = sphi %s856_s14, %s1040_s14   ;;  %s811_s13 = sphi %s854_s13, %s1039_s13   ;;  %s807_s12 = sphi %s852_s12, %s1038_s12  }
   0x5   : > { %p31_p0 = scmp.ge.s32.totalorder %s29_s19, 4  ;;  %s64_s20 = sadd.s32 1, %s815_s14 }
   0x6   : > { %p71_p1 = scmp.ne.s32.totalorder %s815_s14, %s811_s13  ;;  %p72_p2 = scmp.eq.s32.totalorder %s827_s17, 0 }
   0x7   : > { %s1044_s19 = smov (%p31_p0, %s29_s19), 0  ;;  %p77_p4 = scmp.ne.s32.totalorder %s811_s13, %s807_s12 }
   0x8   : > { %p888_p3 = por %p72_p2, %p71_p1  ;;  %s61_s22 = ssub.s32 %s823_s16, %s1044_s19 }
   0x9   : > { %p78_p5 = scmp.eq.s32.totalorder %s579_s18, 0  ;;  %p62_p6 = scmp.eq.s32.totalorder %s61_s22, 0 }
   0xa   : > { %p696_p8 = scmp.lt.s32.totalorder %s827_s17, 4  ;;  %s171_s25 = sand.u32 1, %s815_s14  }
   0xb   : > { %p895_p7 = por %p78_p5, %p77_p4  ;;  %s595_s26 = sshll.u32 %s823_s16, 12 }
   0xc   : > { %s901_s24 = scalar_select %p62_p6, %s815_s14, %s64_s20  }
   0xd   : > { %s583_s27 = sshll.u32 %s171_s25, 8  ;;  %s908_s30 = scalar_lea.hbm %s1032_s1, %s595_s26 }
   0xe   : > { %s175_s4 = scalar_lea.vmem [#allocation2], %s583_s27  ;;  %p912_p9 = pnand %p696_p8, %p888_p3 }
   0xf   : > { %s182_s5 = sshll.u32 %s175_s4, 4  ;;  %s918_s7 = scalar_lea.sflag [#allocation3], %s171_s25  ;;  %s916_s5 = int_to_ptr.vmem [resolvable:$true] %s182_s5 }
  0x10   : > { %s747_s8 = scalar_lea.hbm %s908_s30, 4096  ;;  %p749_p11 = pneg %p912_p9 }
  0x11   : > { %p748_p10 = scmp.ne.s32.totalorder %s908_s30, %s747_s8  ;;  %s752_s11 = scalar_lea.hbm %s1032_s1, 16384 }
  0x12   : > { %p753_p0 = scmp.lt.u32.totalorder %s908_s30, %s1032_s1  ;;  %p754_p1 = scmp.lt.u32.totalorder %s752_s11, %s747_s8 }
  0x13   : > { %p750_p12 = pnand %p749_p11, %p748_p10  ;;  %p756_p3 = scmp.lt.u32.totalorder %s747_s8, %s908_s30 }
  0x14   : > { %p755_p2 = por %p754_p1, %p753_p0 }
  0x15   : > { %p751_p13 = pneg %p750_p12 }
  0x16   : > { %p757_p4 = por %p756_p3, %p755_p2 }
  0x18   : > { %p758_p5 = pnand %p757_p4, %p751_p13 }
  0x1a   : > { %761 = shalt.err (!%p758_p5)
}
  0x1b   : > { %s762_s20 = scalar_lea.vmem %s916_s5, 4096  ;;  %s829_s21 = smov [#allocation2]  }
  0x1c   : > { %p763_p6 = scmp.ne.s32.totalorder %s916_s5, %s762_s20  ;;  %s767_s22 = sshll.u32 %s829_s21, 4  ;;  %s768_s22 = int_to_ptr.vmem [resolvable:$false] %s767_s22 }
  0x1d   : > { %s769_s25 = scalar_lea.vmem %s768_s22, 8192  ;;  %p770_p12 = scmp.lt.s32.totalorder %s916_s5, %s768_s22 }
  0x1e   : > { %p765_p8 = pnand %p763_p6, %p749_p11  ;;  %p771_p0 = scmp.lt.s32.totalorder %s769_s25, %s762_s20 }
  0x20   : > { %p766_p10 = pneg %p765_p8  ;;  %p772_p1 = por %p771_p0, %p770_p12 }
  0x22   : > { %p773_p2 = pnand %p772_p1, %p766_p10 }
  0x24   : > { %776 = shalt.err (!%p773_p2)
}
  0x25   : > { %s830_s26 = smov 128   ;;  %s831_s27 = smov 8  }
  0x26   : > { %695 = dma.hbm_to_vmem [thread:$0]  (!%p912_p9), %s908_s30, 4096, %s916_s5, %s918_s7, %s830_s26, %s830_s26, %s831_s27  }
  0x27   : > { %p586_p11 = scmp.ge.s32.totalorder %s827_s17, 1  ;;  %p190_p13 = scmp.lt.s32.totalorder %s827_s17, 5 }
  0x29   : > { %p191_p3 = pnand %p586_p11, %p190_p13 }
  0x2a   : > { %s196_s28 = sand.u32 (!%p191_p3), 1, %s811_s13  }
  0x2b   : > { %194 = sbr.rel (%p191_p3) target bundleno = 326 (0x146), region = 28  ;;  %s587_s29 = sshll.u32 (!%p191_p3), %s196_s28, 8 }
  0x2c   : > { %s197_s4 = scalar_lea.sflag (!%p191_p3), [#allocation3], %s196_s28  ;;  %s949_s8 = scalar_lea.vmem (!%p191_p3), [#allocation2], %s587_s29 }
  0x32   : > { %802 = dma.done.wait (%p895_p7), %s197_s4, 4096  }
  0x33   : > { %804 = vsyncadd (%p895_p7), %s197_s4, 4294963200  ;;  %p245_p9 = scmp.lt.s32.totalorder %s819_s15, 3  ;;  %v296_v0 = vld [vmem:[%s949_s8 + $0x80] sm:$0xff]  ;;  %v297_v1 = vld [vmem:[%s949_s8 + $0x88] sm:$0xff] }
  0x34   : > { %v280_v2 = vld [vmem:[%s949_s8] sm:$0xff]  ;;  %v642_v3 = vpack.c.bf16 %v297_v1, %v296_v0  ;;  %v281_v4 = vld [vmem:[%s949_s8 + $0x8] sm:$0xff]  ;;  %v298_v5 = vld [vmem:[%s949_s8 + $0x90] sm:$0xff] }
  0x35   : > { %s1046_s15 = smov (!%p245_p9, %s819_s15), 3  ;;  %v299_v6 = vld [vmem:[%s949_s8 + $0x98] sm:$0xff]  ;;  %v644_v7 = vpack.c.bf16 %v281_v4, %v280_v2  ;;  %v282_v9 = vld [vmem:[%s949_s8 + $0x10] sm:$0xff]  ;;  %v300_v11 = vld [vmem:[%s949_s8 + $0xa0] sm:$0xff] }
  0x36   : > { %v646_v8 = vpack.c.bf16 %v299_v6, %v298_v5  ;;  %v283_v10 = vld [vmem:[%s949_s8 + $0x18] sm:$0xff]  ;;  %643 = vmatprep.subr.bf16.mxu0 %v642_v3  ;;  %674 = vmatprep.subr.bf16.mxu1 %v642_v3  ;;  %v301_v12 = vld [vmem:[%s949_s8 + $0xa8] sm:$0xff]  ;;  %s596_s23 = sshll.u32 %s1046_s15, 6  ;;  %v284_v15 = vld [vmem:[%s949_s8 + $0x20] sm:$0xff]  ;;  %s597_s7 = sshll.u32 %s1046_s15, 5 }
  0x37   : > { %645 = vmatpush3.bf16.msra.mxu0 %v644_v7  ;;  %682 = vmatpush3.bf16.msra.mxu1 %v644_v7  ;;  %v648_v13 = vpack.c.bf16 %v283_v10, %v282_v9  ;;  %v650_v14 = vpack.c.bf16 %v301_v12, %v300_v11  ;;  %v285_v16 = vld [vmem:[%s949_s8 + $0x28] sm:$0xff]  ;;  %v302_v17 = vld [vmem:[%s949_s8 + $0xb0] sm:$0xff]  ;;  %v303_v18 = vld [vmem:[%s949_s8 + $0xb8] sm:$0xff]  ;;  %s977_s6 = scalar_lea.vmem %s1031_s0, %s596_s23  ;;  %s263_s11 = scalar_lea.vmem %s1033_s2, %s597_s7 }
  0x38   : > { %647 = vmatprep.subr.bf16.mxu0 %v646_v8  ;;  %675 = vmatprep.subr.bf16.mxu1 %v646_v8  ;;  %v652_v19 = vpack.c.bf16 %v285_v16, %v284_v15  ;;  %v654_v20 = vpack.c.bf16 %v303_v18, %v302_v17  ;;  %v286_v21 = vld [vmem:[%s949_s8 + $0x30] sm:$0xff]  ;;  %v287_v22 = vld [vmem:[%s949_s8 + $0x38] sm:$0xff]  ;;  %v304_v23 = vld [vmem:[%s949_s8 + $0xc0] sm:$0xff]  ;;  %s592_s12 = sshll.u32 %s1046_s15, 1 }
  0x39   : > { %v305_v24 = vld [vmem:[%s949_s8 + $0xc8] sm:$0xff]  ;;  %v656_v27 = vpack.c.bf16 %v287_v22, %v286_v21  ;;  %v288_v29 = vld [vmem:[%s949_s8 + $0x40] sm:$0xff]  ;;  %v306_v31 = vld [vmem:[%s949_s8 + $0xd0] sm:$0xff]  ;;  %s271_s21 = scalar_lea.vmem %s1034_s3, %s592_s12 }
  0x3a   : > { %v273_v25 = vld [vmem:[%s977_s6 + $0x8] sm:$0xff]  ;;  %v658_v28 = vpack.c.bf16 %v305_v24, %v304_v23  ;;  %v307_v32 = vld [vmem:[%s949_s8 + $0xd8] sm:$0xff]  ;;  %v290_v35 = vld [vmem:[%s949_s8 + $0x50] sm:$0xff] }
  0x3b   : > { %649 = vmatpush3.bf16.msra.mxu0 %v648_v13  ;;  %683 = vmatpush3.bf16.msra.mxu1 %v648_v13  ;;  %v277_v26 = vld [vmem:[%s977_s6 + $0x28] sm:$0xff]  ;;  %v662_v34 = vpack.c.bf16 %v307_v32, %v306_v31  ;;  %v291_v36 = vld [vmem:[%s949_s8 + $0x58] sm:$0xff]  ;;  %v308_v37 = vld [vmem:[%s949_s8 + $0xe0] sm:$0xff] }
  0x3c   : > { %651 = vmatprep.subr.bf16.mxu0 %v650_v14  ;;  %676 = vmatprep.subr.bf16.mxu1 %v650_v14  ;;  %v289_v30 = vld [vmem:[%s949_s8 + $0x48] sm:$0xff]  ;;  %v664_v39 = vpack.c.bf16 %v291_v36, %v290_v35  ;;  %v292_v41 = vld [vmem:[%s949_s8 + $0x60] sm:$0xff]  ;;  %v310_v43 = vld [vmem:[%s949_s8 + $0xf0] sm:$0xff] }
  0x3d   : > { %376 = vmatprep.mubr.f32.mxu0 %v273_v25  ;;  %386 = vmatprep.mubr.f32.mxu1 %v277_v26  ;;  %v660_v33 = vpack.c.bf16 %v289_v30, %v288_v29  ;;  %v309_v38 = vld [vmem:[%s949_s8 + $0xe8] sm:$0xff]  ;;  %v311_v44 = vld [vmem:[%s949_s8 + $0xf8] sm:$0xff]  ;;  %v294_v47 = vld [vmem:[%s949_s8 + $0x70] sm:$0xff] }
  0x3e   : > { %v666_v40 = vpack.c.bf16 %v309_v38, %v308_v37  ;;  %v293_v42 = vld [vmem:[%s949_s8 + $0x68] sm:$0xff]  ;;  %v670_v46 = vpack.c.bf16 %v311_v44, %v310_v43  ;;  %v295_v48 = vld [vmem:[%s949_s8 + $0x78] sm:$0xff]  ;;  %v272_v50 = vld [vmem:[%s977_s6] sm:$0xff] }
  0x3f   : > { %653 = vmatpush3.bf16.msra.mxu0 %v652_v19  ;;  %684 = vmatpush3.bf16.msra.mxu1 %v652_v19  ;;  %v668_v45 = vpack.c.bf16 %v293_v42, %v292_v41  ;;  %v672_v49 = vpack.c.bf16 %v295_v48, %v294_v47  ;;  %v276_v51 = vld [vmem:[%s977_s6 + $0x20] sm:$0xff]  ;;  %v275_v52 = vld [vmem:[%s977_s6 + $0x18] sm:$0xff]  ;;  %v274_v54 = vld [vmem:[%s977_s6 + $0x10] sm:$0xff] }
  0x40   : > { %655 = vmatprep.subr.bf16.mxu0 %v654_v20  ;;  %677 = vmatprep.subr.bf16.mxu1 %v654_v20  ;;  %v279_v53 = vld [vmem:[%s977_s6 + $0x38] sm:$0xff]  ;;  %v278_v55 = vld [vmem:[%s977_s6 + $0x30] sm:$0xff] }
  0x43   : > { %657 = vmatpush3.bf16.msra.mxu0 %v656_v27  ;;  %685 = vmatpush3.bf16.msra.mxu1 %v656_v27 }
  0x44   : > { %659 = vmatprep.subr.bf16.mxu0 %v658_v28  ;;  %678 = vmatprep.subr.bf16.mxu1 %v658_v28 }
  0x47   : > { %661 = vmatpush3.bf16.msra.mxu0 %v660_v33  ;;  %686 = vmatpush3.bf16.msra.mxu1 %v660_v33 }
  0x48   : > { %663 = vmatprep.subr.bf16.mxu0 %v662_v34  ;;  %679 = vmatprep.subr.bf16.mxu1 %v662_v34 }
  0x4b   : > { %665 = vmatpush3.bf16.msra.mxu0 %v664_v39  ;;  %687 = vmatpush3.bf16.msra.mxu1 %v664_v39 }
  0x4c   : > { %667 = vmatprep.subr.bf16.mxu0 %v666_v40  ;;  %680 = vmatprep.subr.bf16.mxu1 %v666_v40 }
  0x4f   : > { %669 = vmatpush3.bf16.msra.mxu0 %v668_v45  ;;  %688 = vmatpush3.bf16.msra.mxu1 %v668_v45 }
  0x50   : > { %671 = vmatprep.subr.bf16.mxu0 %v670_v46  ;;  %681 = vmatprep.subr.bf16.mxu1 %v670_v46 }
  0x53   : > { %673 = vmatpush3.bf16.msra.mxu0 %v672_v49  ;;  %689 = vmatpush3.bf16.msra.mxu1 %v672_v49 }
  0x56   : > { %377 = vmatmul.mubr.f32.vlgmr.msra.gmra.mrb[0].mxu0 %v272_v50  ;;  %387 = vmatmul.mubr.f32.vlgmr.msra.gmra.mrb[0].mxu1 %v276_v51 }
  0x57   : > { %381 = vmatprep.mubr.f32.mxu0 %v275_v52  ;;  %391 = vmatprep.mubr.f32.mxu1 %v279_v53 }
  0x5a   : > { %382 = vmatmul.mubr.f32.gmra.mrb[2].mxu0 %v274_v54  ;;  %392 = vmatmul.mubr.f32.gmra.mrb[2].mxu1 %v278_v55 }
 0x129   : > { %v630_v56 = vpop.f32.mrb[0].mxu0  ;;  %v636_v57 = vpop.f32.mrb[0].mxu1 }
 0x12a   : > { %v631_v58 = vpop.f32.mrb[1].mxu0  ;;  %v637_v59 = vpop.f32.mrb[1].mxu1 }
 0x12b   : > { %v632_v60 = vadd.f32 %v631_v58, %v630_v56  ;;  %v638_v61 = vadd.f32 %v637_v59, %v636_v57 }
 0x12d   : > { %397 = vst [vmem:[%s263_s11] sm:$0xff] %v632_v60  ;;  %v633_v62 = vpop.f32.mrb[2].mxu0  ;;  %399 = vst [vmem:[%s263_s11 + $0x10] sm:$0xff] %v638_v61  ;;  %v639_v63 = vpop.f32.mrb[2].mxu1  ;;  %v411_v4 = vmul.f32 %v632_v60, %v632_v60  ;;  %v413_v7 = vmul.f32 %v638_v61, %v638_v61 }
 0x12e   : > { %v634_v0 = vpop.f32.mrb[3].mxu0  ;;  %v640_v1 = vpop.f32.mrb[3].mxu1 }
 0x12f   : > { %v635_v2 = vadd.f32 %v634_v0, %v633_v62  ;;  %v641_v3 = vadd.f32 %v640_v1, %v639_v63 }
 0x131   : > { %398 = vst [vmem:[%s263_s11 + $0x8] sm:$0xff] %v635_v2  ;;  %v401_v5 = vadd.f32 %v635_v2, %v632_v60  ;;  %v412_v6 = vmul.f32 %v635_v2, %v635_v2  ;;  %400 = vst [vmem:[%s263_s11 + $0x18] sm:$0xff] %v641_v3  ;;  %v414_v10 = vmul.f32 %v641_v3, %v641_v3 }
 0x133   : > { %v415_v8 = vadd.f32 %v412_v6, %v411_v4  ;;  %v402_v9 = vadd.f32 %v638_v61, %v401_v5 }
 0x135   : > { %v403_v11 = vadd.f32 %v641_v3, %v402_v9  ;;  %v416_v12 = vadd.f32 %v415_v8, %v413_v7 }
 0x137   : > { %v404_v13 = vrot.slane %v403_v11, 4  ;;  %v417_v14 = vadd.f32 %v416_v12, %v414_v10 }
 0x139   : > { %v405_v15 = vadd.f32 %v404_v13, %v403_v11  ;;  %v418_v16 = vrot.slane %v417_v14, 4 }
 0x13b   : > { %v406_v17 = vrot.slane %v405_v15, 2  ;;  %v419_v18 = vadd.f32 %v418_v16, %v417_v14 }
 0x13d   : > { %v407_v19 = vadd.f32 %v406_v17, %v405_v15  ;;  %v420_v20 = vrot.slane %v419_v18, 2 }
 0x13f   : > { %v408_v21 = vrot.slane %v407_v19, 1  ;;  %v421_v22 = vadd.f32 %v420_v20, %v419_v18 }
 0x141   : > { %v409_v23 = vadd.f32 %v408_v21, %v407_v19  ;;  %v422_v24 = vrot.slane %v421_v22, 1 }
 0x143   : > { %410 = vst [vmem:[%s271_s21] sm:$0x1] %v409_v23  ;;  %v423_v25 = vadd.f32 %v422_v24, %v421_v22 }
 0x145   : > { %424 = vst [vmem:[%s271_s21 + $0x1] sm:$0x1] %v423_v25 }
 0x146 PF: > { %s17_s17 = sadd.s32 1, %s827_s17   ;;  %s1038_s12 = smov %s811_s13 }
 0x147   : > { %p14_p7 = scmp.ge.s32.totalorder %s17_s17, 6   ;;  %s1039_s13 = smov %s815_s14 }
 0x148   : > { %s1040_s14 = smov %s901_s24  ;;  %s1041_s15 = smov %s823_s16 }
 0x149   : > { %s1042_s16 = smov %s1044_s19  ;;  %16 = sbr.rel (!%p14_p7) target bundleno = 4 (0x4), region = 83 }
 0x150   :  { %475 = vsyncpa [#allocation3], 1 }
 0x151   :  { %477 = vsyncpa [#allocation3 + $0x1], 1 }

// kernel: _lambda_.12
= control target key start
LH: loop header
LB: loop body
LE: loop exit
PB: predicated region body
PF: predicated region fallthrough
CT: control target
= control target key end

     0   :  { %s254_s0 = inlined_call_operand.vmem [shape: f32[128,128], index: 0, kind: input, shape index: {}]   ;;  %s255_s1 = inlined_call_operand.vmem [shape: f32[1,128], index: 1, kind: input, shape index: {}]   ;;  %s256_s2 = inlined_call_operand.vmem [shape: f32[1,128], index: 2, kind: input, shape index: {}]   ;;  %s257_s3 = inlined_call_operand.vmem [shape: f32[128,128], index: 3, kind: output, shape index: {}]  }
   0x1   :  { %v14_v0 = vld [vmem:[%s254_s0] sm:$0xff]  ;;  %v15_v4 = vld [vmem:[%s254_s0 + $0x8] sm:$0xff]  ;;  %v16_v5 = vld [vmem:[%s254_s0 + $0x10] sm:$0xff] }
   0x2   :  { %v112_v1 = vld [vmem:[%s255_s1] ss:$0 sm:$0xff]  ;;  %v17_v6 = vld [vmem:[%s254_s0 + $0x18] sm:$0xff]  ;;  %v19_v11 = vld [vmem:[%s254_s0 + $0x28] sm:$0xff] }
   0x3   :  { %v143_v2 = vld [vmem:[%s256_s2] ss:$0 sm:$0xff]  ;;  %v37_v3 = vmul.f32 %v112_v1, %v14_v0  ;;  %v38_v7 = vmul.f32 %v112_v1, %v15_v4  ;;  %v39_v8 = vmul.f32 %v112_v1, %v16_v5  ;;  %v40_v9 = vmul.f32 %v112_v1, %v17_v6  ;;  %v20_v12 = vld [vmem:[%s254_s0 + $0x30] sm:$0xff]  ;;  %v21_v17 = vld [vmem:[%s254_s0 + $0x38] sm:$0xff] }
   0x4   :  { %v18_v10 = vld [vmem:[%s254_s0 + $0x20] sm:$0xff]  ;;  %v42_v15 = vmul.f32 %v112_v1, %v19_v11  ;;  %v43_v16 = vmul.f32 %v112_v1, %v20_v12  ;;  %v44_v21 = vmul.f32 %v112_v1, %v21_v17  ;;  %v23_v27 = vld [vmem:[%s254_s0 + $0x48] sm:$0xff]  ;;  %v24_v28 = vld [vmem:[%s254_s0 + $0x50] sm:$0xff] }
   0x5   :  { %v60_v13 = vadd.f32 %v143_v2, %v37_v3  ;;  %v41_v14 = vmul.f32 %v112_v1, %v18_v10  ;;  %v61_v18 = vadd.f32 %v143_v2, %v38_v7  ;;  %v62_v19 = vadd.f32 %v143_v2, %v39_v8  ;;  %v22_v22 = vld [vmem:[%s254_s0 + $0x40] sm:$0xff]  ;;  %v25_v29 = vld [vmem:[%s254_s0 + $0x58] sm:$0xff]  ;;  %v27_v35 = vld [vmem:[%s254_s0 + $0x68] sm:$0xff] }
   0x6   :  { %v63_v20 = vadd.f32 %v143_v2, %v40_v9  ;;  %v65_v25 = vadd.f32 %v143_v2, %v42_v15  ;;  %v66_v26 = vadd.f32 %v143_v2, %v43_v16  ;;  %v67_v33 = vadd.f32 %v143_v2, %v44_v21  ;;  %v26_v34 = vld [vmem:[%s254_s0 + $0x60] sm:$0xff]  ;;  %v28_v36 = vld [vmem:[%s254_s0 + $0x70] sm:$0xff]  ;;  %v29_v41 = vld [vmem:[%s254_s0 + $0x78] sm:$0xff] }
   0x7   :  { %v76_v23 = vmax.f32 %v60_v13, 0.0  ;;  %v64_v24 = vadd.f32 %v143_v2, %v41_v14  ;;  %v77_v30 = vmax.f32 %v61_v18, 0.0  ;;  %v78_v31 = vmax.f32 %v62_v19, 0.0 }
   0x8   :  { %v79_v32 = vmax.f32 %v63_v20, 0.0  ;;  %v81_v38 = vmax.f32 %v65_v25, 0.0  ;;  %v82_v39 = vmax.f32 %v66_v26, 0.0  ;;  %v45_v40 = vmul.f32 %v112_v1, %v22_v22 }
   0x9   :  { %92 = vst [vmem:[%s257_s3] sm:$0xff] %v76_v23  ;;  %v80_v37 = vmax.f32 %v64_v24, 0.0  ;;  %93 = vst [vmem:[%s257_s3 + $0x8] sm:$0xff] %v77_v30  ;;  %v83_v42 = vmax.f32 %v67_v33, 0.0  ;;  %v46_v43 = vmul.f32 %v112_v1, %v23_v27  ;;  %v47_v44 = vmul.f32 %v112_v1, %v24_v28 }
   0xa   :  { %94 = vst [vmem:[%s257_s3 + $0x10] sm:$0xff] %v78_v31  ;;  %95 = vst [vmem:[%s257_s3 + $0x18] sm:$0xff] %v79_v32  ;;  %v48_v45 = vmul.f32 %v112_v1, %v25_v29  ;;  %v68_v46 = vadd.f32 %v143_v2, %v45_v40  ;;  %v49_v47 = vmul.f32 %v112_v1, %v26_v34 }
   0xb   :  { %96 = vst [vmem:[%s257_s3 + $0x20] sm:$0xff] %v80_v37  ;;  %97 = vst [vmem:[%s257_s3 + $0x28] sm:$0xff] %v81_v38  ;;  %v50_v48 = vmul.f32 %v112_v1, %v27_v35  ;;  %v51_v49 = vmul.f32 %v112_v1, %v28_v36  ;;  %v69_v50 = vadd.f32 %v143_v2, %v46_v43 }
   0xc   :  { %98 = vst [vmem:[%s257_s3 + $0x30] sm:$0xff] %v82_v39  ;;  %99 = vst [vmem:[%s257_s3 + $0x38] sm:$0xff] %v83_v42  ;;  %v70_v51 = vadd.f32 %v143_v2, %v47_v44  ;;  %v71_v52 = vadd.f32 %v143_v2, %v48_v45  ;;  %v52_v53 = vmul.f32 %v112_v1, %v29_v41  ;;  %v84_v54 = vmax.f32 %v68_v46, 0.0 }
   0xd   :  { %v72_v55 = vadd.f32 %v143_v2, %v49_v47  ;;  %v73_v56 = vadd.f32 %v143_v2, %v50_v48  ;;  %v74_v57 = vadd.f32 %v143_v2, %v51_v49  ;;  %v85_v58 = vmax.f32 %v69_v50, 0.0 }
   0xe   :  { %v86_v59 = vmax.f32 %v70_v51, 0.0  ;;  %v87_v60 = vmax.f32 %v71_v52, 0.0  ;;  %v75_v61 = vadd.f32 %v143_v2, %v52_v53  ;;  %100 = vst [vmem:[%s257_s3 + $0x40] sm:$0xff] %v84_v54 }
   0xf   :  { %v88_v62 = vmax.f32 %v72_v55, 0.0  ;;  %v89_v63 = vmax.f32 %v73_v56, 0.0  ;;  %v90_v0 = vmax.f32 %v74_v57, 0.0  ;;  %101 = vst [vmem:[%s257_s3 + $0x48] sm:$0xff] %v85_v58 }
  0x10   :  { %102 = vst [vmem:[%s257_s3 + $0x50] sm:$0xff] %v86_v59  ;;  %103 = vst [vmem:[%s257_s3 + $0x58] sm:$0xff] %v87_v60  ;;  %v91_v1 = vmax.f32 %v75_v61, 0.0 }
  0x11   :  { %104 = vst [vmem:[%s257_s3 + $0x60] sm:$0xff] %v88_v62  ;;  %105 = vst [vmem:[%s257_s3 + $0x68] sm:$0xff] %v89_v63 }
  0x12   :  { %106 = vst [vmem:[%s257_s3 + $0x70] sm:$0xff] %v90_v0  ;;  %107 = vst [vmem:[%s257_s3 + $0x78] sm:$0xff] %v91_v1 }

// kernel: _lambda_.13
= control target key start
LH: loop header
LB: loop body
LE: loop exit
PB: predicated region body
PF: predicated region fallthrough
CT: control target
= control target key end

     0   :  { %s863_s12 = smov 0   ;;  %s865_s13 = smov 0   ;;  %s965_s0 = inlined_call_operand.vmem [shape: f32[4,128,128], index: 0, kind: input, shape index: {}]   ;;  %s966_s1 = inlined_call_operand.vmem [shape: f32[4,128,128], index: 1, kind: input, shape index: {}]   ;;  %s967_s2 = inlined_call_operand.vmem [shape: f32[4,128,128], index: 2, kind: output, shape index: {0}]   ;;  %s968_s3 = inlined_call_operand.vmem [shape: f32[4,1,2,128], index: 3, kind: output, shape index: {1}]  }
   0x1   :  { %s867_s14 = smov 0  }
   0x2 LB: > { %s26_s15 = sadd.s32 1, %s837_s13  ;;  %p646_p0 = scmp.ge.s32.totalorder %s841_s14, 1  ;;  %s841_s14 = sphi %s867_s14, %s14_s14   ;;  %s837_s13 = sphi %s865_s13, %s970_s13   ;;  %s833_s12 = sphi %s863_s12, %s969_s12  }
   0x3   : > { %p28_p1 = scmp.ge.s32.totalorder %s26_s15, 4  ;;  %p173_p2 = scmp.lt.s32.totalorder %s841_s14, 5 }
   0x5   : > { %s972_s15 = smov (%p28_p1, %s26_s15), 0  ;;  %p174_p3 = pnand %p646_p0, %p173_p2 }
   0x6   : > { %p218_p4 = scmp.lt.s32.totalorder (!%p174_p3), %s833_s12, 3 }
   0x7   : > { %177 = sbr.rel (%p174_p3) target bundleno = 312 (0x138), region = 28 }
   0xe   : > { %s974_s12 = smov (!%p218_p4, %s833_s12), 3 }
   0xf   : > { %s884_s16 = sshll.u32 %s974_s12, 7  ;;  %s653_s26 = sshll.u32 %s974_s12, 1 }
  0x10   : > { %s890_s19 = scalar_lea.vmem %s966_s1, %s884_s16  ;;  %s902_s22 = scalar_lea.vmem %s965_s0, %s884_s16 }
  0x11   : > { %v265_v0 = vld [vmem:[%s890_s19] sm:$0xff]  ;;  %v266_v1 = vld [vmem:[%s890_s19 + $0x8] sm:$0xff]  ;;  %v267_v2 = vld [vmem:[%s890_s19 + $0x10] sm:$0xff]  ;;  %s934_s25 = scalar_lea.vmem %s967_s2, %s884_s16  ;;  %s248_s29 = scalar_lea.vmem %s968_s3, %s653_s26 }
  0x12   : > { %v747_v3 = vpack.c.bf16 %v266_v1, %v265_v0  ;;  %v268_v4 = vld [vmem:[%s890_s19 + $0x18] sm:$0xff]  ;;  %v269_v6 = vld [vmem:[%s890_s19 + $0x20] sm:$0xff]  ;;  %v270_v7 = vld [vmem:[%s890_s19 + $0x28] sm:$0xff] }
  0x13   : > { %v751_v5 = vpack.c.bf16 %v268_v4, %v267_v2  ;;  %v755_v8 = vpack.c.bf16 %v270_v7, %v269_v6  ;;  %v249_v9 = vld [vmem:[%s902_s22] sm:$0xff]  ;;  %v271_v10 = vld [vmem:[%s890_s19 + $0x30] sm:$0xff]  ;;  %v272_v11 = vld [vmem:[%s890_s19 + $0x38] sm:$0xff] }
  0x14   : > { %748 = vmatprep.subr.bf16.mxu0 %v747_v3  ;;  %779 = vmatprep.subr.bf16.mxu1 %v747_v3  ;;  %v257_v12 = vld [vmem:[%s902_s22 + $0x40] sm:$0xff]  ;;  %v759_v13 = vpack.c.bf16 %v272_v11, %v271_v10  ;;  %v274_v15 = vld [vmem:[%s890_s19 + $0x48] sm:$0xff]  ;;  %v275_v17 = vld [vmem:[%s890_s19 + $0x50] sm:$0xff] }
  0x15   : > { %750 = vmatpush3.bf16.msra.mxu0 %v747_v3  ;;  %787 = vmatpush3.bf16.msra.mxu1 %v747_v3  ;;  %v273_v14 = vld [vmem:[%s890_s19 + $0x40] sm:$0xff]  ;;  %v276_v18 = vld [vmem:[%s890_s19 + $0x58] sm:$0xff]  ;;  %v278_v21 = vld [vmem:[%s890_s19 + $0x68] sm:$0xff] }
  0x16   : > { %752 = vmatprep.subr.bf16.mxu0 %v751_v5  ;;  %780 = vmatprep.subr.bf16.mxu1 %v751_v5  ;;  %v763_v16 = vpack.c.bf16 %v274_v15, %v273_v14  ;;  %v767_v19 = vpack.c.bf16 %v276_v18, %v275_v17  ;;  %v277_v20 = vld [vmem:[%s890_s19 + $0x60] sm:$0xff]  ;;  %v279_v23 = vld [vmem:[%s890_s19 + $0x70] sm:$0xff]  ;;  %v280_v24 = vld [vmem:[%s890_s19 + $0x78] sm:$0xff] }
  0x17   : > { %723 = vmatprep.mubr.f32.mxu0 %v249_v9  ;;  %735 = vmatprep.mubr.f32.mxu1 %v257_v12  ;;  %v771_v22 = vpack.c.bf16 %v278_v21, %v277_v20  ;;  %v775_v25 = vpack.c.bf16 %v280_v24, %v279_v23  ;;  %v250_v26 = vld [vmem:[%s902_s22 + $0x8] sm:$0xff]  ;;  %v251_v28 = vld [vmem:[%s902_s22 + $0x10] sm:$0xff]  ;;  %v252_v30 = vld [vmem:[%s902_s22 + $0x18] sm:$0xff] }
  0x18   : > { %v258_v27 = vld [vmem:[%s902_s22 + $0x48] sm:$0xff]  ;;  %v259_v29 = vld [vmem:[%s902_s22 + $0x50] sm:$0xff]  ;;  %v260_v31 = vld [vmem:[%s902_s22 + $0x58] sm:$0xff] }
  0x19   : > { %754 = vmatpush3.bf16.msra.mxu0 %v751_v5  ;;  %788 = vmatpush3.bf16.msra.mxu1 %v751_v5  ;;  %v253_v32 = vld [vmem:[%s902_s22 + $0x20] sm:$0xff]  ;;  %v254_v34 = vld [vmem:[%s902_s22 + $0x28] sm:$0xff]  ;;  %v255_v36 = vld [vmem:[%s902_s22 + $0x30] sm:$0xff] }
  0x1a   : > { %756 = vmatprep.subr.bf16.mxu0 %v755_v8  ;;  %781 = vmatprep.subr.bf16.mxu1 %v755_v8  ;;  %v261_v33 = vld [vmem:[%s902_s22 + $0x60] sm:$0xff]  ;;  %v262_v35 = vld [vmem:[%s902_s22 + $0x68] sm:$0xff]  ;;  %v263_v37 = vld [vmem:[%s902_s22 + $0x70] sm:$0xff] }
  0x1b   : > { %v256_v38 = vld [vmem:[%s902_s22 + $0x38] sm:$0xff] }
  0x1c   : > { %v264_v39 = vld [vmem:[%s902_s22 + $0x78] sm:$0xff] }
  0x1d   : > { %758 = vmatpush3.bf16.msra.mxu0 %v755_v8  ;;  %789 = vmatpush3.bf16.msra.mxu1 %v755_v8 }
  0x1e   : > { %760 = vmatprep.subr.bf16.mxu0 %v759_v13  ;;  %782 = vmatprep.subr.bf16.mxu1 %v759_v13 }
  0x21   : > { %762 = vmatpush3.bf16.msra.mxu0 %v759_v13  ;;  %790 = vmatpush3.bf16.msra.mxu1 %v759_v13 }
  0x22   : > { %764 = vmatprep.subr.bf16.mxu0 %v763_v16  ;;  %783 = vmatprep.subr.bf16.mxu1 %v763_v16 }
  0x25   : > { %766 = vmatpush3.bf16.msra.mxu0 %v763_v16  ;;  %791 = vmatpush3.bf16.msra.mxu1 %v763_v16 }
  0x26   : > { %768 = vmatprep.subr.bf16.mxu0 %v767_v19  ;;  %784 = vmatprep.subr.bf16.mxu1 %v767_v19 }
  0x29   : > { %770 = vmatpush3.bf16.msra.mxu0 %v767_v19  ;;  %792 = vmatpush3.bf16.msra.mxu1 %v767_v19 }
  0x2a   : > { %772 = vmatprep.subr.bf16.mxu0 %v771_v22  ;;  %785 = vmatprep.subr.bf16.mxu1 %v771_v22 }
  0x2d   : > { %774 = vmatpush3.bf16.msra.mxu0 %v771_v22  ;;  %793 = vmatpush3.bf16.msra.mxu1 %v771_v22 }
  0x2e   : > { %776 = vmatprep.subr.bf16.mxu0 %v775_v25  ;;  %786 = vmatprep.subr.bf16.mxu1 %v775_v25 }
  0x31   : > { %778 = vmatpush3.bf16.msra.mxu0 %v775_v25  ;;  %794 = vmatpush3.bf16.msra.mxu1 %v775_v25 }
  0x34   : > { %724 = vmatmul.mubr.f32.vlgmr.msra.gmra.mrb[0].mxu0 %v250_v26  ;;  %736 = vmatmul.mubr.f32.vlgmr.msra.gmra.mrb[0].mxu1 %v258_v27 }
  0x35   : > { %726 = vmatprep.mubr.f32.mxu0 %v251_v28  ;;  %738 = vmatprep.mubr.f32.mxu1 %v259_v29 }
  0x38   : > { %727 = vmatmul.mubr.f32.gmra.mrb[2].mxu0 %v252_v30  ;;  %739 = vmatmul.mubr.f32.gmra.mrb[2].mxu1 %v260_v31 }
  0x39   : > { %729 = vmatprep.mubr.f32.mxu0 %v253_v32  ;;  %741 = vmatprep.mubr.f32.mxu1 %v261_v33 }
  0x3c   : > { %730 = vmatmul.mubr.f32.gmra.mrb[4].mxu0 %v254_v34  ;;  %742 = vmatmul.mubr.f32.gmra.mrb[4].mxu1 %v262_v35 }
  0x3d   : > { %732 = vmatprep.mubr.f32.mxu0 %v255_v36  ;;  %744 = vmatprep.mubr.f32.mxu1 %v263_v37 }
  0x40   : > { %733 = vmatmul.mubr.f32.gmra.mrb[6].mxu0 %v256_v38  ;;  %745 = vmatmul.mubr.f32.gmra.mrb[6].mxu1 %v264_v39 }
 0x107   : > { %v725_v40 = vpop.f32.mrb[0].mxu0  ;;  %v737_v41 = vpop.f32.mrb[0].mxu1 }
 0x108   : > { %427 = vst [vmem:[%s934_s25 + $0x8] sm:$0xff] %v725_v40  ;;  %v465_v42 = vmul.f32 %v725_v40, %v725_v40  ;;  %v347_v43 = vpop.f32.mrb[1].mxu0  ;;  %435 = vst [vmem:[%s934_s25 + $0x48] sm:$0xff] %v737_v41  ;;  %v387_v44 = vpop.f32.mrb[1].mxu1  ;;  %v473_v16 = vmul.f32 %v737_v41, %v737_v41 }
 0x109   : > { %426 = vst [vmem:[%s934_s25] sm:$0xff] %v347_v43  ;;  %v442_v45 = vadd.f32 %v725_v40, %v347_v43  ;;  %v464_v46 = vmul.f32 %v347_v43, %v347_v43  ;;  %434 = vst [vmem:[%s934_s25 + $0x40] sm:$0xff] %v387_v44  ;;  %v472_v13 = vmul.f32 %v387_v44, %v387_v44 }
 0x10b   : > { %v480_v47 = vadd.f32 %v465_v42, %v464_v46  ;;  %v728_v48 = vpop.f32.mrb[2].mxu0  ;;  %v740_v49 = vpop.f32.mrb[2].mxu1 }
 0x10c   : > { %429 = vst [vmem:[%s934_s25 + $0x18] sm:$0xff] %v728_v48  ;;  %v357_v50 = vpop.f32.mrb[3].mxu0  ;;  %437 = vst [vmem:[%s934_s25 + $0x58] sm:$0xff] %v740_v49  ;;  %v397_v51 = vpop.f32.mrb[3].mxu1  ;;  %v467_v54 = vmul.f32 %v728_v48, %v728_v48  ;;  %v475_v22 = vmul.f32 %v740_v49, %v740_v49 }
 0x10d   : > { %428 = vst [vmem:[%s934_s25 + $0x10] sm:$0xff] %v357_v50  ;;  %v443_v52 = vadd.f32 %v442_v45, %v357_v50  ;;  %v466_v53 = vmul.f32 %v357_v50, %v357_v50  ;;  %436 = vst [vmem:[%s934_s25 + $0x50] sm:$0xff] %v397_v51  ;;  %v474_v19 = vmul.f32 %v397_v51, %v397_v51 }
 0x10f   : > { %v481_v55 = vadd.f32 %v480_v47, %v466_v53  ;;  %v731_v56 = vpop.f32.mrb[4].mxu0  ;;  %v444_v57 = vadd.f32 %v728_v48, %v443_v52  ;;  %v743_v58 = vpop.f32.mrb[4].mxu1 }
 0x110   : > { %431 = vst [vmem:[%s934_s25 + $0x28] sm:$0xff] %v731_v56  ;;  %v367_v59 = vpop.f32.mrb[5].mxu0  ;;  %439 = vst [vmem:[%s934_s25 + $0x68] sm:$0xff] %v743_v58  ;;  %v407_v60 = vpop.f32.mrb[5].mxu1  ;;  %v469_v0 = vmul.f32 %v731_v56, %v731_v56  ;;  %v477_v28 = vmul.f32 %v743_v58, %v743_v58 }
 0x111   : > { %430 = vst [vmem:[%s934_s25 + $0x20] sm:$0xff] %v367_v59  ;;  %v445_v61 = vadd.f32 %v444_v57, %v367_v59  ;;  %v468_v62 = vmul.f32 %v367_v59, %v367_v59  ;;  %v482_v63 = vadd.f32 %v481_v55, %v467_v54  ;;  %438 = vst [vmem:[%s934_s25 + $0x60] sm:$0xff] %v407_v60 }
 0x112   : > { %v476_v25 = vmul.f32 %v407_v60, %v407_v60 }
 0x113   : > { %v483_v1 = vadd.f32 %v482_v63, %v468_v62  ;;  %v734_v2 = vpop.f32.mrb[6].mxu0  ;;  %v446_v3 = vadd.f32 %v731_v56, %v445_v61  ;;  %v746_v4 = vpop.f32.mrb[6].mxu1 }
 0x114   : > { %433 = vst [vmem:[%s934_s25 + $0x38] sm:$0xff] %v734_v2  ;;  %v377_v5 = vpop.f32.mrb[7].mxu0  ;;  %441 = vst [vmem:[%s934_s25 + $0x78] sm:$0xff] %v746_v4  ;;  %v417_v6 = vpop.f32.mrb[7].mxu1  ;;  %v471_v10 = vmul.f32 %v734_v2, %v734_v2  ;;  %v479_v34 = vmul.f32 %v746_v4, %v746_v4 }
 0x115   : > { %432 = vst [vmem:[%s934_s25 + $0x30] sm:$0xff] %v377_v5  ;;  %v447_v7 = vadd.f32 %v446_v3, %v377_v5  ;;  %v470_v8 = vmul.f32 %v377_v5, %v377_v5  ;;  %v484_v9 = vadd.f32 %v483_v1, %v469_v0  ;;  %440 = vst [vmem:[%s934_s25 + $0x70] sm:$0xff] %v417_v6 }
 0x116   : > { %v478_v31 = vmul.f32 %v417_v6, %v417_v6 }
 0x117   : > { %v448_v11 = vadd.f32 %v734_v2, %v447_v7  ;;  %v485_v12 = vadd.f32 %v484_v9, %v470_v8 }
 0x119   : > { %v486_v14 = vadd.f32 %v485_v12, %v471_v10  ;;  %v449_v15 = vadd.f32 %v448_v11, %v387_v44 }
 0x11b   : > { %v487_v17 = vadd.f32 %v486_v14, %v472_v13  ;;  %v450_v18 = vadd.f32 %v737_v41, %v449_v15 }
 0x11d   : > { %v451_v20 = vadd.f32 %v450_v18, %v397_v51  ;;  %v488_v21 = vadd.f32 %v487_v17, %v473_v16 }
 0x11f   : > { %v489_v23 = vadd.f32 %v488_v21, %v474_v19  ;;  %v452_v24 = vadd.f32 %v740_v49, %v451_v20 }
 0x121   : > { %v453_v26 = vadd.f32 %v452_v24, %v407_v60  ;;  %v490_v27 = vadd.f32 %v489_v23, %v475_v22 }
 0x123   : > { %v491_v29 = vadd.f32 %v490_v27, %v476_v25  ;;  %v454_v30 = vadd.f32 %v743_v58, %v453_v26 }
 0x125   : > { %v455_v32 = vadd.f32 %v454_v30, %v417_v6  ;;  %v492_v33 = vadd.f32 %v491_v29, %v477_v28 }
 0x127   : > { %v456_v35 = vadd.f32 %v746_v4, %v455_v32  ;;  %v493_v36 = vadd.f32 %v492_v33, %v478_v31 }
 0x129   : > { %v457_v37 = vrot.slane %v456_v35, 4  ;;  %v494_v38 = vadd.f32 %v493_v36, %v479_v34 }
 0x12b   : > { %v458_v39 = vadd.f32 %v457_v37, %v456_v35  ;;  %v495_v40 = vrot.slane %v494_v38, 4 }
 0x12d   : > { %v459_v41 = vrot.slane %v458_v39, 2  ;;  %v496_v42 = vadd.f32 %v495_v40, %v494_v38 }
 0x12f   : > { %v460_v43 = vadd.f32 %v459_v41, %v458_v39  ;;  %v497_v44 = vrot.slane %v496_v42, 2 }
 0x131   : > { %v461_v45 = vrot.slane %v460_v43, 1  ;;  %v498_v46 = vadd.f32 %v497_v44, %v496_v42 }
 0x133   : > { %v462_v47 = vadd.f32 %v461_v45, %v460_v43  ;;  %v499_v48 = vrot.slane %v498_v46, 1 }
 0x135   : > { %463 = vst [vmem:[%s248_s29] sm:$0x1] %v462_v47  ;;  %v500_v49 = vadd.f32 %v499_v48, %v498_v46 }
 0x137   : > { %501 = vst [vmem:[%s248_s29 + $0x1] sm:$0x1] %v500_v49 }
 0x138 PF: > { %s14_s14 = sadd.s32 1, %s841_s14   ;;  %s969_s12 = smov %s837_s13 }
 0x139   : > { %p11_p5 = scmp.ge.s32.totalorder %s14_s14, 6   ;;  %s970_s13 = smov %s972_s15 }
 0x13b   :  { %13 = sbr.rel (!%p11_p5) target bundleno = 2 (0x2), region = 73 }

// kernel: _lambda_.14
= control target key start
LH: loop header
LB: loop body
LE: loop exit
PB: predicated region body
PF: predicated region fallthrough
CT: control target
= control target key end

     0   :  { %s896_s0 = inlined_call_operand.vmem [shape: f32[512,128], index: 0, kind: input, shape index: {}]   ;;  %s897_s1 = inlined_call_operand.vmem [shape: f32[1,128], index: 1, kind: input, shape index: {}]   ;;  %s898_s2 = inlined_call_operand.vmem [shape: f32[1,128], index: 2, kind: input, shape index: {}]   ;;  %s899_s3 = inlined_call_operand.vmem [shape: f32[512,128], index: 3, kind: output, shape index: {}]  }
   0x1   :  { %v14_v0 = vld [vmem:[%s896_s0] sm:$0xff]  ;;  %v15_v4 = vld [vmem:[%s896_s0 + $0x8] sm:$0xff]  ;;  %v16_v5 = vld [vmem:[%s896_s0 + $0x10] sm:$0xff] }
   0x2   :  { %v380_v1 = vld [vmem:[%s897_s1] ss:$0 sm:$0xff]  ;;  %v17_v6 = vld [vmem:[%s896_s0 + $0x18] sm:$0xff]  ;;  %v19_v11 = vld [vmem:[%s896_s0 + $0x28] sm:$0xff] }
   0x3   :  { %v385_v2 = vld [vmem:[%s898_s2] ss:$0 sm:$0xff]  ;;  %v85_v3 = vmul.f32 %v380_v1, %v14_v0  ;;  %v86_v7 = vmul.f32 %v380_v1, %v15_v4  ;;  %v87_v8 = vmul.f32 %v380_v1, %v16_v5  ;;  %v88_v9 = vmul.f32 %v380_v1, %v17_v6  ;;  %v20_v12 = vld [vmem:[%s896_s0 + $0x30] sm:$0xff]  ;;  %v21_v17 = vld [vmem:[%s896_s0 + $0x38] sm:$0xff] }
   0x4   :  { %v18_v10 = vld [vmem:[%s896_s0 + $0x20] sm:$0xff]  ;;  %v90_v15 = vmul.f32 %v380_v1, %v19_v11  ;;  %v91_v16 = vmul.f32 %v380_v1, %v20_v12  ;;  %v92_v21 = vmul.f32 %v380_v1, %v21_v17  ;;  %v23_v27 = vld [vmem:[%s896_s0 + $0x48] sm:$0xff]  ;;  %v24_v28 = vld [vmem:[%s896_s0 + $0x50] sm:$0xff] }
   0x5   :  { %v156_v13 = vadd.f32 %v385_v2, %v85_v3  ;;  %v89_v14 = vmul.f32 %v380_v1, %v18_v10  ;;  %v157_v18 = vadd.f32 %v385_v2, %v86_v7  ;;  %v158_v19 = vadd.f32 %v385_v2, %v87_v8  ;;  %v22_v22 = vld [vmem:[%s896_s0 + $0x40] sm:$0xff]  ;;  %v25_v29 = vld [vmem:[%s896_s0 + $0x58] sm:$0xff]  ;;  %v27_v35 = vld [vmem:[%s896_s0 + $0x68] sm:$0xff] }
   0x6   :  { %v159_v20 = vadd.f32 %v385_v2, %v88_v9  ;;  %v161_v25 = vadd.f32 %v385_v2, %v90_v15  ;;  %v162_v26 = vadd.f32 %v385_v2, %v91_v16  ;;  %v163_v33 = vadd.f32 %v385_v2, %v92_v21  ;;  %v26_v34 = vld [vmem:[%s896_s0 + $0x60] sm:$0xff]  ;;  %v28_v36 = vld [vmem:[%s896_s0 + $0x70] sm:$0xff]  ;;  %v29_v41 = vld [vmem:[%s896_s0 + $0x78] sm:$0xff] }
   0x7   :  { %v220_v23 = vmax.f32 %v156_v13, 0.0  ;;  %v160_v24 = vadd.f32 %v385_v2, %v89_v14  ;;  %v221_v30 = vmax.f32 %v157_v18, 0.0  ;;  %v222_v31 = vmax.f32 %v158_v19, 0.0  ;;  %v30_v54 = vld [vmem:[%s896_s0 + $0x80] sm:$0xff]  ;;  %v31_v59 = vld [vmem:[%s896_s0 + $0x88] sm:$0xff]  ;;  %v32_v60 = vld [vmem:[%s896_s0 + $0x90] sm:$0xff] }
   0x8   :  { %v223_v32 = vmax.f32 %v159_v20, 0.0  ;;  %v225_v38 = vmax.f32 %v161_v25, 0.0  ;;  %v226_v39 = vmax.f32 %v162_v26, 0.0  ;;  %v93_v40 = vmul.f32 %v380_v1, %v22_v22  ;;  %v33_v61 = vld [vmem:[%s896_s0 + $0x98] sm:$0xff]  ;;  %v34_v4 = vld [vmem:[%s896_s0 + $0xa0] sm:$0xff]  ;;  %v35_v5 = vld [vmem:[%s896_s0 + $0xa8] sm:$0xff] }
   0x9   :  { %284 = vst [vmem:[%s899_s3] sm:$0xff] %v220_v23  ;;  %v224_v37 = vmax.f32 %v160_v24, 0.0  ;;  %285 = vst [vmem:[%s899_s3 + $0x8] sm:$0xff] %v221_v30  ;;  %v227_v42 = vmax.f32 %v163_v33, 0.0  ;;  %v94_v43 = vmul.f32 %v380_v1, %v23_v27  ;;  %v95_v44 = vmul.f32 %v380_v1, %v24_v28  ;;  %v36_v6 = vld [vmem:[%s896_s0 + $0xb0] sm:$0xff]  ;;  %v37_v11 = vld [vmem:[%s896_s0 + $0xb8] sm:$0xff] }
   0xa   :  { %286 = vst [vmem:[%s899_s3 + $0x10] sm:$0xff] %v222_v31  ;;  %287 = vst [vmem:[%s899_s3 + $0x18] sm:$0xff] %v223_v32  ;;  %v96_v45 = vmul.f32 %v380_v1, %v25_v29  ;;  %v164_v46 = vadd.f32 %v385_v2, %v93_v40  ;;  %v97_v47 = vmul.f32 %v380_v1, %v26_v34  ;;  %v38_v24 = vld [vmem:[%s896_s0 + $0xc0] sm:$0xff]  ;;  %v39_v29 = vld [vmem:[%s896_s0 + $0xc8] sm:$0xff] }
   0xb   :  { %288 = vst [vmem:[%s899_s3 + $0x20] sm:$0xff] %v224_v37  ;;  %289 = vst [vmem:[%s899_s3 + $0x28] sm:$0xff] %v225_v38  ;;  %v98_v48 = vmul.f32 %v380_v1, %v27_v35  ;;  %v99_v49 = vmul.f32 %v380_v1, %v28_v36  ;;  %v165_v50 = vadd.f32 %v385_v2, %v94_v43  ;;  %v40_v30 = vld [vmem:[%s896_s0 + $0xd0] sm:$0xff]  ;;  %v41_v31 = vld [vmem:[%s896_s0 + $0xd8] sm:$0xff] }
   0xc   :  { %290 = vst [vmem:[%s899_s3 + $0x30] sm:$0xff] %v226_v39  ;;  %291 = vst [vmem:[%s899_s3 + $0x38] sm:$0xff] %v227_v42  ;;  %v166_v51 = vadd.f32 %v385_v2, %v95_v44  ;;  %v167_v52 = vadd.f32 %v385_v2, %v96_v45  ;;  %v100_v53 = vmul.f32 %v380_v1, %v29_v41  ;;  %v228_v55 = vmax.f32 %v164_v46, 0.0  ;;  %v42_v36 = vld [vmem:[%s896_s0 + $0xe0] sm:$0xff]  ;;  %v43_v37 = vld [vmem:[%s896_s0 + $0xe8] sm:$0xff] }
   0xd   :  { %v168_v56 = vadd.f32 %v385_v2, %v97_v47  ;;  %v169_v57 = vadd.f32 %v385_v2, %v98_v48  ;;  %v170_v58 = vadd.f32 %v385_v2, %v99_v49  ;;  %v229_v62 = vmax.f32 %v165_v50, 0.0  ;;  %v44_v38 = vld [vmem:[%s896_s0 + $0xf0] sm:$0xff]  ;;  %v45_v43 = vld [vmem:[%s896_s0 + $0xf8] sm:$0xff] }
   0xe   :  { %v230_v63 = vmax.f32 %v166_v51, 0.0  ;;  %v231_v0 = vmax.f32 %v167_v52, 0.0  ;;  %v171_v3 = vadd.f32 %v385_v2, %v100_v53  ;;  %292 = vst [vmem:[%s899_s3 + $0x40] sm:$0xff] %v228_v55  ;;  %v101_v10 = vmul.f32 %v380_v1, %v30_v54 }
   0xf   :  { %v232_v7 = vmax.f32 %v168_v56, 0.0  ;;  %v233_v8 = vmax.f32 %v169_v57, 0.0  ;;  %v234_v9 = vmax.f32 %v170_v58, 0.0  ;;  %293 = vst [vmem:[%s899_s3 + $0x48] sm:$0xff] %v229_v62  ;;  %v102_v13 = vmul.f32 %v380_v1, %v31_v59  ;;  %v46_v56 = vld [vmem:[%s896_s0 + $0x100] sm:$0xff]  ;;  %v48_v62 = vld [vmem:[%s896_s0 + $0x110] sm:$0xff] }
  0x10   :  { %294 = vst [vmem:[%s899_s3 + $0x50] sm:$0xff] %v230_v63  ;;  %295 = vst [vmem:[%s899_s3 + $0x58] sm:$0xff] %v231_v0  ;;  %v235_v12 = vmax.f32 %v171_v3, 0.0  ;;  %v103_v14 = vmul.f32 %v380_v1, %v32_v60  ;;  %v104_v15 = vmul.f32 %v380_v1, %v33_v61  ;;  %v172_v16 = vadd.f32 %v385_v2, %v101_v10  ;;  %v47_v61 = vld [vmem:[%s896_s0 + $0x108] sm:$0xff]  ;;  %v49_v63 = vld [vmem:[%s896_s0 + $0x118] sm:$0xff] }
  0x11   :  { %296 = vst [vmem:[%s899_s3 + $0x60] sm:$0xff] %v232_v7  ;;  %297 = vst [vmem:[%s899_s3 + $0x68] sm:$0xff] %v233_v8  ;;  %v105_v17 = vmul.f32 %v380_v1, %v34_v4  ;;  %v106_v18 = vmul.f32 %v380_v1, %v35_v5  ;;  %v107_v19 = vmul.f32 %v380_v1, %v36_v6  ;;  %v50_v6 = vld [vmem:[%s896_s0 + $0x120] sm:$0xff]  ;;  %v51_v7 = vld [vmem:[%s896_s0 + $0x128] sm:$0xff] }
  0x12   :  { %298 = vst [vmem:[%s899_s3 + $0x70] sm:$0xff] %v234_v9  ;;  %299 = vst [vmem:[%s899_s3 + $0x78] sm:$0xff] %v235_v12  ;;  %v173_v20 = vadd.f32 %v385_v2, %v102_v13  ;;  %v174_v21 = vadd.f32 %v385_v2, %v103_v14  ;;  %v175_v22 = vadd.f32 %v385_v2, %v104_v15  ;;  %v236_v25 = vmax.f32 %v172_v16, 0.0  ;;  %v52_v8 = vld [vmem:[%s896_s0 + $0x130] sm:$0xff]  ;;  %v53_v13 = vld [vmem:[%s896_s0 + $0x138] sm:$0xff] }
  0x13   :  { %v108_v23 = vmul.f32 %v380_v1, %v37_v11  ;;  %v176_v26 = vadd.f32 %v385_v2, %v105_v17  ;;  %v177_v27 = vadd.f32 %v385_v2, %v106_v18  ;;  %v178_v28 = vadd.f32 %v385_v2, %v107_v19 }
  0x14   :  { %v237_v32 = vmax.f32 %v173_v20, 0.0  ;;  %v238_v33 = vmax.f32 %v174_v21, 0.0  ;;  %v239_v34 = vmax.f32 %v175_v22, 0.0  ;;  %300 = vst [vmem:[%s899_s3 + $0x80] sm:$0xff] %v236_v25  ;;  %v109_v42 = vmul.f32 %v380_v1, %v38_v24 }
  0x15   :  { %v179_v35 = vadd.f32 %v385_v2, %v108_v23  ;;  %v240_v39 = vmax.f32 %v176_v26, 0.0  ;;  %v241_v40 = vmax.f32 %v177_v27, 0.0  ;;  %v242_v41 = vmax.f32 %v178_v28, 0.0  ;;  %v54_v26 = vld [vmem:[%s896_s0 + $0x140] sm:$0xff] }
  0x16   :  { %301 = vst [vmem:[%s899_s3 + $0x88] sm:$0xff] %v237_v32  ;;  %302 = vst [vmem:[%s899_s3 + $0x90] sm:$0xff] %v238_v33  ;;  %v110_v45 = vmul.f32 %v380_v1, %v39_v29  ;;  %v111_v46 = vmul.f32 %v380_v1, %v40_v30  ;;  %v112_v47 = vmul.f32 %v380_v1, %v41_v31  ;;  %v55_v31 = vld [vmem:[%s896_s0 + $0x148] sm:$0xff]  ;;  %v56_v32 = vld [vmem:[%s896_s0 + $0x150] sm:$0xff] }
  0x17   :  { %303 = vst [vmem:[%s899_s3 + $0x98] sm:$0xff] %v239_v34  ;;  %v243_v44 = vmax.f32 %v179_v35, 0.0  ;;  %304 = vst [vmem:[%s899_s3 + $0xa0] sm:$0xff] %v240_v39  ;;  %v180_v48 = vadd.f32 %v385_v2, %v109_v42  ;;  %v113_v49 = vmul.f32 %v380_v1, %v42_v36  ;;  %v114_v50 = vmul.f32 %v380_v1, %v43_v37  ;;  %v57_v33 = vld [vmem:[%s896_s0 + $0x158] sm:$0xff]  ;;  %v59_v39 = vld [vmem:[%s896_s0 + $0x168] sm:$0xff] }
  0x18   :  { %305 = vst [vmem:[%s899_s3 + $0xa8] sm:$0xff] %v241_v40  ;;  %306 = vst [vmem:[%s899_s3 + $0xb0] sm:$0xff] %v242_v41  ;;  %v115_v51 = vmul.f32 %v380_v1, %v44_v38  ;;  %v181_v52 = vadd.f32 %v385_v2, %v110_v45  ;;  %v182_v53 = vadd.f32 %v385_v2, %v111_v46  ;;  %v58_v38 = vld [vmem:[%s896_s0 + $0x160] sm:$0xff]  ;;  %v60_v40 = vld [vmem:[%s896_s0 + $0x170] sm:$0xff] }
  0x19   :  { %307 = vst [vmem:[%s899_s3 + $0xb8] sm:$0xff] %v243_v44  ;;  %v183_v54 = vadd.f32 %v385_v2, %v112_v47  ;;  %v116_v55 = vmul.f32 %v380_v1, %v45_v43  ;;  %v244_v57 = vmax.f32 %v180_v48, 0.0  ;;  %v184_v58 = vadd.f32 %v385_v2, %v113_v49  ;;  %v61_v45 = vld [vmem:[%s896_s0 + $0x178] sm:$0xff] }
  0x1a   :  { %v185_v59 = vadd.f32 %v385_v2, %v114_v50  ;;  %v186_v60 = vadd.f32 %v385_v2, %v115_v51  ;;  %v245_v0 = vmax.f32 %v181_v52, 0.0  ;;  %v246_v3 = vmax.f32 %v182_v53, 0.0 }
  0x1b   :  { %v247_v4 = vmax.f32 %v183_v54, 0.0  ;;  %v187_v5 = vadd.f32 %v385_v2, %v116_v55  ;;  %308 = vst [vmem:[%s899_s3 + $0xc0] sm:$0xff] %v244_v57  ;;  %v248_v9 = vmax.f32 %v184_v58, 0.0  ;;  %v117_v12 = vmul.f32 %v380_v1, %v46_v56  ;;  %v62_v58 = vld [vmem:[%s896_s0 + $0x180] sm:$0xff] }
  0x1c   :  { %v249_v10 = vmax.f32 %v185_v59, 0.0  ;;  %v250_v11 = vmax.f32 %v186_v60, 0.0  ;;  %309 = vst [vmem:[%s899_s3 + $0xc8] sm:$0xff] %v245_v0  ;;  %310 = vst [vmem:[%s899_s3 + $0xd0] sm:$0xff] %v246_v3  ;;  %v118_v15 = vmul.f32 %v380_v1, %v47_v61  ;;  %v119_v16 = vmul.f32 %v380_v1, %v48_v62  ;;  %v64_v0 = vld [vmem:[%s896_s0 + $0x190] sm:$0xff]  ;;  %v65_v3 = vld [vmem:[%s896_s0 + $0x198] sm:$0xff] }
  0x1d   :  { %311 = vst [vmem:[%s899_s3 + $0xd8] sm:$0xff] %v247_v4  ;;  %v251_v14 = vmax.f32 %v187_v5, 0.0  ;;  %v120_v17 = vmul.f32 %v380_v1, %v49_v63  ;;  %312 = vst [vmem:[%s899_s3 + $0xe0] sm:$0xff] %v248_v9  ;;  %v188_v18 = vadd.f32 %v385_v2, %v117_v12  ;;  %v121_v19 = vmul.f32 %v380_v1, %v50_v6  ;;  %v63_v63 = vld [vmem:[%s896_s0 + $0x188] sm:$0xff] }
  0x1e   :  { %313 = vst [vmem:[%s899_s3 + $0xe8] sm:$0xff] %v249_v10  ;;  %314 = vst [vmem:[%s899_s3 + $0xf0] sm:$0xff] %v250_v11  ;;  %v122_v20 = vmul.f32 %v380_v1, %v51_v7  ;;  %v123_v21 = vmul.f32 %v380_v1, %v52_v8  ;;  %v189_v22 = vadd.f32 %v385_v2, %v118_v15  ;;  %v66_v8 = vld [vmem:[%s896_s0 + $0x1a0] sm:$0xff]  ;;  %v67_v9 = vld [vmem:[%s896_s0 + $0x1a8] sm:$0xff] }
  0x1f   :  { %315 = vst [vmem:[%s899_s3 + $0xf8] sm:$0xff] %v251_v14  ;;  %v190_v23 = vadd.f32 %v385_v2, %v119_v16  ;;  %v191_v24 = vadd.f32 %v385_v2, %v120_v17  ;;  %v124_v25 = vmul.f32 %v380_v1, %v53_v13  ;;  %v252_v27 = vmax.f32 %v188_v18, 0.0  ;;  %v68_v10 = vld [vmem:[%s896_s0 + $0x1b0] sm:$0xff]  ;;  %v69_v15 = vld [vmem:[%s896_s0 + $0x1b8] sm:$0xff] }
  0x20   :  { %v192_v28 = vadd.f32 %v385_v2, %v121_v19  ;;  %v193_v29 = vadd.f32 %v385_v2, %v122_v20  ;;  %v194_v30 = vadd.f32 %v385_v2, %v123_v21  ;;  %v253_v34 = vmax.f32 %v189_v22, 0.0 }
  0x21   :  { %v254_v35 = vmax.f32 %v190_v23, 0.0  ;;  %v255_v36 = vmax.f32 %v191_v24, 0.0  ;;  %v195_v37 = vadd.f32 %v385_v2, %v124_v25  ;;  %316 = vst [vmem:[%s899_s3 + $0x100] sm:$0xff] %v252_v27  ;;  %v125_v44 = vmul.f32 %v380_v1, %v54_v26 }
  0x22   :  { %v256_v41 = vmax.f32 %v192_v28, 0.0  ;;  %v257_v42 = vmax.f32 %v193_v29, 0.0  ;;  %v258_v43 = vmax.f32 %v194_v30, 0.0  ;;  %317 = vst [vmem:[%s899_s3 + $0x108] sm:$0xff] %v253_v34  ;;  %v126_v47 = vmul.f32 %v380_v1, %v55_v31  ;;  %v70_v28 = vld [vmem:[%s896_s0 + $0x1c0] sm:$0xff]  ;;  %v72_v34 = vld [vmem:[%s896_s0 + $0x1d0] sm:$0xff] }
  0x23   :  { %318 = vst [vmem:[%s899_s3 + $0x110] sm:$0xff] %v254_v35  ;;  %319 = vst [vmem:[%s899_s3 + $0x118] sm:$0xff] %v255_v36  ;;  %v259_v46 = vmax.f32 %v195_v37, 0.0  ;;  %v127_v48 = vmul.f32 %v380_v1, %v56_v32  ;;  %v128_v49 = vmul.f32 %v380_v1, %v57_v33  ;;  %v196_v50 = vadd.f32 %v385_v2, %v125_v44  ;;  %v71_v33 = vld [vmem:[%s896_s0 + $0x1c8] sm:$0xff]  ;;  %v73_v35 = vld [vmem:[%s896_s0 + $0x1d8] sm:$0xff] }
  0x24   :  { %320 = vst [vmem:[%s899_s3 + $0x120] sm:$0xff] %v256_v41  ;;  %321 = vst [vmem:[%s899_s3 + $0x128] sm:$0xff] %v257_v42  ;;  %v129_v51 = vmul.f32 %v380_v1, %v58_v38  ;;  %v130_v52 = vmul.f32 %v380_v1, %v59_v39  ;;  %v131_v53 = vmul.f32 %v380_v1, %v60_v40  ;;  %v74_v40 = vld [vmem:[%s896_s0 + $0x1e0] sm:$0xff]  ;;  %v75_v41 = vld [vmem:[%s896_s0 + $0x1e8] sm:$0xff] }
  0x25   :  { %322 = vst [vmem:[%s899_s3 + $0x130] sm:$0xff] %v258_v43  ;;  %323 = vst [vmem:[%s899_s3 + $0x138] sm:$0xff] %v259_v46  ;;  %v197_v54 = vadd.f32 %v385_v2, %v126_v47  ;;  %v198_v55 = vadd.f32 %v385_v2, %v127_v48  ;;  %v199_v56 = vadd.f32 %v385_v2, %v128_v49  ;;  %v260_v59 = vmax.f32 %v196_v50, 0.0  ;;  %v76_v42 = vld [vmem:[%s896_s0 + $0x1f0] sm:$0xff]  ;;  %v77_v47 = vld [vmem:[%s896_s0 + $0x1f8] sm:$0xff] }
  0x26   :  { %v132_v57 = vmul.f32 %v380_v1, %v61_v45  ;;  %v200_v60 = vadd.f32 %v385_v2, %v129_v51  ;;  %v201_v61 = vadd.f32 %v385_v2, %v130_v52  ;;  %v202_v62 = vadd.f32 %v385_v2, %v131_v53 }
  0x27   :  { %v261_v4 = vmax.f32 %v197_v54, 0.0  ;;  %v262_v5 = vmax.f32 %v198_v55, 0.0  ;;  %v263_v6 = vmax.f32 %v199_v56, 0.0  ;;  %324 = vst [vmem:[%s899_s3 + $0x140] sm:$0xff] %v260_v59  ;;  %v133_v14 = vmul.f32 %v380_v1, %v62_v58 }
  0x28   :  { %v203_v7 = vadd.f32 %v385_v2, %v132_v57  ;;  %v264_v11 = vmax.f32 %v200_v60, 0.0  ;;  %v265_v12 = vmax.f32 %v201_v61, 0.0  ;;  %v266_v13 = vmax.f32 %v202_v62, 0.0 }
  0x29   :  { %325 = vst [vmem:[%s899_s3 + $0x148] sm:$0xff] %v261_v4  ;;  %326 = vst [vmem:[%s899_s3 + $0x150] sm:$0xff] %v262_v5  ;;  %v134_v17 = vmul.f32 %v380_v1, %v63_v63  ;;  %v135_v18 = vmul.f32 %v380_v1, %v64_v0  ;;  %v136_v19 = vmul.f32 %v380_v1, %v65_v3 }
  0x2a   :  { %327 = vst [vmem:[%s899_s3 + $0x158] sm:$0xff] %v263_v6  ;;  %v267_v16 = vmax.f32 %v203_v7, 0.0  ;;  %328 = vst [vmem:[%s899_s3 + $0x160] sm:$0xff] %v264_v11  ;;  %v204_v20 = vadd.f32 %v385_v2, %v133_v14  ;;  %v137_v21 = vmul.f32 %v380_v1, %v66_v8  ;;  %v138_v22 = vmul.f32 %v380_v1, %v67_v9 }
  0x2b   :  { %329 = vst [vmem:[%s899_s3 + $0x168] sm:$0xff] %v265_v12  ;;  %330 = vst [vmem:[%s899_s3 + $0x170] sm:$0xff] %v266_v13  ;;  %v139_v23 = vmul.f32 %v380_v1, %v68_v10  ;;  %v205_v24 = vadd.f32 %v385_v2, %v134_v17  ;;  %v206_v25 = vadd.f32 %v385_v2, %v135_v18 }
  0x2c   :  { %331 = vst [vmem:[%s899_s3 + $0x178] sm:$0xff] %v267_v16  ;;  %v207_v26 = vadd.f32 %v385_v2, %v136_v19  ;;  %v140_v27 = vmul.f32 %v380_v1, %v69_v15  ;;  %v268_v29 = vmax.f32 %v204_v20, 0.0  ;;  %v208_v30 = vadd.f32 %v385_v2, %v137_v21 }
  0x2d   :  { %v209_v31 = vadd.f32 %v385_v2, %v138_v22  ;;  %v210_v32 = vadd.f32 %v385_v2, %v139_v23  ;;  %v269_v36 = vmax.f32 %v205_v24, 0.0  ;;  %v270_v37 = vmax.f32 %v206_v25, 0.0 }
  0x2e   :  { %v271_v38 = vmax.f32 %v207_v26, 0.0  ;;  %v211_v39 = vadd.f32 %v385_v2, %v140_v27  ;;  %332 = vst [vmem:[%s899_s3 + $0x180] sm:$0xff] %v268_v29  ;;  %v272_v43 = vmax.f32 %v208_v30, 0.0  ;;  %v141_v46 = vmul.f32 %v380_v1, %v70_v28 }
  0x2f   :  { %v273_v44 = vmax.f32 %v209_v31, 0.0  ;;  %v274_v45 = vmax.f32 %v210_v32, 0.0  ;;  %333 = vst [vmem:[%s899_s3 + $0x188] sm:$0xff] %v269_v36  ;;  %334 = vst [vmem:[%s899_s3 + $0x190] sm:$0xff] %v270_v37  ;;  %v142_v49 = vmul.f32 %v380_v1, %v71_v33  ;;  %v143_v50 = vmul.f32 %v380_v1, %v72_v34 }
  0x30   :  { %335 = vst [vmem:[%s899_s3 + $0x198] sm:$0xff] %v271_v38  ;;  %v275_v48 = vmax.f32 %v211_v39, 0.0  ;;  %v144_v51 = vmul.f32 %v380_v1, %v73_v35  ;;  %336 = vst [vmem:[%s899_s3 + $0x1a0] sm:$0xff] %v272_v43  ;;  %v212_v52 = vadd.f32 %v385_v2, %v141_v46  ;;  %v145_v53 = vmul.f32 %v380_v1, %v74_v40 }
  0x31   :  { %337 = vst [vmem:[%s899_s3 + $0x1a8] sm:$0xff] %v273_v44  ;;  %338 = vst [vmem:[%s899_s3 + $0x1b0] sm:$0xff] %v274_v45  ;;  %v146_v54 = vmul.f32 %v380_v1, %v75_v41  ;;  %v147_v55 = vmul.f32 %v380_v1, %v76_v42  ;;  %v213_v56 = vadd.f32 %v385_v2, %v142_v49 }
  0x32   :  { %339 = vst [vmem:[%s899_s3 + $0x1b8] sm:$0xff] %v275_v48  ;;  %v214_v57 = vadd.f32 %v385_v2, %v143_v50  ;;  %v215_v58 = vadd.f32 %v385_v2, %v144_v51  ;;  %v148_v59 = vmul.f32 %v380_v1, %v77_v47  ;;  %v276_v60 = vmax.f32 %v212_v52, 0.0 }
  0x33   :  { %v216_v61 = vadd.f32 %v385_v2, %v145_v53  ;;  %v217_v62 = vadd.f32 %v385_v2, %v146_v54  ;;  %v218_v63 = vadd.f32 %v385_v2, %v147_v55  ;;  %v277_v0 = vmax.f32 %v213_v56, 0.0 }
  0x34   :  { %v278_v3 = vmax.f32 %v214_v57, 0.0  ;;  %v279_v4 = vmax.f32 %v215_v58, 0.0  ;;  %v219_v5 = vadd.f32 %v385_v2, %v148_v59  ;;  %340 = vst [vmem:[%s899_s3 + $0x1c0] sm:$0xff] %v276_v60 }
  0x35   :  { %v280_v6 = vmax.f32 %v216_v61, 0.0  ;;  %v281_v7 = vmax.f32 %v217_v62, 0.0  ;;  %v282_v8 = vmax.f32 %v218_v63, 0.0  ;;  %341 = vst [vmem:[%s899_s3 + $0x1c8] sm:$0xff] %v277_v0 }
  0x36   :  { %342 = vst [vmem:[%s899_s3 + $0x1d0] sm:$0xff] %v278_v3  ;;  %343 = vst [vmem:[%s899_s3 + $0x1d8] sm:$0xff] %v279_v4  ;;  %v283_v1 = vmax.f32 %v219_v5, 0.0 }
  0x37   :  { %344 = vst [vmem:[%s899_s3 + $0x1e0] sm:$0xff] %v280_v6  ;;  %345 = vst [vmem:[%s899_s3 + $0x1e8] sm:$0xff] %v281_v7 }
  0x38   :  { %346 = vst [vmem:[%s899_s3 + $0x1f0] sm:$0xff] %v282_v8  ;;  %347 = vst [vmem:[%s899_s3 + $0x1f8] sm:$0xff] %v283_v1 }

// kernel: _lambda_.15
= control target key start
LH: loop header
LB: loop body
LE: loop exit
PB: predicated region body
PF: predicated region fallthrough
CT: control target
= control target key end

     0   :  { %s1664_s12 = smov 0   ;;  %s1666_s13 = smov 0   ;;  %s2100_s0 = inlined_call_operand.vmem [shape: f32[4,512,64], index: 0, kind: input, shape index: {}]   ;;  %s2101_s1 = inlined_call_operand.vmem [shape: f32[4,64,128], index: 1, kind: input, shape index: {}]   ;;  %s2102_s2 = inlined_call_operand.vmem [shape: f32[4,512,128], index: 2, kind: output, shape index: {0}]   ;;  %s2103_s3 = inlined_call_operand.vmem [shape: f32[4,1,2,128], index: 3, kind: output, shape index: {1}]  }
   0x1   :  { %s1668_s14 = smov 0  }
   0x2 LB: > { %s26_s15 = sadd.s32 1, %s1638_s13  ;;  %p1311_p0 = scmp.ge.s32.totalorder %s1642_s14, 1  ;;  %s1642_s14 = sphi %s1668_s14, %s14_s14   ;;  %s1638_s13 = sphi %s1666_s13, %s2105_s13   ;;  %s1634_s12 = sphi %s1664_s12, %s2104_s12  }
   0x3   : > { %p28_p1 = scmp.ge.s32.totalorder %s26_s15, 4  ;;  %p173_p2 = scmp.lt.s32.totalorder %s1642_s14, 5 }
   0x5   : > { %s2107_s15 = smov (%p28_p1, %s26_s15), 0  ;;  %p174_p3 = pnand %p1311_p0, %p173_p2 }
   0x6   : > { %p218_p4 = scmp.lt.s32.totalorder (!%p174_p3), %s1634_s12, 3  ;;  %vm321_vm0 = vcmask (!%p174_p3), 523264  }
   0x7   : > { %177 = sbr.rel (%p174_p3) target bundleno = 392 (0x188), region = 28 }
   0xe   : > { %s2109_s12 = smov (!%p218_p4, %s1634_s12), 3 }
   0xf   : > { %s1385_s16 = sshll.u32 %s2109_s12, 9  ;;  %s1386_s17 = sshll.u32 %s2109_s12, 6 }
  0x10   : > { %s1691_s20 = scalar_lea.vmem %s2100_s0, %s1385_s16  ;;  %s231_s23 = scalar_lea.vmem %s2101_s1, %s1386_s17 }
  0x11   : > { %v313_v0 = vld [vmem:[%s231_s23] sm:$0xff]  ;;  %v314_v1 = vld [vmem:[%s231_s23 + $0x8] sm:$0xff]  ;;  %v315_v2 = vld [vmem:[%s231_s23 + $0x10] sm:$0xff]  ;;  %s1829_s26 = scalar_lea.vmem %s2102_s2, %s1385_s16  ;;  %s1318_s27 = sshll.u32 %s2109_s12, 1 }
  0x12   : > { %v1572_v3 = vpack.c.bf16 %v314_v1, %v313_v0  ;;  %v316_v4 = vld [vmem:[%s231_s23 + $0x18] sm:$0xff]  ;;  %v317_v6 = vld [vmem:[%s231_s23 + $0x20] sm:$0xff]  ;;  %v318_v7 = vld [vmem:[%s231_s23 + $0x28] sm:$0xff]  ;;  %s248_s30 = scalar_lea.vmem %s2103_s3, %s1318_s27 }
  0x13   : > { %v1576_v5 = vpack.c.bf16 %v316_v4, %v315_v2  ;;  %v249_v8 = vld [vmem:[%s1691_s20] sm:$0xff]  ;;  %v1580_v9 = vpack.c.bf16 %v318_v7, %v317_v6  ;;  %v319_v10 = vld [vmem:[%s231_s23 + $0x30] sm:$0xff]  ;;  %v320_v11 = vld [vmem:[%s231_s23 + $0x38] sm:$0xff] }
  0x14   : > { %1573 = vmatprep.subr.bf16.mxu0 %v1572_v3  ;;  %1476 = vmatprep.mubr.msk.f32.mxu0 %vm321_vm0, %v249_v8  ;;  %v1584_v12 = vpack.c.bf16 %v320_v11, %v319_v10  ;;  %v281_v13 = vld [vmem:[%s1691_s20 + $0x100] sm:$0xff]  ;;  %v250_v14 = vld [vmem:[%s1691_s20 + $0x8] sm:$0xff]  ;;  %v251_v15 = vld [vmem:[%s1691_s20 + $0x10] sm:$0xff] }
  0x15   : > { %1575 = vmatpush3.bf16.msra.mxu0 %v1572_v3  ;;  %1588 = vmatprep.subr.bf16.mxu1 %v1572_v3  ;;  %v282_v16 = vld [vmem:[%s1691_s20 + $0x108] sm:$0xff]  ;;  %v283_v17 = vld [vmem:[%s1691_s20 + $0x110] sm:$0xff]  ;;  %v252_v18 = vld [vmem:[%s1691_s20 + $0x18] sm:$0xff] }
  0x16   : > { %1577 = vmatprep.subr.bf16.mxu0 %v1576_v5  ;;  %1592 = vmatpush3.bf16.msra.mxu1 %v1572_v3  ;;  %v253_v19 = vld [vmem:[%s1691_s20 + $0x20] sm:$0xff]  ;;  %v284_v20 = vld [vmem:[%s1691_s20 + $0x118] sm:$0xff]  ;;  %v254_v22 = vld [vmem:[%s1691_s20 + $0x28] sm:$0xff] }
  0x17   : > { %1589 = vmatprep.subr.bf16.mxu1 %v1576_v5  ;;  %1524 = vmatprep.mubr.msk.f32.mxu1 %vm321_vm0, %v281_v13  ;;  %v285_v21 = vld [vmem:[%s1691_s20 + $0x120] sm:$0xff]  ;;  %v255_v23 = vld [vmem:[%s1691_s20 + $0x30] sm:$0xff]  ;;  %v286_v24 = vld [vmem:[%s1691_s20 + $0x128] sm:$0xff] }
  0x18   : > { %v287_v25 = vld [vmem:[%s1691_s20 + $0x130] sm:$0xff]  ;;  %v256_v26 = vld [vmem:[%s1691_s20 + $0x38] sm:$0xff]  ;;  %v257_v27 = vld [vmem:[%s1691_s20 + $0x40] sm:$0xff] }
  0x19   : > { %1579 = vmatpush3.bf16.msra.mxu0 %v1576_v5  ;;  %v288_v28 = vld [vmem:[%s1691_s20 + $0x138] sm:$0xff]  ;;  %v289_v29 = vld [vmem:[%s1691_s20 + $0x140] sm:$0xff]  ;;  %v258_v30 = vld [vmem:[%s1691_s20 + $0x48] sm:$0xff] }
  0x1a   : > { %1581 = vmatprep.subr.bf16.mxu0 %v1580_v9  ;;  %1593 = vmatpush3.bf16.msra.mxu1 %v1576_v5  ;;  %v259_v31 = vld [vmem:[%s1691_s20 + $0x50] sm:$0xff]  ;;  %v290_v32 = vld [vmem:[%s1691_s20 + $0x148] sm:$0xff]  ;;  %v260_v34 = vld [vmem:[%s1691_s20 + $0x58] sm:$0xff] }
  0x1b   : > { %1590 = vmatprep.subr.bf16.mxu1 %v1580_v9  ;;  %v291_v33 = vld [vmem:[%s1691_s20 + $0x150] sm:$0xff]  ;;  %v261_v35 = vld [vmem:[%s1691_s20 + $0x60] sm:$0xff]  ;;  %v292_v36 = vld [vmem:[%s1691_s20 + $0x158] sm:$0xff] }
  0x1c   : > { %v293_v37 = vld [vmem:[%s1691_s20 + $0x160] sm:$0xff]  ;;  %v262_v38 = vld [vmem:[%s1691_s20 + $0x68] sm:$0xff]  ;;  %v263_v39 = vld [vmem:[%s1691_s20 + $0x70] sm:$0xff] }
  0x1d   : > { %1583 = vmatpush3.bf16.msra.mxu0 %v1580_v9  ;;  %v294_v40 = vld [vmem:[%s1691_s20 + $0x168] sm:$0xff]  ;;  %v295_v41 = vld [vmem:[%s1691_s20 + $0x170] sm:$0xff]  ;;  %v264_v42 = vld [vmem:[%s1691_s20 + $0x78] sm:$0xff] }
  0x1e   : > { %1585 = vmatprep.subr.bf16.mxu0 %v1584_v12  ;;  %1594 = vmatpush3.bf16.msra.mxu1 %v1580_v9  ;;  %v265_v43 = vld [vmem:[%s1691_s20 + $0x80] sm:$0xff]  ;;  %v296_v44 = vld [vmem:[%s1691_s20 + $0x178] sm:$0xff]  ;;  %v266_v46 = vld [vmem:[%s1691_s20 + $0x88] sm:$0xff] }
  0x1f   : > { %1591 = vmatprep.subr.bf16.mxu1 %v1584_v12  ;;  %v297_v45 = vld [vmem:[%s1691_s20 + $0x180] sm:$0xff]  ;;  %v267_v47 = vld [vmem:[%s1691_s20 + $0x90] sm:$0xff]  ;;  %v298_v48 = vld [vmem:[%s1691_s20 + $0x188] sm:$0xff] }
  0x20   : > { %v299_v49 = vld [vmem:[%s1691_s20 + $0x190] sm:$0xff]  ;;  %v268_v50 = vld [vmem:[%s1691_s20 + $0x98] sm:$0xff]  ;;  %v269_v51 = vld [vmem:[%s1691_s20 + $0xa0] sm:$0xff] }
  0x21   : > { %1587 = vmatpush3.bf16.msra.mxu0 %v1584_v12  ;;  %v300_v52 = vld [vmem:[%s1691_s20 + $0x198] sm:$0xff]  ;;  %v301_v53 = vld [vmem:[%s1691_s20 + $0x1a0] sm:$0xff]  ;;  %v270_v54 = vld [vmem:[%s1691_s20 + $0xa8] sm:$0xff] }
  0x22   : > { %1595 = vmatpush3.bf16.msra.mxu1 %v1584_v12  ;;  %v271_v55 = vld [vmem:[%s1691_s20 + $0xb0] sm:$0xff]  ;;  %v302_v56 = vld [vmem:[%s1691_s20 + $0x1a8] sm:$0xff]  ;;  %v272_v58 = vld [vmem:[%s1691_s20 + $0xb8] sm:$0xff] }
  0x23   : > { %v303_v57 = vld [vmem:[%s1691_s20 + $0x1b0] sm:$0xff]  ;;  %v273_v59 = vld [vmem:[%s1691_s20 + $0xc0] sm:$0xff]  ;;  %v304_v60 = vld [vmem:[%s1691_s20 + $0x1b8] sm:$0xff] }
  0x24   : > { %1477 = vmatmul.mubr.msk.f32.vlgmr.msra.gmra.mrb[0].mxu0 %vm321_vm0, %v250_v14  ;;  %v305_v61 = vld [vmem:[%s1691_s20 + $0x1c0] sm:$0xff]  ;;  %v274_v62 = vld [vmem:[%s1691_s20 + $0xc8] sm:$0xff]  ;;  %v275_v63 = vld [vmem:[%s1691_s20 + $0xd0] sm:$0xff] }
  0x25   : > { %1479 = vmatprep.mubr.msk.f32.mxu0 %vm321_vm0, %v251_v15  ;;  %1525 = vmatmul.mubr.msk.f32.vlgmr.msra.gmra.mrb[0].mxu1 %vm321_vm0, %v282_v16  ;;  %v306_v0 = vld [vmem:[%s1691_s20 + $0x1c8] sm:$0xff]  ;;  %v307_v1 = vld [vmem:[%s1691_s20 + $0x1d0] sm:$0xff]  ;;  %v276_v2 = vld [vmem:[%s1691_s20 + $0xd8] sm:$0xff] }
  0x26   : > { %1527 = vmatprep.mubr.msk.f32.mxu1 %vm321_vm0, %v283_v17  ;;  %v277_v3 = vld [vmem:[%s1691_s20 + $0xe0] sm:$0xff]  ;;  %v308_v4 = vld [vmem:[%s1691_s20 + $0x1d8] sm:$0xff]  ;;  %v278_v6 = vld [vmem:[%s1691_s20 + $0xe8] sm:$0xff] }
  0x27   : > { %v309_v5 = vld [vmem:[%s1691_s20 + $0x1e0] sm:$0xff]  ;;  %v279_v7 = vld [vmem:[%s1691_s20 + $0xf0] sm:$0xff]  ;;  %v310_v8 = vld [vmem:[%s1691_s20 + $0x1e8] sm:$0xff] }
  0x28   : > { %1480 = vmatmul.mubr.msk.f32.gmra.mrb[2].mxu0 %vm321_vm0, %v252_v18  ;;  %v311_v9 = vld [vmem:[%s1691_s20 + $0x1f0] sm:$0xff]  ;;  %v280_v10 = vld [vmem:[%s1691_s20 + $0xf8] sm:$0xff] }
  0x29   : > { %1482 = vmatprep.mubr.msk.f32.mxu0 %vm321_vm0, %v253_v19  ;;  %1528 = vmatmul.mubr.msk.f32.gmra.mrb[2].mxu1 %vm321_vm0, %v284_v20  ;;  %v312_v11 = vld [vmem:[%s1691_s20 + $0x1f8] sm:$0xff] }
  0x2a   : > { %1530 = vmatprep.mubr.msk.f32.mxu1 %vm321_vm0, %v285_v21 }
  0x2c   : > { %1483 = vmatmul.mubr.msk.f32.gmra.mrb[4].mxu0 %vm321_vm0, %v254_v22 }
  0x2d   : > { %1485 = vmatprep.mubr.msk.f32.mxu0 %vm321_vm0, %v255_v23  ;;  %1531 = vmatmul.mubr.msk.f32.gmra.mrb[4].mxu1 %vm321_vm0, %v286_v24 }
  0x2e   : > { %1533 = vmatprep.mubr.msk.f32.mxu1 %vm321_vm0, %v287_v25 }
  0x30   : > { %1486 = vmatmul.mubr.msk.f32.gmra.mrb[6].mxu0 %vm321_vm0, %v256_v26 }
  0x31   : > { %1488 = vmatprep.mubr.msk.f32.mxu0 %vm321_vm0, %v257_v27  ;;  %1534 = vmatmul.mubr.msk.f32.gmra.mrb[6].mxu1 %vm321_vm0, %v288_v28 }
  0x32   : > { %1536 = vmatprep.mubr.msk.f32.mxu1 %vm321_vm0, %v289_v29 }
  0x34   : > { %1489 = vmatmul.mubr.msk.f32.gmra.mrb[8].mxu0 %vm321_vm0, %v258_v30 }
  0x35   : > { %1491 = vmatprep.mubr.msk.f32.mxu0 %vm321_vm0, %v259_v31  ;;  %1537 = vmatmul.mubr.msk.f32.gmra.mrb[8].mxu1 %vm321_vm0, %v290_v32 }
  0x36   : > { %1539 = vmatprep.mubr.msk.f32.mxu1 %vm321_vm0, %v291_v33 }
  0x38   : > { %1492 = vmatmul.mubr.msk.f32.gmra.mrb[10].mxu0 %vm321_vm0, %v260_v34 }
  0x39   : > { %1494 = vmatprep.mubr.msk.f32.mxu0 %vm321_vm0, %v261_v35  ;;  %1540 = vmatmul.mubr.msk.f32.gmra.mrb[10].mxu1 %vm321_vm0, %v292_v36 }
  0x3a   : > { %1542 = vmatprep.mubr.msk.f32.mxu1 %vm321_vm0, %v293_v37 }
  0x3c   : > { %1495 = vmatmul.mubr.msk.f32.gmra.mrb[12].mxu0 %vm321_vm0, %v262_v38 }
  0x3d   : > { %1497 = vmatprep.mubr.msk.f32.mxu0 %vm321_vm0, %v263_v39  ;;  %1543 = vmatmul.mubr.msk.f32.gmra.mrb[12].mxu1 %vm321_vm0, %v294_v40 }
  0x3e   : > { %1545 = vmatprep.mubr.msk.f32.mxu1 %vm321_vm0, %v295_v41 }
  0x40   : > { %1498 = vmatmul.mubr.msk.f32.gmra.mrb[14].mxu0 %vm321_vm0, %v264_v42 }
  0x41   : > { %1500 = vmatprep.mubr.msk.f32.mxu0 %vm321_vm0, %v265_v43  ;;  %1546 = vmatmul.mubr.msk.f32.gmra.mrb[14].mxu1 %vm321_vm0, %v296_v44 }
  0x42   : > { %1548 = vmatprep.mubr.msk.f32.mxu1 %vm321_vm0, %v297_v45 }
  0x44   : > { %1501 = vmatmul.mubr.msk.f32.gmra.mrb[16].mxu0 %vm321_vm0, %v266_v46 }
  0x45   : > { %1503 = vmatprep.mubr.msk.f32.mxu0 %vm321_vm0, %v267_v47  ;;  %1549 = vmatmul.mubr.msk.f32.gmra.mrb[16].mxu1 %vm321_vm0, %v298_v48 }
  0x46   : > { %1551 = vmatprep.mubr.msk.f32.mxu1 %vm321_vm0, %v299_v49 }
  0x48   : > { %1504 = vmatmul.mubr.msk.f32.gmra.mrb[18].mxu0 %vm321_vm0, %v268_v50 }
  0x49   : > { %1506 = vmatprep.mubr.msk.f32.mxu0 %vm321_vm0, %v269_v51  ;;  %1552 = vmatmul.mubr.msk.f32.gmra.mrb[18].mxu1 %vm321_vm0, %v300_v52 }
  0x4a   : > { %1554 = vmatprep.mubr.msk.f32.mxu1 %vm321_vm0, %v301_v53 }
  0x4c   : > { %1507 = vmatmul.mubr.msk.f32.gmra.mrb[20].mxu0 %vm321_vm0, %v270_v54 }
  0x4d   : > { %1509 = vmatprep.mubr.msk.f32.mxu0 %vm321_vm0, %v271_v55  ;;  %1555 = vmatmul.mubr.msk.f32.gmra.mrb[20].mxu1 %vm321_vm0, %v302_v56 }
  0x4e   : > { %1557 = vmatprep.mubr.msk.f32.mxu1 %vm321_vm0, %v303_v57 }
  0x50   : > { %1510 = vmatmul.mubr.msk.f32.gmra.mrb[22].mxu0 %vm321_vm0, %v272_v58 }
  0x51   : > { %1512 = vmatprep.mubr.msk.f32.mxu0 %vm321_vm0, %v273_v59  ;;  %1558 = vmatmul.mubr.msk.f32.gmra.mrb[22].mxu1 %vm321_vm0, %v304_v60 }
  0x52   : > { %1560 = vmatprep.mubr.msk.f32.mxu1 %vm321_vm0, %v305_v61 }
  0x54   : > { %1513 = vmatmul.mubr.msk.f32.gmra.mrb[24].mxu0 %vm321_vm0, %v274_v62 }
  0x55   : > { %1515 = vmatprep.mubr.msk.f32.mxu0 %vm321_vm0, %v275_v63  ;;  %1561 = vmatmul.mubr.msk.f32.gmra.mrb[24].mxu1 %vm321_vm0, %v306_v0 }
  0x56   : > { %1563 = vmatprep.mubr.msk.f32.mxu1 %vm321_vm0, %v307_v1 }
  0x58   : > { %1516 = vmatmul.mubr.msk.f32.gmra.mrb[26].mxu0 %vm321_vm0, %v276_v2 }
  0x59   : > { %1518 = vmatprep.mubr.msk.f32.mxu0 %vm321_vm0, %v277_v3  ;;  %1564 = vmatmul.mubr.msk.f32.gmra.mrb[26].mxu1 %vm321_vm0, %v308_v4 }
  0x5a   : > { %1566 = vmatprep.mubr.msk.f32.mxu1 %vm321_vm0, %v309_v5 }
  0x5c   : > { %1519 = vmatmul.mubr.msk.f32.gmra.mrb[28].mxu0 %vm321_vm0, %v278_v6 }
  0x5d   : > { %1521 = vmatprep.mubr.msk.f32.mxu0 %vm321_vm0, %v279_v7  ;;  %1567 = vmatmul.mubr.msk.f32.gmra.mrb[28].mxu1 %vm321_vm0, %v310_v8 }
  0x5e   : > { %1569 = vmatprep.mubr.msk.f32.mxu1 %vm321_vm0, %v311_v9 }
  0x60   : > { %1522 = vmatmul.mubr.msk.f32.gmra.mrb[30].mxu0 %vm321_vm0, %v280_v10 }
  0x61   : > { %1570 = vmatmul.mubr.msk.f32.gmra.mrb[30].mxu1 %vm321_vm0, %v312_v11 }
  0xf7   : > { %v1478_v12 = vpop.f32.mrb[0].mxu0 }
  0xf8   : > { %900 = vst [vmem:[%s1829_s26 + $0x8] sm:$0xff] %v1478_v12  ;;  %v1034_v13 = vmul.f32 %v1478_v12, %v1478_v12  ;;  %v580_v14 = vpop.f32.mrb[1].mxu0  ;;  %v1832_v15 = vpop.f32.mrb[0].mxu1 }
  0xf9   : > { %899 = vst [vmem:[%s1829_s26] sm:$0xff] %v580_v14  ;;  %v963_v16 = vadd.f32 %v1478_v12, %v580_v14  ;;  %v1033_v17 = vmul.f32 %v580_v14, %v580_v14  ;;  %932 = vst [vmem:[%s1829_s26 + $0x108] sm:$0xff] %v1832_v15  ;;  %v1837_v18 = vpop.f32.mrb[1].mxu1 }
  0xfa   : > { %931 = vst [vmem:[%s1829_s26 + $0x100] sm:$0xff] %v1837_v18 }
  0xfb   : > { %v1097_v19 = vadd.f32 %v1034_v13, %v1033_v17  ;;  %v1481_v20 = vpop.f32.mrb[2].mxu0 }
  0xfc   : > { %902 = vst [vmem:[%s1829_s26 + $0x18] sm:$0xff] %v1481_v20  ;;  %v590_v21 = vpop.f32.mrb[3].mxu0  ;;  %v1842_v22 = vpop.f32.mrb[2].mxu1  ;;  %v1036_v26 = vmul.f32 %v1481_v20, %v1481_v20 }
  0xfd   : > { %901 = vst [vmem:[%s1829_s26 + $0x10] sm:$0xff] %v590_v21  ;;  %v964_v23 = vadd.f32 %v963_v16, %v590_v21  ;;  %v1035_v24 = vmul.f32 %v590_v21, %v590_v21  ;;  %934 = vst [vmem:[%s1829_s26 + $0x118] sm:$0xff] %v1842_v22  ;;  %v1847_v25 = vpop.f32.mrb[3].mxu1 }
  0xfe   : > { %933 = vst [vmem:[%s1829_s26 + $0x110] sm:$0xff] %v1847_v25 }
  0xff   : > { %v1098_v27 = vadd.f32 %v1097_v19, %v1035_v24  ;;  %v1484_v28 = vpop.f32.mrb[4].mxu0  ;;  %v965_v29 = vadd.f32 %v1481_v20, %v964_v23 }
 0x100   : > { %904 = vst [vmem:[%s1829_s26 + $0x28] sm:$0xff] %v1484_v28  ;;  %v600_v30 = vpop.f32.mrb[5].mxu0  ;;  %v1852_v31 = vpop.f32.mrb[4].mxu1  ;;  %v1038_v36 = vmul.f32 %v1484_v28, %v1484_v28 }
 0x101   : > { %903 = vst [vmem:[%s1829_s26 + $0x20] sm:$0xff] %v600_v30  ;;  %v966_v32 = vadd.f32 %v965_v29, %v600_v30  ;;  %v1037_v33 = vmul.f32 %v600_v30, %v600_v30  ;;  %v1099_v34 = vadd.f32 %v1098_v27, %v1036_v26  ;;  %936 = vst [vmem:[%s1829_s26 + $0x128] sm:$0xff] %v1852_v31  ;;  %v1857_v35 = vpop.f32.mrb[5].mxu1 }
 0x102   : > { %935 = vst [vmem:[%s1829_s26 + $0x120] sm:$0xff] %v1857_v35 }
 0x103   : > { %v1100_v37 = vadd.f32 %v1099_v34, %v1037_v33  ;;  %v1487_v38 = vpop.f32.mrb[6].mxu0  ;;  %v967_v39 = vadd.f32 %v1484_v28, %v966_v32 }
 0x104   : > { %906 = vst [vmem:[%s1829_s26 + $0x38] sm:$0xff] %v1487_v38  ;;  %v610_v40 = vpop.f32.mrb[7].mxu0  ;;  %v1862_v41 = vpop.f32.mrb[6].mxu1  ;;  %v1040_v46 = vmul.f32 %v1487_v38, %v1487_v38 }
 0x105   : > { %905 = vst [vmem:[%s1829_s26 + $0x30] sm:$0xff] %v610_v40  ;;  %v968_v42 = vadd.f32 %v967_v39, %v610_v40  ;;  %v1039_v43 = vmul.f32 %v610_v40, %v610_v40  ;;  %v1101_v44 = vadd.f32 %v1100_v37, %v1038_v36  ;;  %938 = vst [vmem:[%s1829_s26 + $0x138] sm:$0xff] %v1862_v41  ;;  %v1867_v45 = vpop.f32.mrb[7].mxu1 }
 0x106   : > { %937 = vst [vmem:[%s1829_s26 + $0x130] sm:$0xff] %v1867_v45 }
 0x107   : > { %v1102_v47 = vadd.f32 %v1101_v44, %v1039_v43  ;;  %v1490_v48 = vpop.f32.mrb[8].mxu0  ;;  %v969_v49 = vadd.f32 %v1487_v38, %v968_v42 }
 0x108   : > { %908 = vst [vmem:[%s1829_s26 + $0x48] sm:$0xff] %v1490_v48  ;;  %v620_v50 = vpop.f32.mrb[9].mxu0  ;;  %v1872_v51 = vpop.f32.mrb[8].mxu1  ;;  %v1042_v56 = vmul.f32 %v1490_v48, %v1490_v48 }
 0x109   : > { %907 = vst [vmem:[%s1829_s26 + $0x40] sm:$0xff] %v620_v50  ;;  %v970_v52 = vadd.f32 %v969_v49, %v620_v50  ;;  %v1041_v53 = vmul.f32 %v620_v50, %v620_v50  ;;  %v1103_v54 = vadd.f32 %v1102_v47, %v1040_v46  ;;  %940 = vst [vmem:[%s1829_s26 + $0x148] sm:$0xff] %v1872_v51  ;;  %v1877_v55 = vpop.f32.mrb[9].mxu1 }
 0x10a   : > { %939 = vst [vmem:[%s1829_s26 + $0x140] sm:$0xff] %v1877_v55 }
 0x10b   : > { %v1104_v57 = vadd.f32 %v1103_v54, %v1041_v53  ;;  %v1493_v58 = vpop.f32.mrb[10].mxu0  ;;  %v971_v59 = vadd.f32 %v1490_v48, %v970_v52 }
 0x10c   : > { %910 = vst [vmem:[%s1829_s26 + $0x58] sm:$0xff] %v1493_v58  ;;  %v630_v60 = vpop.f32.mrb[11].mxu0  ;;  %v1882_v61 = vpop.f32.mrb[10].mxu1  ;;  %v1044_v2 = vmul.f32 %v1493_v58, %v1493_v58 }
 0x10d   : > { %909 = vst [vmem:[%s1829_s26 + $0x50] sm:$0xff] %v630_v60  ;;  %v972_v62 = vadd.f32 %v971_v59, %v630_v60  ;;  %v1043_v63 = vmul.f32 %v630_v60, %v630_v60  ;;  %v1105_v0 = vadd.f32 %v1104_v57, %v1042_v56  ;;  %942 = vst [vmem:[%s1829_s26 + $0x158] sm:$0xff] %v1882_v61  ;;  %v1887_v1 = vpop.f32.mrb[11].mxu1 }
 0x10e   : > { %941 = vst [vmem:[%s1829_s26 + $0x150] sm:$0xff] %v1887_v1 }
 0x10f   : > { %v1106_v3 = vadd.f32 %v1105_v0, %v1043_v63  ;;  %v1496_v4 = vpop.f32.mrb[12].mxu0  ;;  %v973_v5 = vadd.f32 %v1493_v58, %v972_v62 }
 0x110   : > { %912 = vst [vmem:[%s1829_s26 + $0x68] sm:$0xff] %v1496_v4  ;;  %v640_v6 = vpop.f32.mrb[13].mxu0  ;;  %v1892_v7 = vpop.f32.mrb[12].mxu1  ;;  %v1046_v12 = vmul.f32 %v1496_v4, %v1496_v4 }
 0x111   : > { %911 = vst [vmem:[%s1829_s26 + $0x60] sm:$0xff] %v640_v6  ;;  %v974_v8 = vadd.f32 %v973_v5, %v640_v6  ;;  %v1045_v9 = vmul.f32 %v640_v6, %v640_v6  ;;  %v1107_v10 = vadd.f32 %v1106_v3, %v1044_v2  ;;  %944 = vst [vmem:[%s1829_s26 + $0x168] sm:$0xff] %v1892_v7  ;;  %v1897_v11 = vpop.f32.mrb[13].mxu1 }
 0x112   : > { %943 = vst [vmem:[%s1829_s26 + $0x160] sm:$0xff] %v1897_v11 }
 0x113   : > { %v1108_v13 = vadd.f32 %v1107_v10, %v1045_v9  ;;  %v1499_v14 = vpop.f32.mrb[14].mxu0  ;;  %v975_v16 = vadd.f32 %v1496_v4, %v974_v8 }
 0x114   : > { %914 = vst [vmem:[%s1829_s26 + $0x78] sm:$0xff] %v1499_v14  ;;  %v650_v17 = vpop.f32.mrb[15].mxu0  ;;  %v1902_v19 = vpop.f32.mrb[14].mxu1  ;;  %v1048_v26 = vmul.f32 %v1499_v14, %v1499_v14 }
 0x115   : > { %913 = vst [vmem:[%s1829_s26 + $0x70] sm:$0xff] %v650_v17  ;;  %v976_v20 = vadd.f32 %v975_v16, %v650_v17  ;;  %v1047_v21 = vmul.f32 %v650_v17, %v650_v17  ;;  %v1109_v23 = vadd.f32 %v1108_v13, %v1046_v12  ;;  %946 = vst [vmem:[%s1829_s26 + $0x178] sm:$0xff] %v1902_v19  ;;  %v1907_v24 = vpop.f32.mrb[15].mxu1 }
 0x116   : > { %945 = vst [vmem:[%s1829_s26 + $0x170] sm:$0xff] %v1907_v24 }
 0x117   : > { %v1110_v27 = vadd.f32 %v1109_v23, %v1047_v21  ;;  %v1502_v28 = vpop.f32.mrb[16].mxu0  ;;  %v977_v29 = vadd.f32 %v1499_v14, %v976_v20 }
 0x118   : > { %916 = vst [vmem:[%s1829_s26 + $0x88] sm:$0xff] %v1502_v28  ;;  %v660_v30 = vpop.f32.mrb[17].mxu0  ;;  %v1912_v32 = vpop.f32.mrb[16].mxu1  ;;  %v1050_v38 = vmul.f32 %v1502_v28, %v1502_v28 }
 0x119   : > { %915 = vst [vmem:[%s1829_s26 + $0x80] sm:$0xff] %v660_v30  ;;  %v978_v33 = vadd.f32 %v977_v29, %v660_v30  ;;  %v1049_v34 = vmul.f32 %v660_v30, %v660_v30  ;;  %v1111_v36 = vadd.f32 %v1110_v27, %v1048_v26  ;;  %948 = vst [vmem:[%s1829_s26 + $0x188] sm:$0xff] %v1912_v32  ;;  %v1917_v37 = vpop.f32.mrb[17].mxu1 }
 0x11a   : > { %947 = vst [vmem:[%s1829_s26 + $0x180] sm:$0xff] %v1917_v37 }
 0x11b   : > { %v1112_v39 = vadd.f32 %v1111_v36, %v1049_v34  ;;  %v1505_v40 = vpop.f32.mrb[18].mxu0  ;;  %v979_v42 = vadd.f32 %v1502_v28, %v978_v33 }
 0x11c   : > { %918 = vst [vmem:[%s1829_s26 + $0x98] sm:$0xff] %v1505_v40  ;;  %v670_v43 = vpop.f32.mrb[19].mxu0  ;;  %v1922_v44 = vpop.f32.mrb[18].mxu1  ;;  %v1052_v50 = vmul.f32 %v1505_v40, %v1505_v40 }
 0x11d   : > { %917 = vst [vmem:[%s1829_s26 + $0x90] sm:$0xff] %v670_v43  ;;  %v980_v46 = vadd.f32 %v979_v42, %v670_v43  ;;  %v1051_v47 = vmul.f32 %v670_v43, %v670_v43  ;;  %v1113_v48 = vadd.f32 %v1112_v39, %v1050_v38  ;;  %950 = vst [vmem:[%s1829_s26 + $0x198] sm:$0xff] %v1922_v44  ;;  %v1927_v49 = vpop.f32.mrb[19].mxu1 }
 0x11e   : > { %949 = vst [vmem:[%s1829_s26 + $0x190] sm:$0xff] %v1927_v49 }
 0x11f   : > { %v1114_v52 = vadd.f32 %v1113_v48, %v1051_v47  ;;  %v1508_v53 = vpop.f32.mrb[20].mxu0  ;;  %v981_v54 = vadd.f32 %v1505_v40, %v980_v46 }
 0x120   : > { %920 = vst [vmem:[%s1829_s26 + $0xa8] sm:$0xff] %v1508_v53  ;;  %v680_v56 = vpop.f32.mrb[21].mxu0  ;;  %v1932_v57 = vpop.f32.mrb[20].mxu1  ;;  %v1054_v63 = vmul.f32 %v1508_v53, %v1508_v53 }
 0x121   : > { %919 = vst [vmem:[%s1829_s26 + $0xa0] sm:$0xff] %v680_v56  ;;  %v982_v58 = vadd.f32 %v981_v54, %v680_v56  ;;  %v1053_v59 = vmul.f32 %v680_v56, %v680_v56  ;;  %v1115_v60 = vadd.f32 %v1114_v52, %v1052_v50  ;;  %952 = vst [vmem:[%s1829_s26 + $0x1a8] sm:$0xff] %v1932_v57  ;;  %v1937_v62 = vpop.f32.mrb[21].mxu1 }
 0x122   : > { %951 = vst [vmem:[%s1829_s26 + $0x1a0] sm:$0xff] %v1937_v62 }
 0x123   : > { %v1116_v0 = vadd.f32 %v1115_v60, %v1053_v59  ;;  %v1511_v2 = vpop.f32.mrb[22].mxu0  ;;  %v983_v3 = vadd.f32 %v1508_v53, %v982_v58 }
 0x124   : > { %922 = vst [vmem:[%s1829_s26 + $0xb8] sm:$0xff] %v1511_v2  ;;  %v690_v4 = vpop.f32.mrb[23].mxu0  ;;  %v1942_v5 = vpop.f32.mrb[22].mxu1  ;;  %v1056_v12 = vmul.f32 %v1511_v2, %v1511_v2 }
 0x125   : > { %921 = vst [vmem:[%s1829_s26 + $0xb0] sm:$0xff] %v690_v4  ;;  %v984_v6 = vadd.f32 %v983_v3, %v690_v4  ;;  %v1055_v8 = vmul.f32 %v690_v4, %v690_v4  ;;  %v1117_v9 = vadd.f32 %v1116_v0, %v1054_v63  ;;  %954 = vst [vmem:[%s1829_s26 + $0x1b8] sm:$0xff] %v1942_v5  ;;  %v1947_v10 = vpop.f32.mrb[23].mxu1 }
 0x126   : > { %953 = vst [vmem:[%s1829_s26 + $0x1b0] sm:$0xff] %v1947_v10 }
 0x127   : > { %v1118_v13 = vadd.f32 %v1117_v9, %v1055_v8  ;;  %v1514_v14 = vpop.f32.mrb[24].mxu0  ;;  %v985_v16 = vadd.f32 %v1511_v2, %v984_v6 }
 0x128   : > { %924 = vst [vmem:[%s1829_s26 + $0xc8] sm:$0xff] %v1514_v14  ;;  %v700_v17 = vpop.f32.mrb[25].mxu0  ;;  %v1952_v20 = vpop.f32.mrb[24].mxu1  ;;  %v1058_v28 = vmul.f32 %v1514_v14, %v1514_v14 }
 0x129   : > { %923 = vst [vmem:[%s1829_s26 + $0xc0] sm:$0xff] %v700_v17  ;;  %v986_v21 = vadd.f32 %v985_v16, %v700_v17  ;;  %v1057_v23 = vmul.f32 %v700_v17, %v700_v17  ;;  %v1119_v26 = vadd.f32 %v1118_v13, %v1056_v12  ;;  %956 = vst [vmem:[%s1829_s26 + $0x1c8] sm:$0xff] %v1952_v20  ;;  %v1957_v27 = vpop.f32.mrb[25].mxu1 }
 0x12a   : > { %955 = vst [vmem:[%s1829_s26 + $0x1c0] sm:$0xff] %v1957_v27  ;;  %v1065_v16 = vmul.f32 %v1837_v18, %v1837_v18 }
 0x12b   : > { %v1120_v29 = vadd.f32 %v1119_v26, %v1057_v23  ;;  %v1517_v30 = vpop.f32.mrb[26].mxu0  ;;  %v987_v33 = vadd.f32 %v1514_v14, %v986_v21  ;;  %v1066_v23 = vmul.f32 %v1832_v15, %v1832_v15 }
 0x12c   : > { %926 = vst [vmem:[%s1829_s26 + $0xd8] sm:$0xff] %v1517_v30  ;;  %v710_v34 = vpop.f32.mrb[27].mxu0  ;;  %v1962_v36 = vpop.f32.mrb[26].mxu1  ;;  %v1060_v43 = vmul.f32 %v1517_v30, %v1517_v30 }
 0x12d   : > { %925 = vst [vmem:[%s1829_s26 + $0xd0] sm:$0xff] %v710_v34  ;;  %v988_v38 = vadd.f32 %v987_v33, %v710_v34  ;;  %v1059_v39 = vmul.f32 %v710_v34, %v710_v34  ;;  %v1121_v40 = vadd.f32 %v1120_v29, %v1058_v28  ;;  %958 = vst [vmem:[%s1829_s26 + $0x1d8] sm:$0xff] %v1962_v36  ;;  %v1967_v42 = vpop.f32.mrb[27].mxu1 }
 0x12e   : > { %957 = vst [vmem:[%s1829_s26 + $0x1d0] sm:$0xff] %v1967_v42  ;;  %v1067_v29 = vmul.f32 %v1847_v25, %v1847_v25  ;;  %v1068_v34 = vmul.f32 %v1842_v22, %v1842_v22 }
 0x12f   : > { %v1122_v46 = vadd.f32 %v1121_v40, %v1059_v39  ;;  %v1520_v47 = vpop.f32.mrb[28].mxu0  ;;  %v989_v48 = vadd.f32 %v1517_v30, %v988_v38 }
 0x130   : > { %928 = vst [vmem:[%s1829_s26 + $0xe8] sm:$0xff] %v1520_v47  ;;  %v720_v50 = vpop.f32.mrb[29].mxu0  ;;  %v1972_v52 = vpop.f32.mrb[28].mxu1  ;;  %v1062_v59 = vmul.f32 %v1520_v47, %v1520_v47 }
 0x131   : > { %927 = vst [vmem:[%s1829_s26 + $0xe0] sm:$0xff] %v720_v50  ;;  %v990_v53 = vadd.f32 %v989_v48, %v720_v50  ;;  %v1061_v54 = vmul.f32 %v720_v50, %v720_v50  ;;  %v1123_v56 = vadd.f32 %v1122_v46, %v1060_v43  ;;  %960 = vst [vmem:[%s1829_s26 + $0x1e8] sm:$0xff] %v1972_v52  ;;  %v1977_v58 = vpop.f32.mrb[29].mxu1 }
 0x132   : > { %959 = vst [vmem:[%s1829_s26 + $0x1e0] sm:$0xff] %v1977_v58 }
 0x133   : > { %v1124_v60 = vadd.f32 %v1123_v56, %v1061_v54  ;;  %v1523_v63 = vpop.f32.mrb[30].mxu0  ;;  %v991_v0 = vadd.f32 %v1520_v47, %v990_v53 }
 0x134   : > { %930 = vst [vmem:[%s1829_s26 + $0xf8] sm:$0xff] %v1523_v63  ;;  %v730_v2 = vpop.f32.mrb[31].mxu0  ;;  %v1982_v3 = vpop.f32.mrb[30].mxu1  ;;  %v1064_v12 = vmul.f32 %v1523_v63, %v1523_v63 }
 0x135   : > { %929 = vst [vmem:[%s1829_s26 + $0xf0] sm:$0xff] %v730_v2  ;;  %v992_v4 = vadd.f32 %v991_v0, %v730_v2  ;;  %v1063_v6 = vmul.f32 %v730_v2, %v730_v2  ;;  %v1125_v8 = vadd.f32 %v1124_v60, %v1062_v59  ;;  %962 = vst [vmem:[%s1829_s26 + $0x1f8] sm:$0xff] %v1982_v3  ;;  %v1987_v9 = vpop.f32.mrb[31].mxu1 }
 0x136   : > { %961 = vst [vmem:[%s1829_s26 + $0x1f0] sm:$0xff] %v1987_v9 }
 0x137   : > { %v993_v13 = vadd.f32 %v1523_v63, %v992_v4  ;;  %v1126_v14 = vadd.f32 %v1125_v8, %v1063_v6 }
 0x139   : > { %v1127_v17 = vadd.f32 %v1126_v14, %v1064_v12  ;;  %v994_v21 = vadd.f32 %v993_v13, %v1837_v18  ;;  %v1069_v18 = vmul.f32 %v1857_v35, %v1857_v35 }
 0x13b   : > { %v1128_v26 = vadd.f32 %v1127_v17, %v1065_v16  ;;  %v995_v28 = vadd.f32 %v1832_v15, %v994_v21  ;;  %v1070_v15 = vmul.f32 %v1852_v31, %v1852_v31 }
 0x13d   : > { %v996_v30 = vadd.f32 %v995_v28, %v1847_v25  ;;  %v1129_v33 = vadd.f32 %v1128_v26, %v1066_v23  ;;  %v1071_v25 = vmul.f32 %v1867_v45, %v1867_v45 }
 0x13f   : > { %v1130_v38 = vadd.f32 %v1129_v33, %v1067_v29  ;;  %v997_v39 = vadd.f32 %v1842_v22, %v996_v30  ;;  %v1072_v22 = vmul.f32 %v1862_v41, %v1862_v41 }
 0x141   : > { %v998_v40 = vadd.f32 %v997_v39, %v1857_v35  ;;  %v1131_v43 = vadd.f32 %v1130_v38, %v1068_v34  ;;  %v1073_v35 = vmul.f32 %v1877_v55, %v1877_v55 }
 0x143   : > { %v1132_v46 = vadd.f32 %v1131_v43, %v1069_v18  ;;  %v999_v47 = vadd.f32 %v1852_v31, %v998_v40  ;;  %v1074_v31 = vmul.f32 %v1872_v51, %v1872_v51 }
 0x145   : > { %v1000_v48 = vadd.f32 %v999_v47, %v1867_v45  ;;  %v1133_v50 = vadd.f32 %v1132_v46, %v1070_v15  ;;  %v1075_v45 = vmul.f32 %v1887_v1, %v1887_v1 }
 0x147   : > { %v1134_v53 = vadd.f32 %v1133_v50, %v1071_v25  ;;  %v1001_v54 = vadd.f32 %v1862_v41, %v1000_v48  ;;  %v1076_v41 = vmul.f32 %v1882_v61, %v1882_v61 }
 0x149   : > { %v1002_v56 = vadd.f32 %v1001_v54, %v1877_v55  ;;  %v1135_v59 = vadd.f32 %v1134_v53, %v1072_v22  ;;  %v1077_v55 = vmul.f32 %v1897_v11, %v1897_v11 }
 0x14b   : > { %v1136_v60 = vadd.f32 %v1135_v59, %v1073_v35  ;;  %v1003_v63 = vadd.f32 %v1872_v51, %v1002_v56  ;;  %v1078_v51 = vmul.f32 %v1892_v7, %v1892_v7 }
 0x14d   : > { %v1004_v0 = vadd.f32 %v1003_v63, %v1887_v1  ;;  %v1137_v2 = vadd.f32 %v1136_v60, %v1074_v31  ;;  %v1079_v1 = vmul.f32 %v1907_v24, %v1907_v24 }
 0x14f   : > { %v1138_v4 = vadd.f32 %v1137_v2, %v1075_v45  ;;  %v1005_v6 = vadd.f32 %v1882_v61, %v1004_v0  ;;  %v1080_v61 = vmul.f32 %v1902_v19, %v1902_v19  ;;  %v1095_v0 = vmul.f32 %v1987_v9, %v1987_v9 }
 0x151   : > { %v1006_v8 = vadd.f32 %v1005_v6, %v1897_v11  ;;  %v1139_v12 = vadd.f32 %v1138_v4, %v1076_v41  ;;  %v1081_v11 = vmul.f32 %v1917_v37, %v1917_v37 }
 0x153   : > { %v1140_v13 = vadd.f32 %v1139_v12, %v1077_v55  ;;  %v1007_v14 = vadd.f32 %v1892_v7, %v1006_v8  ;;  %v1082_v7 = vmul.f32 %v1912_v32, %v1912_v32 }
 0x155   : > { %v1008_v16 = vadd.f32 %v1007_v14, %v1907_v24  ;;  %v1141_v17 = vadd.f32 %v1140_v13, %v1078_v51  ;;  %v1083_v24 = vmul.f32 %v1927_v49, %v1927_v49 }
 0x157   : > { %v1142_v21 = vadd.f32 %v1141_v17, %v1079_v1  ;;  %v1009_v23 = vadd.f32 %v1902_v19, %v1008_v16  ;;  %v1084_v19 = vmul.f32 %v1922_v44, %v1922_v44 }
 0x159   : > { %v1010_v26 = vadd.f32 %v1009_v23, %v1917_v37  ;;  %v1143_v28 = vadd.f32 %v1142_v21, %v1080_v61  ;;  %v1085_v37 = vmul.f32 %v1937_v62, %v1937_v62 }
 0x15b   : > { %v1144_v29 = vadd.f32 %v1143_v28, %v1081_v11  ;;  %v1011_v30 = vadd.f32 %v1912_v32, %v1010_v26  ;;  %v1086_v32 = vmul.f32 %v1932_v57, %v1932_v57 }
 0x15d   : > { %v1012_v33 = vadd.f32 %v1011_v30, %v1927_v49  ;;  %v1145_v34 = vadd.f32 %v1144_v29, %v1082_v7  ;;  %v1087_v49 = vmul.f32 %v1947_v10, %v1947_v10 }
 0x15f   : > { %v1146_v38 = vadd.f32 %v1145_v34, %v1083_v24  ;;  %v1013_v39 = vadd.f32 %v1922_v44, %v1012_v33  ;;  %v1088_v44 = vmul.f32 %v1942_v5, %v1942_v5 }
 0x161   : > { %v1014_v18 = vadd.f32 %v1013_v39, %v1937_v62  ;;  %v1147_v40 = vadd.f32 %v1146_v38, %v1084_v19  ;;  %v1089_v62 = vmul.f32 %v1957_v27, %v1957_v27 }
 0x163   : > { %v1148_v43 = vadd.f32 %v1147_v40, %v1085_v37  ;;  %v1015_v15 = vadd.f32 %v1932_v57, %v1014_v18  ;;  %v1090_v57 = vmul.f32 %v1952_v20, %v1952_v20 }
 0x165   : > { %v1016_v46 = vadd.f32 %v1015_v15, %v1947_v10  ;;  %v1149_v47 = vadd.f32 %v1148_v43, %v1086_v32  ;;  %v1091_v10 = vmul.f32 %v1967_v42, %v1967_v42 }
 0x167   : > { %v1150_v25 = vadd.f32 %v1149_v47, %v1087_v49  ;;  %v1017_v48 = vadd.f32 %v1942_v5, %v1016_v46  ;;  %v1092_v5 = vmul.f32 %v1962_v36, %v1962_v36 }
 0x169   : > { %v1018_v50 = vadd.f32 %v1017_v48, %v1957_v27  ;;  %v1151_v22 = vadd.f32 %v1150_v25, %v1088_v44  ;;  %v1093_v27 = vmul.f32 %v1977_v58, %v1977_v58 }
 0x16b   : > { %v1152_v53 = vadd.f32 %v1151_v22, %v1089_v62  ;;  %v1019_v54 = vadd.f32 %v1952_v20, %v1018_v50  ;;  %v1094_v20 = vmul.f32 %v1972_v52, %v1972_v52 }
 0x16d   : > { %v1020_v35 = vadd.f32 %v1019_v54, %v1967_v42  ;;  %v1153_v56 = vadd.f32 %v1152_v53, %v1090_v57 }
 0x16f   : > { %v1154_v59 = vadd.f32 %v1153_v56, %v1091_v10  ;;  %v1021_v31 = vadd.f32 %v1962_v36, %v1020_v35  ;;  %v1096_v36 = vmul.f32 %v1982_v3, %v1982_v3 }
 0x171   : > { %v1022_v60 = vadd.f32 %v1021_v31, %v1977_v58  ;;  %v1155_v63 = vadd.f32 %v1154_v59, %v1092_v5 }
 0x173   : > { %v1156_v45 = vadd.f32 %v1155_v63, %v1093_v27  ;;  %v1023_v42 = vadd.f32 %v1972_v52, %v1022_v60 }
 0x175   : > { %v1024_v2 = vadd.f32 %v1023_v42, %v1987_v9  ;;  %v1157_v41 = vadd.f32 %v1156_v45, %v1094_v20 }
 0x177   : > { %v1025_v4 = vadd.f32 %v1982_v3, %v1024_v2  ;;  %v1158_v58 = vadd.f32 %v1157_v41, %v1095_v0 }
 0x179   : > { %v1026_v6 = vrot.slane %v1025_v4, 4  ;;  %v1159_v55 = vadd.f32 %v1158_v58, %v1096_v36 }
 0x17b   : > { %v1027_v8 = vadd.f32 %v1026_v6, %v1025_v4  ;;  %v1160_v12 = vrot.slane %v1159_v55, 4 }
 0x17d   : > { %v1028_v51 = vrot.slane %v1027_v8, 2  ;;  %v1161_v13 = vadd.f32 %v1160_v12, %v1159_v55 }
 0x17f   : > { %v1029_v52 = vadd.f32 %v1028_v51, %v1027_v8  ;;  %v1162_v14 = vrot.slane %v1161_v13, 2 }
 0x181   : > { %v1030_v1 = vrot.slane %v1029_v52, 1  ;;  %v1163_v16 = vadd.f32 %v1162_v14, %v1161_v13 }
 0x183   : > { %v1031_v9 = vadd.f32 %v1030_v1, %v1029_v52  ;;  %v1164_v17 = vrot.slane %v1163_v16, 1 }
 0x185   : > { %1032 = vst [vmem:[%s248_s30] sm:$0x1] %v1031_v9  ;;  %v1165_v3 = vadd.f32 %v1164_v17, %v1163_v16 }
 0x187   : > { %1166 = vst [vmem:[%s248_s30 + $0x1] sm:$0x1] %v1165_v3 }
 0x188 PF: > { %s14_s14 = sadd.s32 1, %s1642_s14   ;;  %s2104_s12 = smov %s1638_s13 }
 0x189   : > { %p11_p5 = scmp.ge.s32.totalorder %s14_s14, 6   ;;  %s2105_s13 = smov %s2107_s15 }
 0x18b   :  { %13 = sbr.rel (!%p11_p5) target bundleno = 2 (0x2), region = 73 }

// kernel: _lambda_.16
= control target key start
LH: loop header
LB: loop body
LE: loop exit
PB: predicated region body
PF: predicated region fallthrough
CT: control target
= control target key end

     0   :  { %s935_s12 = smov 0   ;;  %s1488_s0 = inlined_call_operand.vmem [shape: f32[2048,128], index: 0, kind: input, shape index: {}]   ;;  %s1489_s1 = inlined_call_operand.vmem [shape: f32[1,128], index: 1, kind: input, shape index: {}]   ;;  %s1490_s2 = inlined_call_operand.vmem [shape: f32[1,128], index: 2, kind: input, shape index: {}]   ;;  %s1491_s3 = inlined_call_operand.vmem [shape: f32[2048,128], index: 3, kind: output, shape index: {}]  }
   0x1 LB: > { %s884_s13 = sadd.s32 4294967295, %s913_s12   ;;  %p888_p0 = scmp.ge.s32.totalorder %s913_s12, 1  ;;  %s913_s12 = sphi %s935_s12, %s13_s12  }
   0x2   : > { %p138_p1 = scmp.lt.s32.totalorder %s913_s12, 3 }
   0x4   : > { %p139_p2 = pnand %p888_p0, %p138_p1 }
   0x5   : > { %s889_s14 = sshll.u32 (!%p139_p2), %s884_s13, 7  ;;  %v946_v0 = vld [vmem:[%s1489_s1] ss:$0 sm:$0xff] (!%p139_p2) }
   0x6   : > { %142 = sbr.rel (%p139_p2) target bundleno = 118 (0x76), region = 32  ;;  %p163_p3 = scmp.lt.s32.totalorder (!%p139_p2), %s889_s14, 255  ;;  %v956_v1 = vld [vmem:[%s1490_s2] ss:$0 sm:$0xff] (!%p139_p2) }
   0xd   : > { %s1493_s14 = smov (!%p163_p3, %s889_s14), 255 }
   0xe   : > { %s890_s15 = sshll.u32 %s1493_s14, 3 }
   0xf   : > { %s951_s20 = scalar_lea.vmem %s1488_s0, %s890_s15  ;;  %s979_s25 = scalar_lea.vmem %s1491_s3, %s890_s15 }
  0x10   : > { %v174_v2 = vld [vmem:[%s951_s20] sm:$0xff]  ;;  %v175_v3 = vld [vmem:[%s951_s20 + $0x8] sm:$0xff]  ;;  %v176_v4 = vld [vmem:[%s951_s20 + $0x10] sm:$0xff] }
  0x11   : > { %v309_v5 = vmul.f32 %v946_v0, %v174_v2  ;;  %v310_v6 = vmul.f32 %v946_v0, %v175_v3  ;;  %v311_v7 = vmul.f32 %v946_v0, %v176_v4  ;;  %v177_v8 = vld [vmem:[%s951_s20 + $0x18] sm:$0xff]  ;;  %v178_v9 = vld [vmem:[%s951_s20 + $0x20] sm:$0xff]  ;;  %v179_v10 = vld [vmem:[%s951_s20 + $0x28] sm:$0xff] }
  0x12   : > { %v312_v11 = vmul.f32 %v946_v0, %v177_v8  ;;  %v313_v12 = vmul.f32 %v946_v0, %v178_v9  ;;  %v314_v13 = vmul.f32 %v946_v0, %v179_v10  ;;  %v180_v14 = vld [vmem:[%s951_s20 + $0x30] sm:$0xff]  ;;  %v181_v15 = vld [vmem:[%s951_s20 + $0x38] sm:$0xff]  ;;  %v182_v24 = vld [vmem:[%s951_s20 + $0x40] sm:$0xff] }
  0x13   : > { %v444_v16 = vadd.f32 %v956_v1, %v309_v5  ;;  %v445_v17 = vadd.f32 %v956_v1, %v310_v6  ;;  %v446_v18 = vadd.f32 %v956_v1, %v311_v7  ;;  %v315_v19 = vmul.f32 %v946_v0, %v180_v14  ;;  %v183_v25 = vld [vmem:[%s951_s20 + $0x48] sm:$0xff]  ;;  %v184_v26 = vld [vmem:[%s951_s20 + $0x50] sm:$0xff]  ;;  %v185_v31 = vld [vmem:[%s951_s20 + $0x58] sm:$0xff] }
  0x14   : > { %v447_v20 = vadd.f32 %v956_v1, %v312_v11  ;;  %v448_v21 = vadd.f32 %v956_v1, %v313_v12  ;;  %v449_v22 = vadd.f32 %v956_v1, %v314_v13  ;;  %v316_v23 = vmul.f32 %v946_v0, %v181_v15  ;;  %v186_v32 = vld [vmem:[%s951_s20 + $0x60] sm:$0xff]  ;;  %v187_v33 = vld [vmem:[%s951_s20 + $0x68] sm:$0xff]  ;;  %v188_v38 = vld [vmem:[%s951_s20 + $0x70] sm:$0xff] }
  0x15   : > { %v572_v27 = vmax.f32 %v444_v16, 0.0  ;;  %v573_v28 = vmax.f32 %v445_v17, 0.0  ;;  %v574_v29 = vmax.f32 %v446_v18, 0.0  ;;  %v450_v30 = vadd.f32 %v956_v1, %v315_v19  ;;  %v189_v43 = vld [vmem:[%s951_s20 + $0x78] sm:$0xff]  ;;  %v190_v56 = vld [vmem:[%s951_s20 + $0x80] sm:$0xff]  ;;  %v191_v57 = vld [vmem:[%s951_s20 + $0x88] sm:$0xff] }
  0x16   : > { %v575_v34 = vmax.f32 %v447_v20, 0.0  ;;  %v576_v35 = vmax.f32 %v448_v21, 0.0  ;;  %v577_v36 = vmax.f32 %v449_v22, 0.0  ;;  %v451_v37 = vadd.f32 %v956_v1, %v316_v23  ;;  %v192_v58 = vld [vmem:[%s951_s20 + $0x90] sm:$0xff]  ;;  %v193_v63 = vld [vmem:[%s951_s20 + $0x98] sm:$0xff]  ;;  %v194_v2 = vld [vmem:[%s951_s20 + $0xa0] sm:$0xff] }
  0x17   : > { %700 = vst [vmem:[%s979_s25] sm:$0xff] %v572_v27  ;;  %701 = vst [vmem:[%s979_s25 + $0x8] sm:$0xff] %v573_v28  ;;  %v578_v39 = vmax.f32 %v450_v30, 0.0  ;;  %v317_v40 = vmul.f32 %v946_v0, %v182_v24  ;;  %v318_v41 = vmul.f32 %v946_v0, %v183_v25  ;;  %v319_v42 = vmul.f32 %v946_v0, %v184_v26  ;;  %v195_v3 = vld [vmem:[%s951_s20 + $0xa8] sm:$0xff]  ;;  %v196_v8 = vld [vmem:[%s951_s20 + $0xb0] sm:$0xff] }
  0x18   : > { %702 = vst [vmem:[%s979_s25 + $0x10] sm:$0xff] %v574_v29  ;;  %703 = vst [vmem:[%s979_s25 + $0x18] sm:$0xff] %v575_v34  ;;  %v579_v44 = vmax.f32 %v451_v37, 0.0  ;;  %v320_v45 = vmul.f32 %v946_v0, %v185_v31  ;;  %v321_v46 = vmul.f32 %v946_v0, %v186_v32  ;;  %v322_v47 = vmul.f32 %v946_v0, %v187_v33  ;;  %v197_v13 = vld [vmem:[%s951_s20 + $0xb8] sm:$0xff]  ;;  %v198_v26 = vld [vmem:[%s951_s20 + $0xc0] sm:$0xff] }
  0x19   : > { %704 = vst [vmem:[%s979_s25 + $0x20] sm:$0xff] %v576_v35  ;;  %705 = vst [vmem:[%s979_s25 + $0x28] sm:$0xff] %v577_v36  ;;  %v452_v48 = vadd.f32 %v956_v1, %v317_v40  ;;  %v453_v49 = vadd.f32 %v956_v1, %v318_v41  ;;  %v454_v50 = vadd.f32 %v956_v1, %v319_v42  ;;  %v199_v27 = vld [vmem:[%s951_s20 + $0xc8] sm:$0xff]  ;;  %v200_v28 = vld [vmem:[%s951_s20 + $0xd0] sm:$0xff] }
  0x1a   : > { %706 = vst [vmem:[%s979_s25 + $0x30] sm:$0xff] %v578_v39  ;;  %v323_v51 = vmul.f32 %v946_v0, %v188_v38  ;;  %707 = vst [vmem:[%s979_s25 + $0x38] sm:$0xff] %v579_v44  ;;  %v455_v52 = vadd.f32 %v956_v1, %v320_v45  ;;  %v456_v53 = vadd.f32 %v956_v1, %v321_v46  ;;  %v201_v33 = vld [vmem:[%s951_s20 + $0xd8] sm:$0xff]  ;;  %v202_v34 = vld [vmem:[%s951_s20 + $0xe0] sm:$0xff] }
  0x1b   : > { %v457_v54 = vadd.f32 %v956_v1, %v322_v47  ;;  %v324_v55 = vmul.f32 %v946_v0, %v189_v43  ;;  %v580_v59 = vmax.f32 %v452_v48, 0.0  ;;  %v581_v60 = vmax.f32 %v453_v49, 0.0  ;;  %v203_v35 = vld [vmem:[%s951_s20 + $0xe8] sm:$0xff]  ;;  %v204_v40 = vld [vmem:[%s951_s20 + $0xf0] sm:$0xff]  ;;  %v205_v45 = vld [vmem:[%s951_s20 + $0xf8] sm:$0xff] }
  0x1c   : > { %v582_v61 = vmax.f32 %v454_v50, 0.0  ;;  %v458_v62 = vadd.f32 %v956_v1, %v323_v51  ;;  %v583_v4 = vmax.f32 %v455_v52, 0.0  ;;  %v584_v5 = vmax.f32 %v456_v53, 0.0 }
  0x1d   : > { %v585_v6 = vmax.f32 %v457_v54, 0.0  ;;  %v459_v7 = vadd.f32 %v956_v1, %v324_v55  ;;  %708 = vst [vmem:[%s979_s25 + $0x40] sm:$0xff] %v580_v59  ;;  %709 = vst [vmem:[%s979_s25 + $0x48] sm:$0xff] %v581_v60  ;;  %v325_v10 = vmul.f32 %v946_v0, %v190_v56  ;;  %v326_v11 = vmul.f32 %v946_v0, %v191_v57  ;;  %v207_v59 = vld [vmem:[%s951_s20 + $0x108] sm:$0xff]  ;;  %v208_v60 = vld [vmem:[%s951_s20 + $0x110] sm:$0xff] }
  0x1e   : > { %710 = vst [vmem:[%s979_s25 + $0x50] sm:$0xff] %v582_v61  ;;  %v586_v9 = vmax.f32 %v458_v62, 0.0  ;;  %v327_v12 = vmul.f32 %v946_v0, %v192_v58  ;;  %711 = vst [vmem:[%s979_s25 + $0x58] sm:$0xff] %v583_v4  ;;  %v328_v15 = vmul.f32 %v946_v0, %v193_v63  ;;  %v329_v16 = vmul.f32 %v946_v0, %v194_v2  ;;  %v206_v58 = vld [vmem:[%s951_s20 + $0x100] sm:$0xff] }
  0x1f   : > { %712 = vst [vmem:[%s979_s25 + $0x60] sm:$0xff] %v584_v5  ;;  %713 = vst [vmem:[%s979_s25 + $0x68] sm:$0xff] %v585_v6  ;;  %v587_v14 = vmax.f32 %v459_v7, 0.0  ;;  %v330_v17 = vmul.f32 %v946_v0, %v195_v3  ;;  %v460_v18 = vadd.f32 %v956_v1, %v325_v10  ;;  %v461_v19 = vadd.f32 %v956_v1, %v326_v11  ;;  %v209_v3 = vld [vmem:[%s951_s20 + $0x118] sm:$0xff]  ;;  %v210_v4 = vld [vmem:[%s951_s20 + $0x120] sm:$0xff] }
  0x20   : > { %714 = vst [vmem:[%s979_s25 + $0x70] sm:$0xff] %v586_v9  ;;  %v462_v20 = vadd.f32 %v956_v1, %v327_v12  ;;  %v331_v21 = vmul.f32 %v946_v0, %v196_v8  ;;  %v463_v22 = vadd.f32 %v956_v1, %v328_v15  ;;  %v464_v23 = vadd.f32 %v956_v1, %v329_v16  ;;  %v211_v5 = vld [vmem:[%s951_s20 + $0x128] sm:$0xff]  ;;  %v212_v10 = vld [vmem:[%s951_s20 + $0x130] sm:$0xff]  ;;  %v213_v15 = vld [vmem:[%s951_s20 + $0x138] sm:$0xff] }
  0x21   : > { %715 = vst [vmem:[%s979_s25 + $0x78] sm:$0xff] %v587_v14  ;;  %v465_v24 = vadd.f32 %v956_v1, %v330_v17  ;;  %v332_v25 = vmul.f32 %v946_v0, %v197_v13  ;;  %v588_v29 = vmax.f32 %v460_v18, 0.0  ;;  %v589_v30 = vmax.f32 %v461_v19, 0.0 }
  0x22   : > { %v590_v31 = vmax.f32 %v462_v20, 0.0  ;;  %v466_v32 = vadd.f32 %v956_v1, %v331_v21  ;;  %v591_v36 = vmax.f32 %v463_v22, 0.0  ;;  %v592_v37 = vmax.f32 %v464_v23, 0.0 }
  0x23   : > { %v593_v38 = vmax.f32 %v465_v24, 0.0  ;;  %v467_v39 = vadd.f32 %v956_v1, %v332_v25  ;;  %716 = vst [vmem:[%s979_s25 + $0x80] sm:$0xff] %v588_v29  ;;  %717 = vst [vmem:[%s979_s25 + $0x88] sm:$0xff] %v589_v30  ;;  %v333_v42 = vmul.f32 %v946_v0, %v198_v26  ;;  %v334_v43 = vmul.f32 %v946_v0, %v199_v27  ;;  %v215_v29 = vld [vmem:[%s951_s20 + $0x148] sm:$0xff]  ;;  %v216_v30 = vld [vmem:[%s951_s20 + $0x150] sm:$0xff] }
  0x24   : > { %718 = vst [vmem:[%s979_s25 + $0x90] sm:$0xff] %v590_v31  ;;  %v594_v41 = vmax.f32 %v466_v32, 0.0  ;;  %v335_v44 = vmul.f32 %v946_v0, %v200_v28  ;;  %719 = vst [vmem:[%s979_s25 + $0x98] sm:$0xff] %v591_v36  ;;  %v336_v47 = vmul.f32 %v946_v0, %v201_v33  ;;  %v337_v48 = vmul.f32 %v946_v0, %v202_v34  ;;  %v214_v28 = vld [vmem:[%s951_s20 + $0x140] sm:$0xff] }
  0x25   : > { %720 = vst [vmem:[%s979_s25 + $0xa0] sm:$0xff] %v592_v37  ;;  %721 = vst [vmem:[%s979_s25 + $0xa8] sm:$0xff] %v593_v38  ;;  %v595_v46 = vmax.f32 %v467_v39, 0.0  ;;  %v338_v49 = vmul.f32 %v946_v0, %v203_v35  ;;  %v468_v50 = vadd.f32 %v956_v1, %v333_v42  ;;  %v469_v51 = vadd.f32 %v956_v1, %v334_v43  ;;  %v217_v35 = vld [vmem:[%s951_s20 + $0x158] sm:$0xff]  ;;  %v218_v36 = vld [vmem:[%s951_s20 + $0x160] sm:$0xff] }
  0x26   : > { %722 = vst [vmem:[%s979_s25 + $0xb0] sm:$0xff] %v594_v41  ;;  %v470_v52 = vadd.f32 %v956_v1, %v335_v44  ;;  %v339_v53 = vmul.f32 %v946_v0, %v204_v40  ;;  %v471_v54 = vadd.f32 %v956_v1, %v336_v47  ;;  %v472_v55 = vadd.f32 %v956_v1, %v337_v48  ;;  %v219_v37 = vld [vmem:[%s951_s20 + $0x168] sm:$0xff]  ;;  %v220_v42 = vld [vmem:[%s951_s20 + $0x170] sm:$0xff]  ;;  %v221_v47 = vld [vmem:[%s951_s20 + $0x178] sm:$0xff] }
  0x27   : > { %723 = vst [vmem:[%s979_s25 + $0xb8] sm:$0xff] %v595_v46  ;;  %v473_v56 = vadd.f32 %v956_v1, %v338_v49  ;;  %v340_v57 = vmul.f32 %v946_v0, %v205_v45  ;;  %v596_v61 = vmax.f32 %v468_v50, 0.0  ;;  %v597_v62 = vmax.f32 %v469_v51, 0.0 }
  0x28   : > { %v598_v63 = vmax.f32 %v470_v52, 0.0  ;;  %v474_v2 = vadd.f32 %v956_v1, %v339_v53  ;;  %v599_v6 = vmax.f32 %v471_v54, 0.0  ;;  %v600_v7 = vmax.f32 %v472_v55, 0.0 }
  0x29   : > { %v601_v8 = vmax.f32 %v473_v56, 0.0  ;;  %v475_v9 = vadd.f32 %v956_v1, %v340_v57  ;;  %724 = vst [vmem:[%s979_s25 + $0xc0] sm:$0xff] %v596_v61  ;;  %725 = vst [vmem:[%s979_s25 + $0xc8] sm:$0xff] %v597_v62  ;;  %v341_v12 = vmul.f32 %v946_v0, %v206_v58  ;;  %v342_v13 = vmul.f32 %v946_v0, %v207_v59  ;;  %v223_v61 = vld [vmem:[%s951_s20 + $0x188] sm:$0xff]  ;;  %v224_v62 = vld [vmem:[%s951_s20 + $0x190] sm:$0xff] }
  0x2a   : > { %726 = vst [vmem:[%s979_s25 + $0xd0] sm:$0xff] %v598_v63  ;;  %v602_v11 = vmax.f32 %v474_v2, 0.0  ;;  %v343_v14 = vmul.f32 %v946_v0, %v208_v60  ;;  %727 = vst [vmem:[%s979_s25 + $0xd8] sm:$0xff] %v599_v6  ;;  %v344_v17 = vmul.f32 %v946_v0, %v209_v3  ;;  %v345_v18 = vmul.f32 %v946_v0, %v210_v4  ;;  %v222_v60 = vld [vmem:[%s951_s20 + $0x180] sm:$0xff] }
  0x2b   : > { %728 = vst [vmem:[%s979_s25 + $0xe0] sm:$0xff] %v600_v7  ;;  %729 = vst [vmem:[%s979_s25 + $0xe8] sm:$0xff] %v601_v8  ;;  %v603_v16 = vmax.f32 %v475_v9, 0.0  ;;  %v346_v19 = vmul.f32 %v946_v0, %v211_v5  ;;  %v476_v20 = vadd.f32 %v956_v1, %v341_v12  ;;  %v477_v21 = vadd.f32 %v956_v1, %v342_v13  ;;  %v225_v5 = vld [vmem:[%s951_s20 + $0x198] sm:$0xff]  ;;  %v226_v6 = vld [vmem:[%s951_s20 + $0x1a0] sm:$0xff] }
  0x2c   : > { %730 = vst [vmem:[%s979_s25 + $0xf0] sm:$0xff] %v602_v11  ;;  %v478_v22 = vadd.f32 %v956_v1, %v343_v14  ;;  %v347_v23 = vmul.f32 %v946_v0, %v212_v10  ;;  %v479_v24 = vadd.f32 %v956_v1, %v344_v17  ;;  %v480_v25 = vadd.f32 %v956_v1, %v345_v18  ;;  %v227_v7 = vld [vmem:[%s951_s20 + $0x1a8] sm:$0xff]  ;;  %v228_v12 = vld [vmem:[%s951_s20 + $0x1b0] sm:$0xff]  ;;  %v229_v17 = vld [vmem:[%s951_s20 + $0x1b8] sm:$0xff] }
  0x2d   : > { %731 = vst [vmem:[%s979_s25 + $0xf8] sm:$0xff] %v603_v16  ;;  %v481_v26 = vadd.f32 %v956_v1, %v346_v19  ;;  %v348_v27 = vmul.f32 %v946_v0, %v213_v15  ;;  %v604_v31 = vmax.f32 %v476_v20, 0.0  ;;  %v605_v32 = vmax.f32 %v477_v21, 0.0 }
  0x2e   : > { %v606_v33 = vmax.f32 %v478_v22, 0.0  ;;  %v482_v34 = vadd.f32 %v956_v1, %v347_v23  ;;  %v607_v38 = vmax.f32 %v479_v24, 0.0  ;;  %v608_v39 = vmax.f32 %v480_v25, 0.0 }
  0x2f   : > { %v609_v40 = vmax.f32 %v481_v26, 0.0  ;;  %v483_v41 = vadd.f32 %v956_v1, %v348_v27  ;;  %732 = vst [vmem:[%s979_s25 + $0x100] sm:$0xff] %v604_v31  ;;  %733 = vst [vmem:[%s979_s25 + $0x108] sm:$0xff] %v605_v32  ;;  %v349_v44 = vmul.f32 %v946_v0, %v214_v28  ;;  %v350_v45 = vmul.f32 %v946_v0, %v215_v29  ;;  %v231_v31 = vld [vmem:[%s951_s20 + $0x1c8] sm:$0xff]  ;;  %v232_v32 = vld [vmem:[%s951_s20 + $0x1d0] sm:$0xff] }
  0x30   : > { %734 = vst [vmem:[%s979_s25 + $0x110] sm:$0xff] %v606_v33  ;;  %v610_v43 = vmax.f32 %v482_v34, 0.0  ;;  %v351_v46 = vmul.f32 %v946_v0, %v216_v30  ;;  %735 = vst [vmem:[%s979_s25 + $0x118] sm:$0xff] %v607_v38  ;;  %v352_v49 = vmul.f32 %v946_v0, %v217_v35  ;;  %v353_v50 = vmul.f32 %v946_v0, %v218_v36  ;;  %v230_v30 = vld [vmem:[%s951_s20 + $0x1c0] sm:$0xff] }
  0x31   : > { %736 = vst [vmem:[%s979_s25 + $0x120] sm:$0xff] %v608_v39  ;;  %737 = vst [vmem:[%s979_s25 + $0x128] sm:$0xff] %v609_v40  ;;  %v611_v48 = vmax.f32 %v483_v41, 0.0  ;;  %v354_v51 = vmul.f32 %v946_v0, %v219_v37  ;;  %v484_v52 = vadd.f32 %v956_v1, %v349_v44  ;;  %v485_v53 = vadd.f32 %v956_v1, %v350_v45  ;;  %v233_v37 = vld [vmem:[%s951_s20 + $0x1d8] sm:$0xff]  ;;  %v234_v38 = vld [vmem:[%s951_s20 + $0x1e0] sm:$0xff] }
  0x32   : > { %738 = vst [vmem:[%s979_s25 + $0x130] sm:$0xff] %v610_v43  ;;  %v486_v54 = vadd.f32 %v956_v1, %v351_v46  ;;  %v355_v55 = vmul.f32 %v946_v0, %v220_v42  ;;  %v487_v56 = vadd.f32 %v956_v1, %v352_v49  ;;  %v488_v57 = vadd.f32 %v956_v1, %v353_v50  ;;  %v235_v39 = vld [vmem:[%s951_s20 + $0x1e8] sm:$0xff]  ;;  %v236_v44 = vld [vmem:[%s951_s20 + $0x1f0] sm:$0xff]  ;;  %v237_v49 = vld [vmem:[%s951_s20 + $0x1f8] sm:$0xff] }
  0x33   : > { %739 = vst [vmem:[%s979_s25 + $0x138] sm:$0xff] %v611_v48  ;;  %v489_v58 = vadd.f32 %v956_v1, %v354_v51  ;;  %v356_v59 = vmul.f32 %v946_v0, %v221_v47  ;;  %v612_v63 = vmax.f32 %v484_v52, 0.0  ;;  %v613_v2 = vmax.f32 %v485_v53, 0.0 }
  0x34   : > { %v614_v3 = vmax.f32 %v486_v54, 0.0  ;;  %v490_v4 = vadd.f32 %v956_v1, %v355_v55  ;;  %v615_v8 = vmax.f32 %v487_v56, 0.0  ;;  %v616_v9 = vmax.f32 %v488_v57, 0.0 }
  0x35   : > { %v617_v10 = vmax.f32 %v489_v58, 0.0  ;;  %v491_v11 = vadd.f32 %v956_v1, %v356_v59  ;;  %740 = vst [vmem:[%s979_s25 + $0x140] sm:$0xff] %v612_v63  ;;  %741 = vst [vmem:[%s979_s25 + $0x148] sm:$0xff] %v613_v2  ;;  %v357_v14 = vmul.f32 %v946_v0, %v222_v60  ;;  %v358_v15 = vmul.f32 %v946_v0, %v223_v61  ;;  %v239_v63 = vld [vmem:[%s951_s20 + $0x208] sm:$0xff]  ;;  %v240_v2 = vld [vmem:[%s951_s20 + $0x210] sm:$0xff] }
  0x36   : > { %742 = vst [vmem:[%s979_s25 + $0x150] sm:$0xff] %v614_v3  ;;  %v618_v13 = vmax.f32 %v490_v4, 0.0  ;;  %v359_v16 = vmul.f32 %v946_v0, %v224_v62  ;;  %743 = vst [vmem:[%s979_s25 + $0x158] sm:$0xff] %v615_v8  ;;  %v360_v19 = vmul.f32 %v946_v0, %v225_v5  ;;  %v361_v20 = vmul.f32 %v946_v0, %v226_v6  ;;  %v238_v62 = vld [vmem:[%s951_s20 + $0x200] sm:$0xff] }
  0x37   : > { %744 = vst [vmem:[%s979_s25 + $0x160] sm:$0xff] %v616_v9  ;;  %745 = vst [vmem:[%s979_s25 + $0x168] sm:$0xff] %v617_v10  ;;  %v619_v18 = vmax.f32 %v491_v11, 0.0  ;;  %v362_v21 = vmul.f32 %v946_v0, %v227_v7  ;;  %v492_v22 = vadd.f32 %v956_v1, %v357_v14  ;;  %v493_v23 = vadd.f32 %v956_v1, %v358_v15  ;;  %v241_v7 = vld [vmem:[%s951_s20 + $0x218] sm:$0xff]  ;;  %v242_v8 = vld [vmem:[%s951_s20 + $0x220] sm:$0xff] }
  0x38   : > { %746 = vst [vmem:[%s979_s25 + $0x170] sm:$0xff] %v618_v13  ;;  %v494_v24 = vadd.f32 %v956_v1, %v359_v16  ;;  %v363_v25 = vmul.f32 %v946_v0, %v228_v12  ;;  %v495_v26 = vadd.f32 %v956_v1, %v360_v19  ;;  %v496_v27 = vadd.f32 %v956_v1, %v361_v20  ;;  %v243_v9 = vld [vmem:[%s951_s20 + $0x228] sm:$0xff]  ;;  %v244_v14 = vld [vmem:[%s951_s20 + $0x230] sm:$0xff]  ;;  %v245_v19 = vld [vmem:[%s951_s20 + $0x238] sm:$0xff] }
  0x39   : > { %747 = vst [vmem:[%s979_s25 + $0x178] sm:$0xff] %v619_v18  ;;  %v497_v28 = vadd.f32 %v956_v1, %v362_v21  ;;  %v364_v29 = vmul.f32 %v946_v0, %v229_v17  ;;  %v620_v33 = vmax.f32 %v492_v22, 0.0  ;;  %v621_v34 = vmax.f32 %v493_v23, 0.0 }
  0x3a   : > { %v622_v35 = vmax.f32 %v494_v24, 0.0  ;;  %v498_v36 = vadd.f32 %v956_v1, %v363_v25  ;;  %v623_v40 = vmax.f32 %v495_v26, 0.0  ;;  %v624_v41 = vmax.f32 %v496_v27, 0.0 }
  0x3b   : > { %v625_v42 = vmax.f32 %v497_v28, 0.0  ;;  %v499_v43 = vadd.f32 %v956_v1, %v364_v29  ;;  %748 = vst [vmem:[%s979_s25 + $0x180] sm:$0xff] %v620_v33  ;;  %749 = vst [vmem:[%s979_s25 + $0x188] sm:$0xff] %v621_v34  ;;  %v365_v46 = vmul.f32 %v946_v0, %v230_v30  ;;  %v366_v47 = vmul.f32 %v946_v0, %v231_v31  ;;  %v247_v33 = vld [vmem:[%s951_s20 + $0x248] sm:$0xff]  ;;  %v248_v34 = vld [vmem:[%s951_s20 + $0x250] sm:$0xff] }
  0x3c   : > { %750 = vst [vmem:[%s979_s25 + $0x190] sm:$0xff] %v622_v35  ;;  %v626_v45 = vmax.f32 %v498_v36, 0.0  ;;  %v367_v48 = vmul.f32 %v946_v0, %v232_v32  ;;  %751 = vst [vmem:[%s979_s25 + $0x198] sm:$0xff] %v623_v40  ;;  %v368_v51 = vmul.f32 %v946_v0, %v233_v37  ;;  %v369_v52 = vmul.f32 %v946_v0, %v234_v38  ;;  %v246_v32 = vld [vmem:[%s951_s20 + $0x240] sm:$0xff] }
  0x3d   : > { %752 = vst [vmem:[%s979_s25 + $0x1a0] sm:$0xff] %v624_v41  ;;  %753 = vst [vmem:[%s979_s25 + $0x1a8] sm:$0xff] %v625_v42  ;;  %v627_v50 = vmax.f32 %v499_v43, 0.0  ;;  %v370_v53 = vmul.f32 %v946_v0, %v235_v39  ;;  %v500_v54 = vadd.f32 %v956_v1, %v365_v46  ;;  %v501_v55 = vadd.f32 %v956_v1, %v366_v47  ;;  %v249_v39 = vld [vmem:[%s951_s20 + $0x258] sm:$0xff]  ;;  %v250_v40 = vld [vmem:[%s951_s20 + $0x260] sm:$0xff] }
  0x3e   : > { %754 = vst [vmem:[%s979_s25 + $0x1b0] sm:$0xff] %v626_v45  ;;  %v502_v56 = vadd.f32 %v956_v1, %v367_v48  ;;  %v371_v57 = vmul.f32 %v946_v0, %v236_v44  ;;  %v503_v58 = vadd.f32 %v956_v1, %v368_v51  ;;  %v504_v59 = vadd.f32 %v956_v1, %v369_v52  ;;  %v251_v41 = vld [vmem:[%s951_s20 + $0x268] sm:$0xff]  ;;  %v252_v46 = vld [vmem:[%s951_s20 + $0x270] sm:$0xff]  ;;  %v253_v51 = vld [vmem:[%s951_s20 + $0x278] sm:$0xff] }
  0x3f   : > { %755 = vst [vmem:[%s979_s25 + $0x1b8] sm:$0xff] %v627_v50  ;;  %v505_v60 = vadd.f32 %v956_v1, %v370_v53  ;;  %v372_v61 = vmul.f32 %v946_v0, %v237_v49  ;;  %v628_v3 = vmax.f32 %v500_v54, 0.0  ;;  %v629_v4 = vmax.f32 %v501_v55, 0.0 }
  0x40   : > { %v630_v5 = vmax.f32 %v502_v56, 0.0  ;;  %v506_v6 = vadd.f32 %v956_v1, %v371_v57  ;;  %v631_v10 = vmax.f32 %v503_v58, 0.0  ;;  %v632_v11 = vmax.f32 %v504_v59, 0.0 }
  0x41   : > { %v633_v12 = vmax.f32 %v505_v60, 0.0  ;;  %v507_v13 = vadd.f32 %v956_v1, %v372_v61  ;;  %756 = vst [vmem:[%s979_s25 + $0x1c0] sm:$0xff] %v628_v3  ;;  %757 = vst [vmem:[%s979_s25 + $0x1c8] sm:$0xff] %v629_v4  ;;  %v373_v16 = vmul.f32 %v946_v0, %v238_v62  ;;  %v374_v17 = vmul.f32 %v946_v0, %v239_v63  ;;  %v255_v3 = vld [vmem:[%s951_s20 + $0x288] sm:$0xff]  ;;  %v256_v4 = vld [vmem:[%s951_s20 + $0x290] sm:$0xff] }
  0x42   : > { %758 = vst [vmem:[%s979_s25 + $0x1d0] sm:$0xff] %v630_v5  ;;  %v634_v15 = vmax.f32 %v506_v6, 0.0  ;;  %v375_v18 = vmul.f32 %v946_v0, %v240_v2  ;;  %759 = vst [vmem:[%s979_s25 + $0x1d8] sm:$0xff] %v631_v10  ;;  %v376_v21 = vmul.f32 %v946_v0, %v241_v7  ;;  %v377_v22 = vmul.f32 %v946_v0, %v242_v8  ;;  %v254_v2 = vld [vmem:[%s951_s20 + $0x280] sm:$0xff] }
  0x43   : > { %760 = vst [vmem:[%s979_s25 + $0x1e0] sm:$0xff] %v632_v11  ;;  %761 = vst [vmem:[%s979_s25 + $0x1e8] sm:$0xff] %v633_v12  ;;  %v635_v20 = vmax.f32 %v507_v13, 0.0  ;;  %v378_v23 = vmul.f32 %v946_v0, %v243_v9  ;;  %v508_v24 = vadd.f32 %v956_v1, %v373_v16  ;;  %v509_v25 = vadd.f32 %v956_v1, %v374_v17  ;;  %v257_v9 = vld [vmem:[%s951_s20 + $0x298] sm:$0xff]  ;;  %v258_v10 = vld [vmem:[%s951_s20 + $0x2a0] sm:$0xff] }
  0x44   : > { %762 = vst [vmem:[%s979_s25 + $0x1f0] sm:$0xff] %v634_v15  ;;  %v510_v26 = vadd.f32 %v956_v1, %v375_v18  ;;  %v379_v27 = vmul.f32 %v946_v0, %v244_v14  ;;  %v511_v28 = vadd.f32 %v956_v1, %v376_v21  ;;  %v512_v29 = vadd.f32 %v956_v1, %v377_v22  ;;  %v259_v11 = vld [vmem:[%s951_s20 + $0x2a8] sm:$0xff]  ;;  %v260_v16 = vld [vmem:[%s951_s20 + $0x2b0] sm:$0xff]  ;;  %v261_v21 = vld [vmem:[%s951_s20 + $0x2b8] sm:$0xff] }
  0x45   : > { %763 = vst [vmem:[%s979_s25 + $0x1f8] sm:$0xff] %v635_v20  ;;  %v513_v30 = vadd.f32 %v956_v1, %v378_v23  ;;  %v380_v31 = vmul.f32 %v946_v0, %v245_v19  ;;  %v636_v35 = vmax.f32 %v508_v24, 0.0  ;;  %v637_v36 = vmax.f32 %v509_v25, 0.0 }
  0x46   : > { %v638_v37 = vmax.f32 %v510_v26, 0.0  ;;  %v514_v38 = vadd.f32 %v956_v1, %v379_v27  ;;  %v639_v42 = vmax.f32 %v511_v28, 0.0  ;;  %v640_v43 = vmax.f32 %v512_v29, 0.0 }
  0x47   : > { %v641_v44 = vmax.f32 %v513_v30, 0.0  ;;  %v515_v45 = vadd.f32 %v956_v1, %v380_v31  ;;  %764 = vst [vmem:[%s979_s25 + $0x200] sm:$0xff] %v636_v35  ;;  %765 = vst [vmem:[%s979_s25 + $0x208] sm:$0xff] %v637_v36  ;;  %v381_v48 = vmul.f32 %v946_v0, %v246_v32  ;;  %v382_v49 = vmul.f32 %v946_v0, %v247_v33  ;;  %v263_v35 = vld [vmem:[%s951_s20 + $0x2c8] sm:$0xff]  ;;  %v264_v36 = vld [vmem:[%s951_s20 + $0x2d0] sm:$0xff] }
  0x48   : > { %766 = vst [vmem:[%s979_s25 + $0x210] sm:$0xff] %v638_v37  ;;  %v642_v47 = vmax.f32 %v514_v38, 0.0  ;;  %v383_v50 = vmul.f32 %v946_v0, %v248_v34  ;;  %767 = vst [vmem:[%s979_s25 + $0x218] sm:$0xff] %v639_v42  ;;  %v384_v53 = vmul.f32 %v946_v0, %v249_v39  ;;  %v385_v54 = vmul.f32 %v946_v0, %v250_v40  ;;  %v262_v34 = vld [vmem:[%s951_s20 + $0x2c0] sm:$0xff] }
  0x49   : > { %768 = vst [vmem:[%s979_s25 + $0x220] sm:$0xff] %v640_v43  ;;  %769 = vst [vmem:[%s979_s25 + $0x228] sm:$0xff] %v641_v44  ;;  %v643_v52 = vmax.f32 %v515_v45, 0.0  ;;  %v386_v55 = vmul.f32 %v946_v0, %v251_v41  ;;  %v516_v56 = vadd.f32 %v956_v1, %v381_v48  ;;  %v517_v57 = vadd.f32 %v956_v1, %v382_v49  ;;  %v265_v41 = vld [vmem:[%s951_s20 + $0x2d8] sm:$0xff]  ;;  %v266_v42 = vld [vmem:[%s951_s20 + $0x2e0] sm:$0xff] }
  0x4a   : > { %770 = vst [vmem:[%s979_s25 + $0x230] sm:$0xff] %v642_v47  ;;  %v518_v58 = vadd.f32 %v956_v1, %v383_v50  ;;  %v387_v59 = vmul.f32 %v946_v0, %v252_v46  ;;  %v519_v60 = vadd.f32 %v956_v1, %v384_v53  ;;  %v520_v61 = vadd.f32 %v956_v1, %v385_v54  ;;  %v267_v43 = vld [vmem:[%s951_s20 + $0x2e8] sm:$0xff]  ;;  %v268_v48 = vld [vmem:[%s951_s20 + $0x2f0] sm:$0xff]  ;;  %v269_v53 = vld [vmem:[%s951_s20 + $0x2f8] sm:$0xff] }
  0x4b   : > { %771 = vst [vmem:[%s979_s25 + $0x238] sm:$0xff] %v643_v52  ;;  %v521_v62 = vadd.f32 %v956_v1, %v386_v55  ;;  %v388_v63 = vmul.f32 %v946_v0, %v253_v51  ;;  %v644_v5 = vmax.f32 %v516_v56, 0.0  ;;  %v645_v6 = vmax.f32 %v517_v57, 0.0 }
  0x4c   : > { %v646_v7 = vmax.f32 %v518_v58, 0.0  ;;  %v522_v8 = vadd.f32 %v956_v1, %v387_v59  ;;  %v647_v12 = vmax.f32 %v519_v60, 0.0  ;;  %v648_v13 = vmax.f32 %v520_v61, 0.0 }
  0x4d   : > { %v649_v14 = vmax.f32 %v521_v62, 0.0  ;;  %v523_v15 = vadd.f32 %v956_v1, %v388_v63  ;;  %772 = vst [vmem:[%s979_s25 + $0x240] sm:$0xff] %v644_v5  ;;  %773 = vst [vmem:[%s979_s25 + $0x248] sm:$0xff] %v645_v6  ;;  %v389_v18 = vmul.f32 %v946_v0, %v254_v2  ;;  %v390_v19 = vmul.f32 %v946_v0, %v255_v3  ;;  %v271_v5 = vld [vmem:[%s951_s20 + $0x308] sm:$0xff]  ;;  %v272_v6 = vld [vmem:[%s951_s20 + $0x310] sm:$0xff] }
  0x4e   : > { %774 = vst [vmem:[%s979_s25 + $0x250] sm:$0xff] %v646_v7  ;;  %v650_v17 = vmax.f32 %v522_v8, 0.0  ;;  %v391_v20 = vmul.f32 %v946_v0, %v256_v4  ;;  %775 = vst [vmem:[%s979_s25 + $0x258] sm:$0xff] %v647_v12  ;;  %v392_v23 = vmul.f32 %v946_v0, %v257_v9  ;;  %v393_v24 = vmul.f32 %v946_v0, %v258_v10  ;;  %v270_v4 = vld [vmem:[%s951_s20 + $0x300] sm:$0xff] }
  0x4f   : > { %776 = vst [vmem:[%s979_s25 + $0x260] sm:$0xff] %v648_v13  ;;  %777 = vst [vmem:[%s979_s25 + $0x268] sm:$0xff] %v649_v14  ;;  %v651_v22 = vmax.f32 %v523_v15, 0.0  ;;  %v394_v25 = vmul.f32 %v946_v0, %v259_v11  ;;  %v524_v26 = vadd.f32 %v956_v1, %v389_v18  ;;  %v525_v27 = vadd.f32 %v956_v1, %v390_v19  ;;  %v273_v11 = vld [vmem:[%s951_s20 + $0x318] sm:$0xff]  ;;  %v274_v12 = vld [vmem:[%s951_s20 + $0x320] sm:$0xff] }
  0x50   : > { %778 = vst [vmem:[%s979_s25 + $0x270] sm:$0xff] %v650_v17  ;;  %v526_v28 = vadd.f32 %v956_v1, %v391_v20  ;;  %v395_v29 = vmul.f32 %v946_v0, %v260_v16  ;;  %v527_v30 = vadd.f32 %v956_v1, %v392_v23  ;;  %v528_v31 = vadd.f32 %v956_v1, %v393_v24  ;;  %v275_v13 = vld [vmem:[%s951_s20 + $0x328] sm:$0xff]  ;;  %v276_v18 = vld [vmem:[%s951_s20 + $0x330] sm:$0xff]  ;;  %v277_v23 = vld [vmem:[%s951_s20 + $0x338] sm:$0xff] }
  0x51   : > { %779 = vst [vmem:[%s979_s25 + $0x278] sm:$0xff] %v651_v22  ;;  %v529_v32 = vadd.f32 %v956_v1, %v394_v25  ;;  %v396_v33 = vmul.f32 %v946_v0, %v261_v21  ;;  %v652_v37 = vmax.f32 %v524_v26, 0.0  ;;  %v653_v38 = vmax.f32 %v525_v27, 0.0 }
  0x52   : > { %v654_v39 = vmax.f32 %v526_v28, 0.0  ;;  %v530_v40 = vadd.f32 %v956_v1, %v395_v29  ;;  %v655_v44 = vmax.f32 %v527_v30, 0.0  ;;  %v656_v45 = vmax.f32 %v528_v31, 0.0 }
  0x53   : > { %v657_v46 = vmax.f32 %v529_v32, 0.0  ;;  %v531_v47 = vadd.f32 %v956_v1, %v396_v33  ;;  %780 = vst [vmem:[%s979_s25 + $0x280] sm:$0xff] %v652_v37  ;;  %781 = vst [vmem:[%s979_s25 + $0x288] sm:$0xff] %v653_v38  ;;  %v397_v50 = vmul.f32 %v946_v0, %v262_v34  ;;  %v398_v51 = vmul.f32 %v946_v0, %v263_v35  ;;  %v279_v37 = vld [vmem:[%s951_s20 + $0x348] sm:$0xff]  ;;  %v280_v38 = vld [vmem:[%s951_s20 + $0x350] sm:$0xff] }
  0x54   : > { %782 = vst [vmem:[%s979_s25 + $0x290] sm:$0xff] %v654_v39  ;;  %v658_v49 = vmax.f32 %v530_v40, 0.0  ;;  %v399_v52 = vmul.f32 %v946_v0, %v264_v36  ;;  %783 = vst [vmem:[%s979_s25 + $0x298] sm:$0xff] %v655_v44  ;;  %v400_v55 = vmul.f32 %v946_v0, %v265_v41  ;;  %v401_v56 = vmul.f32 %v946_v0, %v266_v42  ;;  %v278_v36 = vld [vmem:[%s951_s20 + $0x340] sm:$0xff] }
  0x55   : > { %784 = vst [vmem:[%s979_s25 + $0x2a0] sm:$0xff] %v656_v45  ;;  %785 = vst [vmem:[%s979_s25 + $0x2a8] sm:$0xff] %v657_v46  ;;  %v659_v54 = vmax.f32 %v531_v47, 0.0  ;;  %v402_v57 = vmul.f32 %v946_v0, %v267_v43  ;;  %v532_v58 = vadd.f32 %v956_v1, %v397_v50  ;;  %v533_v59 = vadd.f32 %v956_v1, %v398_v51  ;;  %v281_v43 = vld [vmem:[%s951_s20 + $0x358] sm:$0xff]  ;;  %v282_v44 = vld [vmem:[%s951_s20 + $0x360] sm:$0xff] }
  0x56   : > { %786 = vst [vmem:[%s979_s25 + $0x2b0] sm:$0xff] %v658_v49  ;;  %v534_v60 = vadd.f32 %v956_v1, %v399_v52  ;;  %v403_v61 = vmul.f32 %v946_v0, %v268_v48  ;;  %v535_v62 = vadd.f32 %v956_v1, %v400_v55  ;;  %v536_v63 = vadd.f32 %v956_v1, %v401_v56  ;;  %v283_v45 = vld [vmem:[%s951_s20 + $0x368] sm:$0xff]  ;;  %v1379_v48 = vld [vmem:[%s1490_s2] ss:$0 sm:$0xff]  ;;  %v284_v50 = vld [vmem:[%s951_s20 + $0x370] sm:$0xff] }
  0x57   : > { %787 = vst [vmem:[%s979_s25 + $0x2b8] sm:$0xff] %v659_v54  ;;  %v537_v2 = vadd.f32 %v956_v1, %v402_v57  ;;  %v404_v3 = vmul.f32 %v946_v0, %v269_v53  ;;  %v660_v7 = vmax.f32 %v532_v58, 0.0  ;;  %v661_v8 = vmax.f32 %v533_v59, 0.0  ;;  %v1389_v51 = vld [vmem:[%s1489_s1] ss:$0 sm:$0xff]  ;;  %v285_v55 = vld [vmem:[%s951_s20 + $0x378] sm:$0xff] }
  0x58   : > { %v662_v9 = vmax.f32 %v534_v60, 0.0  ;;  %v538_v10 = vadd.f32 %v956_v1, %v403_v61  ;;  %v663_v14 = vmax.f32 %v535_v62, 0.0  ;;  %v664_v15 = vmax.f32 %v536_v63, 0.0 }
  0x59   : > { %v665_v16 = vmax.f32 %v537_v2, 0.0  ;;  %v539_v17 = vadd.f32 %v956_v1, %v404_v3  ;;  %788 = vst [vmem:[%s979_s25 + $0x2c0] sm:$0xff] %v660_v7  ;;  %789 = vst [vmem:[%s979_s25 + $0x2c8] sm:$0xff] %v661_v8  ;;  %v405_v20 = vmul.f32 %v946_v0, %v270_v4  ;;  %v406_v21 = vmul.f32 %v946_v0, %v271_v5  ;;  %v287_v7 = vld [vmem:[%s951_s20 + $0x388] sm:$0xff]  ;;  %v288_v8 = vld [vmem:[%s951_s20 + $0x390] sm:$0xff] }
  0x5a   : > { %790 = vst [vmem:[%s979_s25 + $0x2d0] sm:$0xff] %v662_v9  ;;  %v666_v19 = vmax.f32 %v538_v10, 0.0  ;;  %v407_v22 = vmul.f32 %v946_v0, %v272_v6  ;;  %791 = vst [vmem:[%s979_s25 + $0x2d8] sm:$0xff] %v663_v14  ;;  %v408_v25 = vmul.f32 %v946_v0, %v273_v11  ;;  %v409_v26 = vmul.f32 %v946_v0, %v274_v12  ;;  %v286_v6 = vld [vmem:[%s951_s20 + $0x380] sm:$0xff] }
  0x5b   : > { %792 = vst [vmem:[%s979_s25 + $0x2e0] sm:$0xff] %v664_v15  ;;  %793 = vst [vmem:[%s979_s25 + $0x2e8] sm:$0xff] %v665_v16  ;;  %v667_v24 = vmax.f32 %v539_v17, 0.0  ;;  %v410_v27 = vmul.f32 %v946_v0, %v275_v13  ;;  %v540_v28 = vadd.f32 %v956_v1, %v405_v20  ;;  %v541_v29 = vadd.f32 %v956_v1, %v406_v21  ;;  %v289_v13 = vld [vmem:[%s951_s20 + $0x398] sm:$0xff]  ;;  %v290_v14 = vld [vmem:[%s951_s20 + $0x3a0] sm:$0xff] }
  0x5c   : > { %794 = vst [vmem:[%s979_s25 + $0x2f0] sm:$0xff] %v666_v19  ;;  %v542_v30 = vadd.f32 %v956_v1, %v407_v22  ;;  %v411_v31 = vmul.f32 %v946_v0, %v276_v18  ;;  %v543_v32 = vadd.f32 %v956_v1, %v408_v25  ;;  %v544_v33 = vadd.f32 %v956_v1, %v409_v26  ;;  %v291_v15 = vld [vmem:[%s951_s20 + $0x3a8] sm:$0xff]  ;;  %v292_v20 = vld [vmem:[%s951_s20 + $0x3b0] sm:$0xff]  ;;  %v293_v25 = vld [vmem:[%s951_s20 + $0x3b8] sm:$0xff] }
  0x5d   : > { %795 = vst [vmem:[%s979_s25 + $0x2f8] sm:$0xff] %v667_v24  ;;  %v545_v34 = vadd.f32 %v956_v1, %v410_v27  ;;  %v412_v35 = vmul.f32 %v946_v0, %v277_v23  ;;  %v668_v39 = vmax.f32 %v540_v28, 0.0  ;;  %v669_v40 = vmax.f32 %v541_v29, 0.0 }
  0x5e   : > { %v670_v41 = vmax.f32 %v542_v30, 0.0  ;;  %v546_v42 = vadd.f32 %v956_v1, %v411_v31  ;;  %v671_v46 = vmax.f32 %v543_v32, 0.0  ;;  %v672_v0 = vmax.f32 %v544_v33, 0.0 }
  0x5f   : > { %v673_v47 = vmax.f32 %v545_v34, 0.0  ;;  %v547_v49 = vadd.f32 %v1379_v48, %v412_v35  ;;  %796 = vst [vmem:[%s979_s25 + $0x300] sm:$0xff] %v668_v39  ;;  %797 = vst [vmem:[%s979_s25 + $0x308] sm:$0xff] %v669_v40  ;;  %v413_v52 = vmul.f32 %v1389_v51, %v278_v36  ;;  %v414_v53 = vmul.f32 %v1389_v51, %v279_v37  ;;  %v295_v39 = vld [vmem:[%s951_s20 + $0x3c8] sm:$0xff]  ;;  %v296_v40 = vld [vmem:[%s951_s20 + $0x3d0] sm:$0xff] }
  0x60   : > { %798 = vst [vmem:[%s979_s25 + $0x310] sm:$0xff] %v670_v41  ;;  %v674_v1 = vmax.f32 %v546_v42, 0.0  ;;  %v415_v54 = vmul.f32 %v1389_v51, %v280_v38  ;;  %799 = vst [vmem:[%s979_s25 + $0x318] sm:$0xff] %v671_v46  ;;  %v416_v57 = vmul.f32 %v1389_v51, %v281_v43  ;;  %v417_v58 = vmul.f32 %v1389_v51, %v282_v44  ;;  %v294_v38 = vld [vmem:[%s951_s20 + $0x3c0] sm:$0xff] }
  0x61   : > { %800 = vst [vmem:[%s979_s25 + $0x320] sm:$0xff] %v672_v0  ;;  %801 = vst [vmem:[%s979_s25 + $0x328] sm:$0xff] %v673_v47  ;;  %v675_v56 = vmax.f32 %v547_v49, 0.0  ;;  %v418_v59 = vmul.f32 %v1389_v51, %v283_v45  ;;  %v548_v60 = vadd.f32 %v1379_v48, %v413_v52  ;;  %v549_v61 = vadd.f32 %v1379_v48, %v414_v53  ;;  %v297_v45 = vld [vmem:[%s951_s20 + $0x3d8] sm:$0xff]  ;;  %v298_v46 = vld [vmem:[%s951_s20 + $0x3e0] sm:$0xff] }
  0x62   : > { %802 = vst [vmem:[%s979_s25 + $0x330] sm:$0xff] %v674_v1  ;;  %v550_v62 = vadd.f32 %v1379_v48, %v415_v54  ;;  %v419_v63 = vmul.f32 %v1389_v51, %v284_v50  ;;  %v551_v2 = vadd.f32 %v1379_v48, %v416_v57  ;;  %v552_v3 = vadd.f32 %v1379_v48, %v417_v58  ;;  %v299_v0 = vld [vmem:[%s951_s20 + $0x3e8] sm:$0xff]  ;;  %v300_v52 = vld [vmem:[%s951_s20 + $0x3f0] sm:$0xff]  ;;  %v301_v57 = vld [vmem:[%s951_s20 + $0x3f8] sm:$0xff] }
  0x63   : > { %803 = vst [vmem:[%s979_s25 + $0x338] sm:$0xff] %v675_v56  ;;  %v553_v4 = vadd.f32 %v1379_v48, %v418_v59  ;;  %v420_v5 = vmul.f32 %v1389_v51, %v285_v55  ;;  %v676_v9 = vmax.f32 %v548_v60, 0.0  ;;  %v677_v10 = vmax.f32 %v549_v61, 0.0 }
  0x64   : > { %v678_v11 = vmax.f32 %v550_v62, 0.0  ;;  %v554_v12 = vadd.f32 %v1379_v48, %v419_v63  ;;  %v679_v16 = vmax.f32 %v551_v2, 0.0  ;;  %v680_v17 = vmax.f32 %v552_v3, 0.0 }
  0x65   : > { %v681_v18 = vmax.f32 %v553_v4, 0.0  ;;  %v555_v19 = vadd.f32 %v1379_v48, %v420_v5  ;;  %804 = vst [vmem:[%s979_s25 + $0x340] sm:$0xff] %v676_v9  ;;  %805 = vst [vmem:[%s979_s25 + $0x348] sm:$0xff] %v677_v10  ;;  %v421_v22 = vmul.f32 %v1389_v51, %v286_v6  ;;  %v422_v23 = vmul.f32 %v1389_v51, %v287_v7 }
  0x66   : > { %806 = vst [vmem:[%s979_s25 + $0x350] sm:$0xff] %v678_v11  ;;  %v682_v21 = vmax.f32 %v554_v12, 0.0  ;;  %v423_v24 = vmul.f32 %v1389_v51, %v288_v8  ;;  %807 = vst [vmem:[%s979_s25 + $0x358] sm:$0xff] %v679_v16  ;;  %v424_v27 = vmul.f32 %v1389_v51, %v289_v13  ;;  %v425_v28 = vmul.f32 %v1389_v51, %v290_v14 }
  0x67   : > { %808 = vst [vmem:[%s979_s25 + $0x360] sm:$0xff] %v680_v17  ;;  %809 = vst [vmem:[%s979_s25 + $0x368] sm:$0xff] %v681_v18  ;;  %v683_v26 = vmax.f32 %v555_v19, 0.0  ;;  %v426_v29 = vmul.f32 %v1389_v51, %v291_v15  ;;  %v556_v30 = vadd.f32 %v1379_v48, %v421_v22  ;;  %v557_v31 = vadd.f32 %v1379_v48, %v422_v23 }
  0x68   : > { %810 = vst [vmem:[%s979_s25 + $0x370] sm:$0xff] %v682_v21  ;;  %v558_v32 = vadd.f32 %v1379_v48, %v423_v24  ;;  %v427_v33 = vmul.f32 %v1389_v51, %v292_v20  ;;  %v559_v34 = vadd.f32 %v1379_v48, %v424_v27  ;;  %v560_v35 = vadd.f32 %v1379_v48, %v425_v28 }
  0x69   : > { %811 = vst [vmem:[%s979_s25 + $0x378] sm:$0xff] %v683_v26  ;;  %v561_v36 = vadd.f32 %v1379_v48, %v426_v29  ;;  %v428_v37 = vmul.f32 %v1389_v51, %v293_v25  ;;  %v684_v41 = vmax.f32 %v556_v30, 0.0  ;;  %v685_v42 = vmax.f32 %v557_v31, 0.0 }
  0x6a   : > { %v686_v43 = vmax.f32 %v558_v32, 0.0  ;;  %v562_v44 = vadd.f32 %v1379_v48, %v427_v33  ;;  %v687_v47 = vmax.f32 %v559_v34, 0.0  ;;  %v688_v49 = vmax.f32 %v560_v35, 0.0 }
  0x6b   : > { %v689_v50 = vmax.f32 %v561_v36, 0.0  ;;  %v563_v1 = vadd.f32 %v1379_v48, %v428_v37  ;;  %812 = vst [vmem:[%s979_s25 + $0x380] sm:$0xff] %v684_v41  ;;  %813 = vst [vmem:[%s979_s25 + $0x388] sm:$0xff] %v685_v42  ;;  %v429_v54 = vmul.f32 %v1389_v51, %v294_v38  ;;  %v430_v55 = vmul.f32 %v1389_v51, %v295_v39 }
  0x6c   : > { %814 = vst [vmem:[%s979_s25 + $0x390] sm:$0xff] %v686_v43  ;;  %v690_v53 = vmax.f32 %v562_v44, 0.0  ;;  %v431_v56 = vmul.f32 %v1389_v51, %v296_v40  ;;  %815 = vst [vmem:[%s979_s25 + $0x398] sm:$0xff] %v687_v47  ;;  %v432_v59 = vmul.f32 %v1389_v51, %v297_v45  ;;  %v433_v60 = vmul.f32 %v1389_v51, %v298_v46 }
  0x6d   : > { %816 = vst [vmem:[%s979_s25 + $0x3a0] sm:$0xff] %v688_v49  ;;  %817 = vst [vmem:[%s979_s25 + $0x3a8] sm:$0xff] %v689_v50  ;;  %v691_v58 = vmax.f32 %v563_v1, 0.0  ;;  %v434_v61 = vmul.f32 %v1389_v51, %v299_v0  ;;  %v564_v62 = vadd.f32 %v1379_v48, %v429_v54  ;;  %v565_v63 = vadd.f32 %v1379_v48, %v430_v55 }
  0x6e   : > { %818 = vst [vmem:[%s979_s25 + $0x3b0] sm:$0xff] %v690_v53  ;;  %v566_v2 = vadd.f32 %v1379_v48, %v431_v56  ;;  %v435_v3 = vmul.f32 %v1389_v51, %v300_v52  ;;  %v567_v4 = vadd.f32 %v1379_v48, %v432_v59  ;;  %v568_v5 = vadd.f32 %v1379_v48, %v433_v60 }
  0x6f   : > { %819 = vst [vmem:[%s979_s25 + $0x3b8] sm:$0xff] %v691_v58  ;;  %v569_v6 = vadd.f32 %v1379_v48, %v434_v61  ;;  %v436_v7 = vmul.f32 %v1389_v51, %v301_v57  ;;  %v692_v8 = vmax.f32 %v564_v62, 0.0  ;;  %v693_v9 = vmax.f32 %v565_v63, 0.0 }
  0x70   : > { %v694_v10 = vmax.f32 %v566_v2, 0.0  ;;  %v570_v11 = vadd.f32 %v1379_v48, %v435_v3  ;;  %v695_v12 = vmax.f32 %v567_v4, 0.0  ;;  %v696_v13 = vmax.f32 %v568_v5, 0.0 }
  0x71   : > { %v697_v14 = vmax.f32 %v569_v6, 0.0  ;;  %v571_v15 = vadd.f32 %v1379_v48, %v436_v7  ;;  %820 = vst [vmem:[%s979_s25 + $0x3c0] sm:$0xff] %v692_v8  ;;  %821 = vst [vmem:[%s979_s25 + $0x3c8] sm:$0xff] %v693_v9 }
  0x72   : > { %822 = vst [vmem:[%s979_s25 + $0x3d0] sm:$0xff] %v694_v10  ;;  %v698_v16 = vmax.f32 %v570_v11, 0.0  ;;  %823 = vst [vmem:[%s979_s25 + $0x3d8] sm:$0xff] %v695_v12 }
  0x73   : > { %824 = vst [vmem:[%s979_s25 + $0x3e0] sm:$0xff] %v696_v13  ;;  %825 = vst [vmem:[%s979_s25 + $0x3e8] sm:$0xff] %v697_v14  ;;  %v699_v51 = vmax.f32 %v571_v15, 0.0 }
  0x74   : > { %826 = vst [vmem:[%s979_s25 + $0x3f0] sm:$0xff] %v698_v16 }
  0x75   : > { %827 = vst [vmem:[%s979_s25 + $0x3f8] sm:$0xff] %v699_v51 }
  0x76 PF: > { %s13_s12 = sadd.s32 1, %s913_s12  }
  0x77   : > { %p10_p4 = scmp.ge.s32.totalorder %s13_s12, 4  }
  0x79   :  { %12 = sbr.rel (!%p10_p4) target bundleno = 1 (0x1), region = 62 }

// kernel: _lambda_.17
= control target key start
LH: loop header
LB: loop body
LE: loop exit
PB: predicated region body
PF: predicated region fallthrough
CT: control target
= control target key end

     0   :  { %s1566_s9 = smov 0   ;;  %s1568_s10 = smov 0   ;;  %s1823_s0 = inlined_call_operand.vmem [shape: f32[4,2048,32], index: 0, kind: input, shape index: {}]   ;;  %s1824_s1 = inlined_call_operand.vmem [shape: f32[4,32,128], index: 1, kind: input, shape index: {}]   ;;  %s1825_s2 = inlined_call_operand.vmem [shape: f32[4,2048,128], index: 2, kind: output, shape index: {}]  }
   0x1   :  { %s1570_s11 = smov 0   ;;  %s1572_s12 = smov 0  }
   0x2   :  { %s1574_s13 = smov 0  }
   0x3 LB: > { %s21_s14 = sadd.s32 1, %s1541_s11  ;;  %s24_s15 = sadd.s32 1, %s1545_s12  ;;  %s1549_s13 = sphi %s1574_s13, %s12_s13   ;;  %s1545_s12 = sphi %s1572_s12, %s1829_s12   ;;  %s1541_s11 = sphi %s1570_s11, %s1828_s11   ;;  %s1537_s10 = sphi %s1568_s10, %s1827_s10   ;;  %s1533_s9 = sphi %s1566_s9, %s1826_s9  }
   0x4   : > { %p22_p0 = scmp.ge.s32.totalorder %s21_s14, 4  ;;  %p1083_p1 = scmp.ge.s32.totalorder %s1549_s13, 1 }
   0x5   : > { %p143_p2 = scmp.lt.s32.totalorder %s1549_s13, 17 }
   0x6   : > { %s1831_s14 = smov (%p22_p0, %s21_s14), 0  ;;  %s1833_s15 = smov (!%p22_p0, %s24_s15), %s1545_s12 }
   0x7   : > { %p144_p3 = pnand %p1083_p1, %p143_p2  ;;  %p26_p4 = scmp.ge.s32.totalorder %s1833_s15, 4 }
   0x8   : > { %s1084_s16 = sshll.u32 (!%p144_p3), %s1533_s9, 6  ;;  %p179_p5 = scmp.lt.s32.totalorder (!%p144_p3), %s1537_s10, 3  ;;  %vm271_vm0 = vcmask (!%p144_p3), 261120  }
   0x9   : > { %s1835_s15 = smov (%p26_p4, %s1833_s15), 0  ;;  %147 = sbr.rel (%p144_p3) target bundleno = 318 (0x13e), region = 28 }
   0xa   : > { %p181_p6 = scmp.lt.s32.totalorder (!%p144_p3), %s1084_s16, 255 }
  0x10   : > { %s1837_s10 = smov (!%p179_p5, %s1537_s10), 3  ;;  %s1839_s16 = smov (!%p181_p6, %s1084_s16), 255 }
  0x11   : > { %s1085_s17 = sshll.u32 %s1837_s10, 8  ;;  %s1158_s18 = sshll.u32 %s1837_s10, 5 }
  0x12   : > { %s1596_s19 = sadd.s32 %s1085_s17, %s1839_s16  ;;  %s192_s22 = scalar_lea.vmem %s1824_s1, %s1158_s18 }
  0x13   : > { %s1086_s23 = sshll.u32 %s1596_s19, 3  ;;  %v267_v0 = vld [vmem:[%s192_s22] sm:$0xff]  ;;  %v268_v1 = vld [vmem:[%s192_s22 + $0x8] sm:$0xff]  ;;  %v269_v2 = vld [vmem:[%s192_s22 + $0x10] sm:$0xff] }
  0x14   : > { %s1607_s26 = scalar_lea.vmem %s1823_s0, %s1086_s23  ;;  %v1331_v3 = vpack.c.bf16 %v268_v1, %v267_v0  ;;  %v270_v4 = vld [vmem:[%s192_s22 + $0x18] sm:$0xff]  ;;  %s1742_s29 = scalar_lea.vmem %s1825_s2, %s1086_s23 }
  0x15   : > { %v1335_v5 = vpack.c.bf16 %v270_v4, %v269_v2  ;;  %v203_v6 = vld [vmem:[%s1607_s26] sm:$0xff]  ;;  %v204_v8 = vld [vmem:[%s1607_s26 + $0x8] sm:$0xff]  ;;  %v205_v10 = vld [vmem:[%s1607_s26 + $0x10] sm:$0xff] }
  0x16   : > { %1332 = vmatprep.subr.bf16.mxu0 %v1331_v3  ;;  %1339 = vmatprep.subr.bf16.mxu1 %v1331_v3  ;;  %v235_v7 = vld [vmem:[%s1607_s26 + $0x100] sm:$0xff]  ;;  %v236_v9 = vld [vmem:[%s1607_s26 + $0x108] sm:$0xff]  ;;  %v237_v11 = vld [vmem:[%s1607_s26 + $0x110] sm:$0xff] }
  0x17   : > { %1334 = vmatpush3.bf16.msra.mxu0 %v1331_v3  ;;  %1341 = vmatpush3.bf16.msra.mxu1 %v1331_v3  ;;  %v206_v12 = vld [vmem:[%s1607_s26 + $0x18] sm:$0xff]  ;;  %v207_v14 = vld [vmem:[%s1607_s26 + $0x20] sm:$0xff]  ;;  %v208_v16 = vld [vmem:[%s1607_s26 + $0x28] sm:$0xff] }
  0x18   : > { %1336 = vmatprep.subr.bf16.mxu0 %v1335_v5  ;;  %1340 = vmatprep.subr.bf16.mxu1 %v1335_v5  ;;  %v238_v13 = vld [vmem:[%s1607_s26 + $0x118] sm:$0xff]  ;;  %v239_v15 = vld [vmem:[%s1607_s26 + $0x120] sm:$0xff]  ;;  %v240_v17 = vld [vmem:[%s1607_s26 + $0x128] sm:$0xff] }
  0x19   : > { %1235 = vmatprep.mubr.msk.f32.mxu0 %vm271_vm0, %v203_v6  ;;  %1283 = vmatprep.mubr.msk.f32.mxu1 %vm271_vm0, %v235_v7  ;;  %v209_v18 = vld [vmem:[%s1607_s26 + $0x30] sm:$0xff]  ;;  %v210_v20 = vld [vmem:[%s1607_s26 + $0x38] sm:$0xff]  ;;  %v211_v22 = vld [vmem:[%s1607_s26 + $0x40] sm:$0xff] }
  0x1a   : > { %v241_v19 = vld [vmem:[%s1607_s26 + $0x130] sm:$0xff]  ;;  %v242_v21 = vld [vmem:[%s1607_s26 + $0x138] sm:$0xff]  ;;  %v243_v23 = vld [vmem:[%s1607_s26 + $0x140] sm:$0xff] }
  0x1b   : > { %1338 = vmatpush3.bf16.msra.mxu0 %v1335_v5  ;;  %1342 = vmatpush3.bf16.msra.mxu1 %v1335_v5  ;;  %v212_v24 = vld [vmem:[%s1607_s26 + $0x48] sm:$0xff]  ;;  %v213_v26 = vld [vmem:[%s1607_s26 + $0x50] sm:$0xff]  ;;  %v214_v28 = vld [vmem:[%s1607_s26 + $0x58] sm:$0xff] }
  0x1c   : > { %v244_v25 = vld [vmem:[%s1607_s26 + $0x148] sm:$0xff]  ;;  %v245_v27 = vld [vmem:[%s1607_s26 + $0x150] sm:$0xff]  ;;  %v246_v29 = vld [vmem:[%s1607_s26 + $0x158] sm:$0xff] }
  0x1d   : > { %v215_v30 = vld [vmem:[%s1607_s26 + $0x60] sm:$0xff]  ;;  %v216_v32 = vld [vmem:[%s1607_s26 + $0x68] sm:$0xff]  ;;  %v217_v34 = vld [vmem:[%s1607_s26 + $0x70] sm:$0xff] }
  0x1e   : > { %1236 = vmatmul.mubr.msk.f32.vlgmr.msra.gmra.mrb[0].mxu0 %vm271_vm0, %v204_v8  ;;  %1284 = vmatmul.mubr.msk.f32.vlgmr.msra.gmra.mrb[0].mxu1 %vm271_vm0, %v236_v9  ;;  %v247_v31 = vld [vmem:[%s1607_s26 + $0x160] sm:$0xff]  ;;  %v248_v33 = vld [vmem:[%s1607_s26 + $0x168] sm:$0xff]  ;;  %v249_v35 = vld [vmem:[%s1607_s26 + $0x170] sm:$0xff] }
  0x1f   : > { %1238 = vmatprep.mubr.msk.f32.mxu0 %vm271_vm0, %v205_v10  ;;  %1286 = vmatprep.mubr.msk.f32.mxu1 %vm271_vm0, %v237_v11  ;;  %v218_v36 = vld [vmem:[%s1607_s26 + $0x78] sm:$0xff]  ;;  %v219_v38 = vld [vmem:[%s1607_s26 + $0x80] sm:$0xff]  ;;  %v220_v40 = vld [vmem:[%s1607_s26 + $0x88] sm:$0xff] }
  0x20   : > { %v250_v37 = vld [vmem:[%s1607_s26 + $0x178] sm:$0xff]  ;;  %v251_v39 = vld [vmem:[%s1607_s26 + $0x180] sm:$0xff]  ;;  %v252_v41 = vld [vmem:[%s1607_s26 + $0x188] sm:$0xff] }
  0x21   : > { %v221_v42 = vld [vmem:[%s1607_s26 + $0x90] sm:$0xff]  ;;  %v222_v44 = vld [vmem:[%s1607_s26 + $0x98] sm:$0xff]  ;;  %v223_v46 = vld [vmem:[%s1607_s26 + $0xa0] sm:$0xff] }
  0x22   : > { %1239 = vmatmul.mubr.msk.f32.gmra.mrb[2].mxu0 %vm271_vm0, %v206_v12  ;;  %1287 = vmatmul.mubr.msk.f32.gmra.mrb[2].mxu1 %vm271_vm0, %v238_v13  ;;  %v253_v43 = vld [vmem:[%s1607_s26 + $0x190] sm:$0xff]  ;;  %v254_v45 = vld [vmem:[%s1607_s26 + $0x198] sm:$0xff]  ;;  %v255_v47 = vld [vmem:[%s1607_s26 + $0x1a0] sm:$0xff] }
  0x23   : > { %1241 = vmatprep.mubr.msk.f32.mxu0 %vm271_vm0, %v207_v14  ;;  %1289 = vmatprep.mubr.msk.f32.mxu1 %vm271_vm0, %v239_v15  ;;  %v224_v48 = vld [vmem:[%s1607_s26 + $0xa8] sm:$0xff]  ;;  %v225_v50 = vld [vmem:[%s1607_s26 + $0xb0] sm:$0xff]  ;;  %v226_v52 = vld [vmem:[%s1607_s26 + $0xb8] sm:$0xff] }
  0x24   : > { %v256_v49 = vld [vmem:[%s1607_s26 + $0x1a8] sm:$0xff]  ;;  %v257_v51 = vld [vmem:[%s1607_s26 + $0x1b0] sm:$0xff]  ;;  %v258_v53 = vld [vmem:[%s1607_s26 + $0x1b8] sm:$0xff] }
  0x25   : > { %v227_v54 = vld [vmem:[%s1607_s26 + $0xc0] sm:$0xff]  ;;  %v228_v56 = vld [vmem:[%s1607_s26 + $0xc8] sm:$0xff]  ;;  %v229_v58 = vld [vmem:[%s1607_s26 + $0xd0] sm:$0xff] }
  0x26   : > { %1242 = vmatmul.mubr.msk.f32.gmra.mrb[4].mxu0 %vm271_vm0, %v208_v16  ;;  %1290 = vmatmul.mubr.msk.f32.gmra.mrb[4].mxu1 %vm271_vm0, %v240_v17  ;;  %v259_v55 = vld [vmem:[%s1607_s26 + $0x1c0] sm:$0xff]  ;;  %v260_v57 = vld [vmem:[%s1607_s26 + $0x1c8] sm:$0xff]  ;;  %v261_v59 = vld [vmem:[%s1607_s26 + $0x1d0] sm:$0xff] }
  0x27   : > { %1244 = vmatprep.mubr.msk.f32.mxu0 %vm271_vm0, %v209_v18  ;;  %1292 = vmatprep.mubr.msk.f32.mxu1 %vm271_vm0, %v241_v19  ;;  %v230_v60 = vld [vmem:[%s1607_s26 + $0xd8] sm:$0xff]  ;;  %v231_v62 = vld [vmem:[%s1607_s26 + $0xe0] sm:$0xff]  ;;  %v232_v0 = vld [vmem:[%s1607_s26 + $0xe8] sm:$0xff] }
  0x28   : > { %v262_v61 = vld [vmem:[%s1607_s26 + $0x1d8] sm:$0xff]  ;;  %v263_v63 = vld [vmem:[%s1607_s26 + $0x1e0] sm:$0xff]  ;;  %v264_v1 = vld [vmem:[%s1607_s26 + $0x1e8] sm:$0xff] }
  0x29   : > { %v233_v2 = vld [vmem:[%s1607_s26 + $0xf0] sm:$0xff]  ;;  %v234_v4 = vld [vmem:[%s1607_s26 + $0xf8] sm:$0xff] }
  0x2a   : > { %1245 = vmatmul.mubr.msk.f32.gmra.mrb[6].mxu0 %vm271_vm0, %v210_v20  ;;  %1293 = vmatmul.mubr.msk.f32.gmra.mrb[6].mxu1 %vm271_vm0, %v242_v21  ;;  %v265_v3 = vld [vmem:[%s1607_s26 + $0x1f0] sm:$0xff]  ;;  %v266_v5 = vld [vmem:[%s1607_s26 + $0x1f8] sm:$0xff] }
  0x2b   : > { %1247 = vmatprep.mubr.msk.f32.mxu0 %vm271_vm0, %v211_v22  ;;  %1295 = vmatprep.mubr.msk.f32.mxu1 %vm271_vm0, %v243_v23 }
  0x2e   : > { %1248 = vmatmul.mubr.msk.f32.gmra.mrb[8].mxu0 %vm271_vm0, %v212_v24  ;;  %1296 = vmatmul.mubr.msk.f32.gmra.mrb[8].mxu1 %vm271_vm0, %v244_v25 }
  0x2f   : > { %1250 = vmatprep.mubr.msk.f32.mxu0 %vm271_vm0, %v213_v26  ;;  %1298 = vmatprep.mubr.msk.f32.mxu1 %vm271_vm0, %v245_v27 }
  0x32   : > { %1251 = vmatmul.mubr.msk.f32.gmra.mrb[10].mxu0 %vm271_vm0, %v214_v28  ;;  %1299 = vmatmul.mubr.msk.f32.gmra.mrb[10].mxu1 %vm271_vm0, %v246_v29 }
  0x33   : > { %1253 = vmatprep.mubr.msk.f32.mxu0 %vm271_vm0, %v215_v30  ;;  %1301 = vmatprep.mubr.msk.f32.mxu1 %vm271_vm0, %v247_v31 }
  0x36   : > { %1254 = vmatmul.mubr.msk.f32.gmra.mrb[12].mxu0 %vm271_vm0, %v216_v32  ;;  %1302 = vmatmul.mubr.msk.f32.gmra.mrb[12].mxu1 %vm271_vm0, %v248_v33 }
  0x37   : > { %1256 = vmatprep.mubr.msk.f32.mxu0 %vm271_vm0, %v217_v34  ;;  %1304 = vmatprep.mubr.msk.f32.mxu1 %vm271_vm0, %v249_v35 }
  0x3a   : > { %1257 = vmatmul.mubr.msk.f32.gmra.mrb[14].mxu0 %vm271_vm0, %v218_v36  ;;  %1305 = vmatmul.mubr.msk.f32.gmra.mrb[14].mxu1 %vm271_vm0, %v250_v37 }
  0x3b   : > { %1259 = vmatprep.mubr.msk.f32.mxu0 %vm271_vm0, %v219_v38  ;;  %1307 = vmatprep.mubr.msk.f32.mxu1 %vm271_vm0, %v251_v39 }
  0x3e   : > { %1260 = vmatmul.mubr.msk.f32.gmra.mrb[16].mxu0 %vm271_vm0, %v220_v40  ;;  %1308 = vmatmul.mubr.msk.f32.gmra.mrb[16].mxu1 %vm271_vm0, %v252_v41 }
  0x3f   : > { %1262 = vmatprep.mubr.msk.f32.mxu0 %vm271_vm0, %v221_v42  ;;  %1310 = vmatprep.mubr.msk.f32.mxu1 %vm271_vm0, %v253_v43 }
  0x42   : > { %1263 = vmatmul.mubr.msk.f32.gmra.mrb[18].mxu0 %vm271_vm0, %v222_v44  ;;  %1311 = vmatmul.mubr.msk.f32.gmra.mrb[18].mxu1 %vm271_vm0, %v254_v45 }
  0x43   : > { %1265 = vmatprep.mubr.msk.f32.mxu0 %vm271_vm0, %v223_v46  ;;  %1313 = vmatprep.mubr.msk.f32.mxu1 %vm271_vm0, %v255_v47 }
  0x46   : > { %1266 = vmatmul.mubr.msk.f32.gmra.mrb[20].mxu0 %vm271_vm0, %v224_v48  ;;  %1314 = vmatmul.mubr.msk.f32.gmra.mrb[20].mxu1 %vm271_vm0, %v256_v49 }
  0x47   : > { %1268 = vmatprep.mubr.msk.f32.mxu0 %vm271_vm0, %v225_v50  ;;  %1316 = vmatprep.mubr.msk.f32.mxu1 %vm271_vm0, %v257_v51 }
  0x4a   : > { %1269 = vmatmul.mubr.msk.f32.gmra.mrb[22].mxu0 %vm271_vm0, %v226_v52  ;;  %1317 = vmatmul.mubr.msk.f32.gmra.mrb[22].mxu1 %vm271_vm0, %v258_v53 }
  0x4b   : > { %1271 = vmatprep.mubr.msk.f32.mxu0 %vm271_vm0, %v227_v54  ;;  %1319 = vmatprep.mubr.msk.f32.mxu1 %vm271_vm0, %v259_v55 }
  0x4e   : > { %1272 = vmatmul.mubr.msk.f32.gmra.mrb[24].mxu0 %vm271_vm0, %v228_v56  ;;  %1320 = vmatmul.mubr.msk.f32.gmra.mrb[24].mxu1 %vm271_vm0, %v260_v57 }
  0x4f   : > { %1274 = vmatprep.mubr.msk.f32.mxu0 %vm271_vm0, %v229_v58  ;;  %1322 = vmatprep.mubr.msk.f32.mxu1 %vm271_vm0, %v261_v59 }
  0x52   : > { %1275 = vmatmul.mubr.msk.f32.gmra.mrb[26].mxu0 %vm271_vm0, %v230_v60  ;;  %1323 = vmatmul.mubr.msk.f32.gmra.mrb[26].mxu1 %vm271_vm0, %v262_v61 }
  0x53   : > { %1277 = vmatprep.mubr.msk.f32.mxu0 %vm271_vm0, %v231_v62  ;;  %1325 = vmatprep.mubr.msk.f32.mxu1 %vm271_vm0, %v263_v63 }
  0x56   : > { %1278 = vmatmul.mubr.msk.f32.gmra.mrb[28].mxu0 %vm271_vm0, %v232_v0  ;;  %1326 = vmatmul.mubr.msk.f32.gmra.mrb[28].mxu1 %vm271_vm0, %v264_v1 }
  0x57   : > { %1280 = vmatprep.mubr.msk.f32.mxu0 %vm271_vm0, %v233_v2  ;;  %1328 = vmatprep.mubr.msk.f32.mxu1 %vm271_vm0, %v265_v3 }
  0x5a   : > { %1281 = vmatmul.mubr.msk.f32.gmra.mrb[30].mxu0 %vm271_vm0, %v234_v4  ;;  %1329 = vmatmul.mubr.msk.f32.gmra.mrb[30].mxu1 %vm271_vm0, %v266_v5 }
  0xf1   : > { %v1237_v6 = vpop.f32.mrb[0].mxu0  ;;  %v1285_v7 = vpop.f32.mrb[0].mxu1 }
  0xf2   : > { %1383 = vtanh.f32 %v1237_v6  ;;  %v530_v8 = vpop.f32.mrb[1].mxu0  ;;  %v690_v9 = vpop.f32.mrb[1].mxu1 }
  0xf3   : > { %1385 = vtanh.f32 %v1285_v7 }
  0xf4   : > { %1387 = vtanh.f32 %v530_v8 }
  0xf5   : > { %1389 = vtanh.f32 %v690_v9  ;;  %v1240_v10 = vpop.f32.mrb[2].mxu0  ;;  %v1288_v11 = vpop.f32.mrb[2].mxu1 }
  0xf6   : > { %1391 = vtanh.f32 %v1240_v10  ;;  %v540_v12 = vpop.f32.mrb[3].mxu0  ;;  %v700_v13 = vpop.f32.mrb[3].mxu1 }
  0xf7   : > { %1393 = vtanh.f32 %v1288_v11 }
  0xf8   : > { %1395 = vtanh.f32 %v540_v12 }
  0xf9   : > { %1397 = vtanh.f32 %v700_v13  ;;  %v1243_v14 = vpop.f32.mrb[4].mxu0  ;;  %v1291_v15 = vpop.f32.mrb[4].mxu1 }
  0xfa   : > { %1399 = vtanh.f32 %v1243_v14  ;;  %v550_v16 = vpop.f32.mrb[5].mxu0  ;;  %v710_v17 = vpop.f32.mrb[5].mxu1 }
  0xfb   : > { %1401 = vtanh.f32 %v1291_v15 }
  0xfc   : > { %v1384_v18 = vpop.eup %1383  ;;  %1403 = vtanh.f32 %v550_v16 }
  0xfd   : > { %v1386_v19 = vpop.eup %1385  ;;  %914 = vst [vmem:[%s1742_s29 + $0x8] sm:$0xff] %v1384_v18  ;;  %1405 = vtanh.f32 %v710_v17  ;;  %v1246_v20 = vpop.f32.mrb[6].mxu0 }
  0xfe   : > { %v1294_v21 = vpop.f32.mrb[6].mxu1  ;;  %v1388_v22 = vpop.eup %1387  ;;  %946 = vst [vmem:[%s1742_s29 + $0x108] sm:$0xff] %v1386_v19  ;;  %1407 = vtanh.f32 %v1246_v20 }
  0xff   : > { %v560_v23 = vpop.f32.mrb[7].mxu0  ;;  %v720_v24 = vpop.f32.mrb[7].mxu1  ;;  %913 = vst [vmem:[%s1742_s29] sm:$0xff] %v1388_v22  ;;  %1409 = vtanh.f32 %v1294_v21 }
 0x100   : > { %v1390_v25 = vpop.eup %1389  ;;  %1411 = vtanh.f32 %v560_v23 }
 0x101   : > { %v1392_v26 = vpop.eup %1391  ;;  %945 = vst [vmem:[%s1742_s29 + $0x100] sm:$0xff] %v1390_v25  ;;  %1413 = vtanh.f32 %v720_v24  ;;  %v1249_v28 = vpop.f32.mrb[8].mxu0 }
 0x102   : > { %v1394_v27 = vpop.eup %1393  ;;  %916 = vst [vmem:[%s1742_s29 + $0x18] sm:$0xff] %v1392_v26  ;;  %v1297_v29 = vpop.f32.mrb[8].mxu1  ;;  %1415 = vtanh.f32 %v1249_v28 }
 0x103   : > { %v1396_v30 = vpop.eup %1395  ;;  %948 = vst [vmem:[%s1742_s29 + $0x118] sm:$0xff] %v1394_v27  ;;  %v570_v31 = vpop.f32.mrb[9].mxu0  ;;  %1417 = vtanh.f32 %v1297_v29 }
 0x104   : > { %v730_v32 = vpop.f32.mrb[9].mxu1  ;;  %v1398_v33 = vpop.eup %1397  ;;  %915 = vst [vmem:[%s1742_s29 + $0x10] sm:$0xff] %v1396_v30  ;;  %1419 = vtanh.f32 %v570_v31 }
 0x105   : > { %v1400_v34 = vpop.eup %1399  ;;  %947 = vst [vmem:[%s1742_s29 + $0x110] sm:$0xff] %v1398_v33  ;;  %1421 = vtanh.f32 %v730_v32  ;;  %v1252_v36 = vpop.f32.mrb[10].mxu0 }
 0x106   : > { %v1402_v35 = vpop.eup %1401  ;;  %918 = vst [vmem:[%s1742_s29 + $0x28] sm:$0xff] %v1400_v34  ;;  %v1300_v37 = vpop.f32.mrb[10].mxu1  ;;  %1423 = vtanh.f32 %v1252_v36 }
 0x107   : > { %v1404_v38 = vpop.eup %1403  ;;  %950 = vst [vmem:[%s1742_s29 + $0x128] sm:$0xff] %v1402_v35  ;;  %v580_v39 = vpop.f32.mrb[11].mxu0  ;;  %1425 = vtanh.f32 %v1300_v37 }
 0x108   : > { %v740_v40 = vpop.f32.mrb[11].mxu1  ;;  %v1406_v41 = vpop.eup %1405  ;;  %917 = vst [vmem:[%s1742_s29 + $0x20] sm:$0xff] %v1404_v38  ;;  %1427 = vtanh.f32 %v580_v39 }
 0x109   : > { %v1408_v42 = vpop.eup %1407  ;;  %949 = vst [vmem:[%s1742_s29 + $0x120] sm:$0xff] %v1406_v41  ;;  %1429 = vtanh.f32 %v740_v40  ;;  %v1255_v44 = vpop.f32.mrb[12].mxu0 }
 0x10a   : > { %v1410_v43 = vpop.eup %1409  ;;  %920 = vst [vmem:[%s1742_s29 + $0x38] sm:$0xff] %v1408_v42  ;;  %v1303_v45 = vpop.f32.mrb[12].mxu1  ;;  %1431 = vtanh.f32 %v1255_v44 }
 0x10b   : > { %v1412_v46 = vpop.eup %1411  ;;  %952 = vst [vmem:[%s1742_s29 + $0x138] sm:$0xff] %v1410_v43  ;;  %v590_v47 = vpop.f32.mrb[13].mxu0  ;;  %1433 = vtanh.f32 %v1303_v45 }
 0x10c   : > { %v750_v48 = vpop.f32.mrb[13].mxu1  ;;  %v1414_v49 = vpop.eup %1413  ;;  %919 = vst [vmem:[%s1742_s29 + $0x30] sm:$0xff] %v1412_v46  ;;  %1435 = vtanh.f32 %v590_v47 }
 0x10d   : > { %v1416_v50 = vpop.eup %1415  ;;  %951 = vst [vmem:[%s1742_s29 + $0x130] sm:$0xff] %v1414_v49  ;;  %1437 = vtanh.f32 %v750_v48  ;;  %v1258_v52 = vpop.f32.mrb[14].mxu0 }
 0x10e   : > { %v1418_v51 = vpop.eup %1417  ;;  %922 = vst [vmem:[%s1742_s29 + $0x48] sm:$0xff] %v1416_v50  ;;  %v1306_v53 = vpop.f32.mrb[14].mxu1  ;;  %1439 = vtanh.f32 %v1258_v52 }
 0x10f   : > { %v1420_v54 = vpop.eup %1419  ;;  %954 = vst [vmem:[%s1742_s29 + $0x148] sm:$0xff] %v1418_v51  ;;  %v600_v55 = vpop.f32.mrb[15].mxu0  ;;  %1441 = vtanh.f32 %v1306_v53 }
 0x110   : > { %v760_v56 = vpop.f32.mrb[15].mxu1  ;;  %v1422_v57 = vpop.eup %1421  ;;  %921 = vst [vmem:[%s1742_s29 + $0x40] sm:$0xff] %v1420_v54  ;;  %1443 = vtanh.f32 %v600_v55 }
 0x111   : > { %v1424_v58 = vpop.eup %1423  ;;  %953 = vst [vmem:[%s1742_s29 + $0x140] sm:$0xff] %v1422_v57  ;;  %1445 = vtanh.f32 %v760_v56  ;;  %v1261_v60 = vpop.f32.mrb[16].mxu0 }
 0x112   : > { %v1426_v59 = vpop.eup %1425  ;;  %924 = vst [vmem:[%s1742_s29 + $0x58] sm:$0xff] %v1424_v58  ;;  %v1309_v61 = vpop.f32.mrb[16].mxu1  ;;  %1447 = vtanh.f32 %v1261_v60 }
 0x113   : > { %v1428_v62 = vpop.eup %1427  ;;  %956 = vst [vmem:[%s1742_s29 + $0x158] sm:$0xff] %v1426_v59  ;;  %v610_v63 = vpop.f32.mrb[17].mxu0  ;;  %1449 = vtanh.f32 %v1309_v61 }
 0x114   : > { %v770_v0 = vpop.f32.mrb[17].mxu1  ;;  %v1430_v1 = vpop.eup %1429  ;;  %923 = vst [vmem:[%s1742_s29 + $0x50] sm:$0xff] %v1428_v62  ;;  %1451 = vtanh.f32 %v610_v63 }
 0x115   : > { %v1432_v2 = vpop.eup %1431  ;;  %955 = vst [vmem:[%s1742_s29 + $0x150] sm:$0xff] %v1430_v1  ;;  %1453 = vtanh.f32 %v770_v0  ;;  %v1264_v4 = vpop.f32.mrb[18].mxu0 }
 0x116   : > { %v1434_v3 = vpop.eup %1433  ;;  %926 = vst [vmem:[%s1742_s29 + $0x68] sm:$0xff] %v1432_v2  ;;  %v1312_v5 = vpop.f32.mrb[18].mxu1  ;;  %1455 = vtanh.f32 %v1264_v4 }
 0x117   : > { %v1436_v6 = vpop.eup %1435  ;;  %958 = vst [vmem:[%s1742_s29 + $0x168] sm:$0xff] %v1434_v3  ;;  %v620_v7 = vpop.f32.mrb[19].mxu0  ;;  %1457 = vtanh.f32 %v1312_v5 }
 0x118   : > { %v780_v8 = vpop.f32.mrb[19].mxu1  ;;  %v1438_v9 = vpop.eup %1437  ;;  %925 = vst [vmem:[%s1742_s29 + $0x60] sm:$0xff] %v1436_v6  ;;  %1459 = vtanh.f32 %v620_v7 }
 0x119   : > { %v1440_v10 = vpop.eup %1439  ;;  %957 = vst [vmem:[%s1742_s29 + $0x160] sm:$0xff] %v1438_v9  ;;  %1461 = vtanh.f32 %v780_v8  ;;  %v1267_v12 = vpop.f32.mrb[20].mxu0 }
 0x11a   : > { %v1442_v11 = vpop.eup %1441  ;;  %928 = vst [vmem:[%s1742_s29 + $0x78] sm:$0xff] %v1440_v10  ;;  %v1315_v13 = vpop.f32.mrb[20].mxu1  ;;  %1463 = vtanh.f32 %v1267_v12 }
 0x11b   : > { %v1444_v14 = vpop.eup %1443  ;;  %960 = vst [vmem:[%s1742_s29 + $0x178] sm:$0xff] %v1442_v11  ;;  %v630_v15 = vpop.f32.mrb[21].mxu0  ;;  %1465 = vtanh.f32 %v1315_v13 }
 0x11c   : > { %v790_v16 = vpop.f32.mrb[21].mxu1  ;;  %v1446_v17 = vpop.eup %1445  ;;  %927 = vst [vmem:[%s1742_s29 + $0x70] sm:$0xff] %v1444_v14  ;;  %1467 = vtanh.f32 %v630_v15 }
 0x11d   : > { %v1448_v18 = vpop.eup %1447  ;;  %959 = vst [vmem:[%s1742_s29 + $0x170] sm:$0xff] %v1446_v17  ;;  %1469 = vtanh.f32 %v790_v16  ;;  %v1270_v20 = vpop.f32.mrb[22].mxu0 }
 0x11e   : > { %v1450_v19 = vpop.eup %1449  ;;  %930 = vst [vmem:[%s1742_s29 + $0x88] sm:$0xff] %v1448_v18  ;;  %v1318_v21 = vpop.f32.mrb[22].mxu1  ;;  %1471 = vtanh.f32 %v1270_v20 }
 0x11f   : > { %v1452_v22 = vpop.eup %1451  ;;  %962 = vst [vmem:[%s1742_s29 + $0x188] sm:$0xff] %v1450_v19  ;;  %v640_v23 = vpop.f32.mrb[23].mxu0  ;;  %1473 = vtanh.f32 %v1318_v21 }
 0x120   : > { %v800_v24 = vpop.f32.mrb[23].mxu1  ;;  %v1454_v25 = vpop.eup %1453  ;;  %929 = vst [vmem:[%s1742_s29 + $0x80] sm:$0xff] %v1452_v22  ;;  %1475 = vtanh.f32 %v640_v23 }
 0x121   : > { %v1456_v26 = vpop.eup %1455  ;;  %961 = vst [vmem:[%s1742_s29 + $0x180] sm:$0xff] %v1454_v25  ;;  %1477 = vtanh.f32 %v800_v24  ;;  %v1273_v28 = vpop.f32.mrb[24].mxu0 }
 0x122   : > { %v1458_v27 = vpop.eup %1457  ;;  %932 = vst [vmem:[%s1742_s29 + $0x98] sm:$0xff] %v1456_v26  ;;  %v1321_v29 = vpop.f32.mrb[24].mxu1  ;;  %1479 = vtanh.f32 %v1273_v28 }
 0x123   : > { %v1460_v30 = vpop.eup %1459  ;;  %964 = vst [vmem:[%s1742_s29 + $0x198] sm:$0xff] %v1458_v27  ;;  %v650_v31 = vpop.f32.mrb[25].mxu0  ;;  %1481 = vtanh.f32 %v1321_v29 }
 0x124   : > { %v810_v32 = vpop.f32.mrb[25].mxu1  ;;  %v1462_v33 = vpop.eup %1461  ;;  %931 = vst [vmem:[%s1742_s29 + $0x90] sm:$0xff] %v1460_v30  ;;  %1483 = vtanh.f32 %v650_v31 }
 0x125   : > { %v1464_v34 = vpop.eup %1463  ;;  %963 = vst [vmem:[%s1742_s29 + $0x190] sm:$0xff] %v1462_v33  ;;  %1485 = vtanh.f32 %v810_v32  ;;  %v1276_v36 = vpop.f32.mrb[26].mxu0 }
 0x126   : > { %v1466_v35 = vpop.eup %1465  ;;  %934 = vst [vmem:[%s1742_s29 + $0xa8] sm:$0xff] %v1464_v34  ;;  %v1324_v37 = vpop.f32.mrb[26].mxu1  ;;  %1487 = vtanh.f32 %v1276_v36 }
 0x127   : > { %v1468_v38 = vpop.eup %1467  ;;  %966 = vst [vmem:[%s1742_s29 + $0x1a8] sm:$0xff] %v1466_v35  ;;  %v660_v39 = vpop.f32.mrb[27].mxu0  ;;  %1489 = vtanh.f32 %v1324_v37 }
 0x128   : > { %v820_v40 = vpop.f32.mrb[27].mxu1  ;;  %v1470_v41 = vpop.eup %1469  ;;  %933 = vst [vmem:[%s1742_s29 + $0xa0] sm:$0xff] %v1468_v38  ;;  %1491 = vtanh.f32 %v660_v39 }
 0x129   : > { %v1472_v42 = vpop.eup %1471  ;;  %965 = vst [vmem:[%s1742_s29 + $0x1a0] sm:$0xff] %v1470_v41  ;;  %1493 = vtanh.f32 %v820_v40  ;;  %v1279_v44 = vpop.f32.mrb[28].mxu0 }
 0x12a   : > { %v1474_v43 = vpop.eup %1473  ;;  %936 = vst [vmem:[%s1742_s29 + $0xb8] sm:$0xff] %v1472_v42  ;;  %v1327_v45 = vpop.f32.mrb[28].mxu1  ;;  %1495 = vtanh.f32 %v1279_v44 }
 0x12b   : > { %v1476_v46 = vpop.eup %1475  ;;  %968 = vst [vmem:[%s1742_s29 + $0x1b8] sm:$0xff] %v1474_v43  ;;  %v670_v47 = vpop.f32.mrb[29].mxu0  ;;  %1497 = vtanh.f32 %v1327_v45 }
 0x12c   : > { %v830_v48 = vpop.f32.mrb[29].mxu1  ;;  %v1478_v49 = vpop.eup %1477  ;;  %935 = vst [vmem:[%s1742_s29 + $0xb0] sm:$0xff] %v1476_v46  ;;  %1499 = vtanh.f32 %v670_v47 }
 0x12d   : > { %v1480_v50 = vpop.eup %1479  ;;  %967 = vst [vmem:[%s1742_s29 + $0x1b0] sm:$0xff] %v1478_v49  ;;  %1501 = vtanh.f32 %v830_v48  ;;  %v1282_v52 = vpop.f32.mrb[30].mxu0 }
 0x12e   : > { %v1482_v51 = vpop.eup %1481  ;;  %938 = vst [vmem:[%s1742_s29 + $0xc8] sm:$0xff] %v1480_v50  ;;  %v1330_v53 = vpop.f32.mrb[30].mxu1  ;;  %1503 = vtanh.f32 %v1282_v52 }
 0x12f   : > { %v1484_v54 = vpop.eup %1483  ;;  %970 = vst [vmem:[%s1742_s29 + $0x1c8] sm:$0xff] %v1482_v51  ;;  %v680_v55 = vpop.f32.mrb[31].mxu0  ;;  %1505 = vtanh.f32 %v1330_v53 }
 0x130   : > { %v840_v56 = vpop.f32.mrb[31].mxu1  ;;  %v1486_v57 = vpop.eup %1485  ;;  %937 = vst [vmem:[%s1742_s29 + $0xc0] sm:$0xff] %v1484_v54  ;;  %1507 = vtanh.f32 %v680_v55 }
 0x131   : > { %v1488_v58 = vpop.eup %1487  ;;  %969 = vst [vmem:[%s1742_s29 + $0x1c0] sm:$0xff] %v1486_v57  ;;  %1509 = vtanh.f32 %v840_v56 }
 0x132   : > { %v1490_v59 = vpop.eup %1489  ;;  %940 = vst [vmem:[%s1742_s29 + $0xd8] sm:$0xff] %v1488_v58 }
 0x133   : > { %v1492_v60 = vpop.eup %1491  ;;  %972 = vst [vmem:[%s1742_s29 + $0x1d8] sm:$0xff] %v1490_v59 }
 0x134   : > { %v1494_v61 = vpop.eup %1493  ;;  %939 = vst [vmem:[%s1742_s29 + $0xd0] sm:$0xff] %v1492_v60 }
 0x135   : > { %v1496_v62 = vpop.eup %1495  ;;  %971 = vst [vmem:[%s1742_s29 + $0x1d0] sm:$0xff] %v1494_v61 }
 0x136   : > { %v1498_v63 = vpop.eup %1497  ;;  %942 = vst [vmem:[%s1742_s29 + $0xe8] sm:$0xff] %v1496_v62 }
 0x137   : > { %v1500_v0 = vpop.eup %1499  ;;  %974 = vst [vmem:[%s1742_s29 + $0x1e8] sm:$0xff] %v1498_v63 }
 0x138   : > { %v1502_v1 = vpop.eup %1501  ;;  %941 = vst [vmem:[%s1742_s29 + $0xe0] sm:$0xff] %v1500_v0 }
 0x139   : > { %v1504_v2 = vpop.eup %1503  ;;  %973 = vst [vmem:[%s1742_s29 + $0x1e0] sm:$0xff] %v1502_v1 }
 0x13a   : > { %v1506_v3 = vpop.eup %1505  ;;  %944 = vst [vmem:[%s1742_s29 + $0xf8] sm:$0xff] %v1504_v2 }
 0x13b   : > { %v1508_v4 = vpop.eup %1507  ;;  %976 = vst [vmem:[%s1742_s29 + $0x1f8] sm:$0xff] %v1506_v3 }
 0x13c   : > { %v1510_v5 = vpop.eup %1509  ;;  %943 = vst [vmem:[%s1742_s29 + $0xf0] sm:$0xff] %v1508_v4 }
 0x13d   : > { %975 = vst [vmem:[%s1742_s29 + $0x1f0] sm:$0xff] %v1510_v5 }
 0x13e PF: > { %s12_s13 = sadd.s32 1, %s1549_s13   ;;  %s1826_s9 = smov %s1541_s11 }
 0x13f   : > { %p9_p7 = scmp.ge.s32.totalorder %s12_s13, 18   ;;  %s1827_s10 = smov %s1545_s12 }
 0x140   : > { %s1828_s11 = smov %s1831_s14  ;;  %s1829_s12 = smov %s1835_s15 }
 0x141   :  { %11 = sbr.rel (!%p9_p7) target bundleno = 3 (0x3), region = 61 }

</bundles_post_ra>
